<compile_context>
chip_gen: v7x
topology: tpu7x:2x2x1
jax: 0.10.0
libtpu: 0.0.40
codegen_flags: <defaults>
</compile_context>

<pallas_src>
import functools

import jax
import jax.numpy as jnp
from jax.experimental import pallas as pl
from jax.experimental.pallas import tpu as pltpu

EPS = 1e-5                      # nn.InstanceNorm3d default eps
MATMUL_DTYPE = jnp.bfloat16     # MXU input dtype for the dense 3x3x3 convs


# ------------------------------ tiling helpers ------------------------------ #

def _spatial_tile(S, max_tile=2048):
    """Largest spatial (lane) tile <= max_tile that divides S, else full S."""
    if S <= max_tile:
        return S
    for t in (max_tile, 1024, 512, 256, 128):
        if t <= max_tile and S % t == 0:
            return t
    return S  # fall back to a single full-extent block


def _channel_tile(C, S, budget_bytes=8 << 20):
    """Largest channel tile (divisor of C, multiple of 8 unless == C) whose
    (tc, S) f32 block fits the VMEM budget."""
    for tc in range(C, 0, -1):
        if C % tc:
            continue
        if tc != C and tc % 8 != 0:
            continue
        if tc * S * 4 <= budget_bytes:
            return tc
    # TODO(synk): if even a single channel row exceeds the budget, switch the
    # InstanceNorm to a two-pass / accumulator reduction over spatial tiles.
    return C


# ----------------------------- Pallas kernels ------------------------------ #

def matmul_bias_kernel(w_ref, x_ref, b_ref, o_ref):
    # o[Co, ts] = W[Co, K] @ X[K, ts] + b[Co, 1]    (lane-dense output)
    o_ref[...] = (
        jnp.dot(w_ref[...], x_ref[...], preferred_element_type=jnp.float32)
        + b_ref[...]
    )


def instnorm_relu_kernel(x_ref, g_ref, b_ref, o_ref):
    # x: (tc, S) — one full spatial extent per (n, c) row (single-pass stats,
    # biased variance, matching PyTorch InstanceNorm3d).
    x = x_ref[...]
    mean = jnp.mean(x, axis=-1, keepdims=True)
    var = jnp.mean(jnp.square(x - mean), axis=-1, keepdims=True)
    y = (x - mean) * jax.lax.rsqrt(var + EPS)
    o_ref[...] = jnp.maximum(y * g_ref[...] + b_ref[...], 0.0)


def depthwise_in_relu_kernel(x_ref, w_ref, cb_ref, g_ref, b_ref, o_ref):
    # Depthwise 3x3x3 conv as a VPU stencil over 27 pre-shifted taps, fused
    # with InstanceNorm + ReLU.
    # x: (27, C, S), w: (27, C, 1), cb/g/b: (C, 1), o: (C, S)
    taps = x_ref.shape[0]
    acc = x_ref[0] * w_ref[0]
    for k in range(1, taps):              # 27 static VPU multiply-adds
        acc = acc + x_ref[k] * w_ref[k]
    conv = acc + cb_ref[...]
    mean = jnp.mean(conv, axis=-1, keepdims=True)
    var = jnp.mean(jnp.square(conv - mean), axis=-1, keepdims=True)
    y = (conv - mean) * jax.lax.rsqrt(var + EPS)
    o_ref[...] = jnp.maximum(y * g_ref[...] + b_ref[...], 0.0)


def matmul_in_relu_kernel(w_ref, x_ref, cb_ref, g_ref, b_ref, o_ref):
    # 1x1 (pointwise) conv fused with InstanceNorm + ReLU.
    # w: (Co, C), x: (C, S), cb/g/b: (Co, 1), o: (Co, S)
    conv = (
        jnp.dot(w_ref[...], x_ref[...], preferred_element_type=jnp.float32)
        + cb_ref[...]
    )
    mean = jnp.mean(conv, axis=-1, keepdims=True)
    var = jnp.mean(jnp.square(conv - mean), axis=-1, keepdims=True)
    y = (conv - mean) * jax.lax.rsqrt(var + EPS)
    o_ref[...] = jnp.maximum(y * g_ref[...] + b_ref[...], 0.0)


def combine_conv_out_kernel(w_ref, a_ref, u_ref, b_ref, o_ref):
    # out = conv_out(app * upsample) — fused elementwise multiply + 1x1 conv.
    x = a_ref[...] * u_ref[...]
    o_ref[...] = (
        jnp.dot(w_ref[...], x, preferred_element_type=jnp.float32) + b_ref[...]
    )


# --------------------------- Pallas call wrappers --------------------------- #

def pallas_conv_matmul(wmat, patches, bias):
    # patches: (N, K, S), wmat: (Co, K), bias: (Co,) -> (N, Co, S) f32
    N, K, S = patches.shape
    Co = wmat.shape[0]
    ts = _spatial_tile(S)
    b2 = bias.reshape(Co, 1).astype(jnp.float32)
    return pl.pallas_call(
        matmul_bias_kernel,
        out_shape=jax.ShapeDtypeStruct((N, Co, S), jnp.float32),
        grid=(N, S // ts),
        in_specs=[
            pl.BlockSpec((Co, K), lambda n, s: (0, 0)),
            pl.BlockSpec((None, K, ts), lambda n, s: (n, 0, s)),
            pl.BlockSpec((Co, 1), lambda n, s: (0, 0)),
        ],
        out_specs=pl.BlockSpec((None, Co, ts), lambda n, s: (n, 0, s)),
        compiler_params=pltpu.CompilerParams(
            dimension_semantics=("parallel", "parallel")),
    )(wmat, patches, b2)


def pallas_instance_norm_relu(x, gamma, beta):
    # x: (N, C, D, H, W) f32 — per-(n, c) stats over D*H*W.
    N, C, D, H, W = x.shape
    S = D * H * W
    tc = _channel_tile(C, S)
    x3 = x.reshape(N, C, S)
    g = gamma.reshape(C, 1)
    b = beta.reshape(C, 1)
    out = pl.pallas_call(
        instnorm_relu_kernel,
        out_shape=jax.ShapeDtypeStruct((N, C, S), jnp.float32),
        grid=(N, C // tc),
        in_specs=[
            pl.BlockSpec((None, tc, S), lambda n, c: (n, c, 0)),
            pl.BlockSpec((tc, 1), lambda n, c: (c, 0)),
            pl.BlockSpec((tc, 1), lambda n, c: (c, 0)),
        ],
        out_specs=pl.BlockSpec((None, tc, S), lambda n, c: (n, c, 0)),
        compiler_params=pltpu.CompilerParams(
            dimension_semantics=("parallel", "parallel")),
    )(x3, g, b)
    return out.reshape(N, C, D, H, W)


def pallas_depthwise_in_relu(x, weight, cbias, gamma, beta):
    # Depthwise Conv3d(k3, groups=C) + InstanceNorm + ReLU, fused.
    # x: (N, C, D, H, W), weight: (C, 1, 3, 3, 3)
    N, C, D, H, W = x.shape
    S = D * H * W
    taps = build_patches_3x3(x, dtype=jnp.float32, taps_leading=True)  # (N,27,C,S)
    w = jnp.transpose(weight.reshape(C, 27), (1, 0)).reshape(27, C, 1)
    cb = cbias.reshape(C, 1)
    g = gamma.reshape(C, 1)
    b = beta.reshape(C, 1)
    out = pl.pallas_call(
        depthwise_in_relu_kernel,
        out_shape=jax.ShapeDtypeStruct((N, C, S), jnp.float32),
        grid=(N,),
        in_specs=[
            pl.BlockSpec((None, 27, C, S), lambda n: (n, 0, 0, 0)),
            pl.BlockSpec((27, C, 1), lambda n: (0, 0, 0)),
            pl.BlockSpec((C, 1), lambda n: (0, 0)),
            pl.BlockSpec((C, 1), lambda n: (0, 0)),
            pl.BlockSpec((C, 1), lambda n: (0, 0)),
        ],
        out_specs=pl.BlockSpec((None, C, S), lambda n: (n, 0, 0)),
        compiler_params=pltpu.CompilerParams(
            dimension_semantics=("parallel",)),
    )(taps, w, cb, g, b)
    return out.reshape(N, C, D, H, W)


def pallas_pointwise_in_relu(x, weight, cbias, gamma, beta):
    # Conv3d(k1) + InstanceNorm + ReLU, fused.  weight: (Co, C, 1, 1, 1)
    N, C, D, H, W = x.shape
    S = D * H * W
    Co = weight.shape[0]
    x3 = x.reshape(N, C, S)
    w = weight.reshape(Co, C)
    cb = cbias.reshape(Co, 1)
    g = gamma.reshape(Co, 1)
    b = beta.reshape(Co, 1)
    out = pl.pallas_call(
        matmul_in_relu_kernel,
        out_shape=jax.ShapeDtypeStruct((N, Co, S), jnp.float32),
        grid=(N,),
        in_specs=[
            pl.BlockSpec((Co, C), lambda n: (0, 0)),
            pl.BlockSpec((None, C, S), lambda n: (n, 0, 0)),
            pl.BlockSpec((Co, 1), lambda n: (0, 0)),
            pl.BlockSpec((Co, 1), lambda n: (0, 0)),
            pl.BlockSpec((Co, 1), lambda n: (0, 0)),
        ],
        out_specs=pl.BlockSpec((None, Co, S), lambda n: (n, 0, 0)),
        compiler_params=pltpu.CompilerParams(
            dimension_semantics=("parallel",)),
    )(w, x3, cb, g, b)
    return out.reshape(N, Co, D, H, W)


def pallas_combine_conv_out(app, up, weight, bias):
    # out = conv_out(app * up); weight: (Co, C, 1, 1, 1)
    N, C, D, H, W = app.shape
    S = D * H * W
    Co = weight.shape[0]
    ts = _spatial_tile(S)
    a3 = app.reshape(N, C, S)
    u3 = up.reshape(N, C, S)
    w = weight.reshape(Co, C)
    b = bias.reshape(Co, 1)
    out = pl.pallas_call(
        combine_conv_out_kernel,
        out_shape=jax.ShapeDtypeStruct((N, Co, S), jnp.float32),
        grid=(N, S // ts),
        in_specs=[
            pl.BlockSpec((Co, C), lambda n, s: (0, 0)),
            pl.BlockSpec((None, C, ts), lambda n, s: (n, 0, s)),
            pl.BlockSpec((None, C, ts), lambda n, s: (n, 0, s)),
            pl.BlockSpec((Co, 1), lambda n, s: (0, 0)),
        ],
        out_specs=pl.BlockSpec((None, Co, ts), lambda n, s: (n, 0, s)),
        compiler_params=pltpu.CompilerParams(
            dimension_semantics=("parallel", "parallel")),
    )(w, a3, u3, b)
    return out.reshape(N, Co, D, H, W)


# ------------------------------ JAX glue ops -------------------------------- #

def build_patches_3x3(x, dtype, taps_leading=False):
    # x: (N, C, D, H, W).  Builds the 27 zero-padded shifted taps WITHOUT any
    # transposes (channels-major, spatial on the fast axis).
    #   taps_leading=False: (N, C*27, D*H*W)   rows match the (cin, kd, kh, kw)
    #                                          weight.reshape(Co, Cin*27) order
    #   taps_leading=True : (N, 27, C, D*H*W)  for the depthwise VPU stencil
    # TODO(synk): fuse this patch extraction into the matmul kernel with
    # halo'd spatial tiles to avoid materializing the 27x patches in HBM.
    N, C, D, H, W = x.shape
    xp = jnp.pad(x, ((0, 0), (0, 0), (1, 1), (1, 1), (1, 1))).astype(dtype)
    taps = [
        xp[:, :, kd:kd + D, kh:kh + H, kw:kw + W]
        for kd in range(3) for kh in range(3) for kw in range(3)
    ]
    if taps_leading:
        p = jnp.stack(taps, axis=1)                 # (N, 27, C, D, H, W)
        return p.reshape(N, 27, C, D * H * W)
    p = jnp.stack(taps, axis=2)                     # (N, C, 27, D, H, W)
    return p.reshape(N, C * 27, D * H * W)


def conv3d_3x3(x, weight, bias):
    # Dense Conv3d(k3, stride 1, pad 1): lane-dense transposed matmul per batch.
    N, Cin, D, H, W = x.shape
    Co = weight.shape[0]
    patches = build_patches_3x3(x, dtype=MATMUL_DTYPE)       # (N, Cin*27, S) bf16
    wmat = weight.reshape(Co, Cin * 27).astype(MATMUL_DTYPE)
    out = pallas_conv_matmul(wmat, patches, bias)            # (N, Co, S) f32
    return out.reshape(N, Co, D, H, W)


def avgpool3d_3_s2_p1(x):
    # AvgPool3d(3, stride=2, padding=1), count_include_pad=True (PyTorch default)
    s = jax.lax.reduce_window(
        x, 0.0, jax.lax.add,
        window_dimensions=(1, 1, 3, 3, 3),
        window_strides=(1, 1, 2, 2, 2),
        padding=((0, 0), (0, 0), (1, 1), (1, 1), (1, 1)),
    )
    return s / 27.0


def _upsample_axis(x, axis, out_size):
    in_size = x.shape[axis]
    idx = jnp.arange(out_size)
    pos = idx * ((in_size - 1) / max(out_size - 1, 1))
    i0 = jnp.floor(pos).astype(jnp.int32)
    i1 = jnp.minimum(i0 + 1, in_size - 1)
    w = (pos - i0).astype(x.dtype)
    x0 = jnp.take(x, i0, axis=axis)
    x1 = jnp.take(x, i1, axis=axis)
    shape = [1] * x.ndim
    shape[axis] = out_size
    w = w.reshape(shape)
    return x0 * (1.0 - w) + x1 * w


def upsample_trilinear_x2(x):
    # F.interpolate(scale_factor=(2,2,2), mode='trilinear', align_corners=True)
    # TODO(synk): fuse the trilinear interpolation into combine_conv_out_kernel
    # so the full-resolution upsampled volume never hits HBM.
    N, C, D, H, W = x.shape
    x = _upsample_axis(x, 2, 2 * D)
    x = _upsample_axis(x, 3, 2 * H)
    x = _upsample_axis(x, 4, 2 * W)
    return x


# ------------------------------ parameters ---------------------------------- #

def kaiming_uniform(key, shape, fan_in):
    bound = float(jnp.sqrt(6.0 / fan_in))  # gain sqrt(2) * sqrt(3/fan_in)
    return jax.random.uniform(key, shape, jnp.float32, -bound, bound)


def init_params(key, in_ch, out_ch):
    ks = jax.random.split(key, 6)
    p = {}
    # Appearance: SingleConv(in_ch->32, k3) ; SingleConv(32->out_ch, k3)
    p["app1_w"] = kaiming_uniform(ks[0], (32, in_ch, 3, 3, 3), in_ch * 27)
    p["app1_b"] = jnp.zeros((32,), jnp.float32)
    p["app1_g"] = jnp.ones((32,), jnp.float32)
    p["app1_bn"] = jnp.zeros((32,), jnp.float32)
    p["app2_w"] = kaiming_uniform(ks[1], (out_ch, 32, 3, 3, 3), 32 * 27)
    p["app2_b"] = jnp.zeros((out_ch,), jnp.float32)
    p["app2_g"] = jnp.ones((out_ch,), jnp.float32)
    p["app2_bn"] = jnp.zeros((out_ch,), jnp.float32)
    # SpatialConfiguration (hard-coded 9 channels in the PyTorch module)
    p["dw_w"] = kaiming_uniform(ks[2], (9, 1, 3, 3, 3), 27)
    p["dw_b"] = jnp.zeros((9,), jnp.float32)
    p["dw_g"] = jnp.ones((9,), jnp.float32)
    p["dw_bn"] = jnp.zeros((9,), jnp.float32)
    p["pw_w"] = kaiming_uniform(ks[3], (9, 9, 1, 1, 1), 9)
    p["pw_b"] = jnp.zeros((9,), jnp.float32)
    p["pw_g"] = jnp.ones((9,), jnp.float32)
    p["pw_bn"] = jnp.zeros((9,), jnp.float32)
    # conv_out: Conv3d(9 -> out_ch, k1) with PyTorch-style default uniform init
    bound = 1.0 / float(jnp.sqrt(9.0))
    p["out_w"] = jax.random.uniform(ks[4], (out_ch, 9, 1, 1, 1), jnp.float32,
                                    -bound, bound)
    p["out_b"] = jax.random.uniform(ks[5], (out_ch,), jnp.float32, -bound, bound)
    return p


# ------------------------------- forward ------------------------------------ #

def model_forward(params, x):
    # Appearance: two (Conv3x3 -> InstanceNorm -> ReLU) blocks.
    h = conv3d_3x3(x, params["app1_w"], params["app1_b"])
    h = pallas_instance_norm_relu(h, params["app1_g"], params["app1_bn"])
    h = conv3d_3x3(h, params["app2_w"], params["app2_b"])
    app = pallas_instance_norm_relu(h, params["app2_g"], params["app2_bn"])

    # SpatialConfiguration: AvgPool -> depthwise(k3, fused IN+ReLU)
    #                       -> pointwise(k1, fused IN+ReLU)
    s = avgpool3d_3_s2_p1(app)
    s = pallas_depthwise_in_relu(s, params["dw_w"], params["dw_b"],
                                 params["dw_g"], params["dw_bn"])
    s = pallas_pointwise_in_relu(s, params["pw_w"], params["pw_b"],
                                 params["pw_g"], params["pw_bn"])

    # UpSampling (trilinear x2, align_corners=True)
    up = upsample_trilinear_x2(s)

    # Combination (App * Up) fused with the 1x1 conv_out in one Pallas kernel.
    return pallas_combine_conv_out(app, up, params["out_w"], params["out_b"])


# --------------------------------- main -------------------------------------- #

if __name__ == "__main__":
    key = jax.random.PRNGKey(0)
    k_x, k_p = jax.random.split(key)

    # SpatialConfiguration hard-codes 9 channels, so out_ch must be 9 for the
    # network to be self-consistent (same constraint as the PyTorch module).
    in_ch, out_ch = 1, 9
    x = jax.random.normal(k_x, (2, in_ch, 8, 8, 8), jnp.float32)
    params = init_params(k_p, in_ch, out_ch)

    fwd = jax.jit(functools.partial(model_forward, params))
    y = fwd(x)
    jax.block_until_ready(y)
    assert y.shape == (2, out_ch, 8, 8, 8), y.shape
    assert bool(jnp.all(jnp.isfinite(y)))
    print("KERNEL_OK")
</pallas_src>

<mosaic_0001>
module attributes {stable_mosaic.version = 11 : i64} {
  func.func @matmul_bias_kernel(%arg0: i32, %arg1: i32, %arg2: memref<32x27xbf16, #tpu.memory_space<vmem>>, %arg3: memref<1x27x512xbf16, #tpu.memory_space<vmem>>, %arg4: memref<32x1xf32, #tpu.memory_space<vmem>>, %arg5: memref<1x32x512xf32, #tpu.memory_space<vmem>>) attributes {dimension_semantics = [#tpu.dimension_semantics<parallel>, #tpu.dimension_semantics<parallel>], iteration_bounds = array<i64: 2, 1>, scalar_prefetch = 0 : i64, scratch_operands = 0 : i64, tpu.core_type = #tpu.core_type<tc>, window_params = [{pipeline_mode = #tpu.pipeline_mode<synchronous>, transform_indices = @transform_0, window_bounds = array<i64: 32, 27>}, {transform_indices = @transform_1, window_bounds = array<i64: 1, 27, 512>}, {pipeline_mode = #tpu.pipeline_mode<synchronous>, transform_indices = @transform_2, window_bounds = array<i64: 32, 1>}, {transform_indices = @transform_3, window_bounds = array<i64: 1, 32, 512>}]} {
    %c0 = arith.constant 0 : index
    %c0_0 = arith.constant 0 : index
    %0 = vector.load %arg2[%c0, %c0_0] : memref<32x27xbf16, #tpu.memory_space<vmem>>, vector<32x27xbf16>
    %c0_1 = arith.constant 0 : index
    %c0_2 = arith.constant 0 : index
    %c0_3 = arith.constant 0 : index
    %1 = vector.load %arg3[%c0_1, %c0_2, %c0_3] : memref<1x27x512xbf16, #tpu.memory_space<vmem>>, vector<1x27x512xbf16>
    %2 = vector.shape_cast %1 : vector<1x27x512xbf16> to vector<27x512xbf16>
    %cst = arith.constant dense<0.000000e+00> : vector<32x512xf32>
    %3 = tpu.matmul %0, %2, %cst {dimension_numbers = #tpu.dot_dimension_numbers<[1], [0], [0], [1], [0, 0, 1, 1], [], []>} : vector<32x27xbf16>, vector<27x512xbf16>, vector<32x512xf32> -> vector<32x512xf32>
    %c0_4 = arith.constant 0 : index
    %c0_5 = arith.constant 0 : index
    %4 = vector.load %arg4[%c0_4, %c0_5] : memref<32x1xf32, #tpu.memory_space<vmem>>, vector<32x1xf32>
    %5 = vector.broadcast %4 : vector<32x1xf32> to vector<32x512xf32>
    %6 = arith.addf %3, %5 : vector<32x512xf32>
    %c0_6 = arith.constant 0 : index
    %c0_7 = arith.constant 0 : index
    %c0_8 = arith.constant 0 : index
    %7 = vector.load %arg5[%c0_6, %c0_7, %c0_8] : memref<1x32x512xf32, #tpu.memory_space<vmem>>, vector<1x32x512xf32>
    %8 = vector.shape_cast %7 : vector<1x32x512xf32> to vector<32x512xf32>
    %9 = vector.shape_cast %6 : vector<32x512xf32> to vector<1x32x512xf32>
    tpu.vector_store %arg5[%c0_6, %c0_7, %c0_8], %9 {strides = array<i32>} : memref<1x32x512xf32, #tpu.memory_space<vmem>>, vector<1x32x512xf32>,
    return
  }
  func.func @transform_0(%arg0: i32, %arg1: i32) -> (i32, i32) {
    %c0_i32 = arith.constant 0 : i32
    %c0_i32_0 = arith.constant 0 : i32
    %c0_i32_1 = arith.constant 0 : i32
    return %c0_i32, %c0_i32_0 : i32, i32
  }
  func.func @transform_1(%arg0: i32, %arg1: i32) -> (i32, i32, i32) {
    %c0_i32 = arith.constant 0 : i32
    %c0_i32_0 = arith.constant 0 : i32
    return %arg0, %c0_i32, %arg1 : i32, i32, i32
  }
  func.func @transform_2(%arg0: i32, %arg1: i32) -> (i32, i32) {
    %c0_i32 = arith.constant 0 : i32
    %c0_i32_0 = arith.constant 0 : i32
    %c0_i32_1 = arith.constant 0 : i32
    return %c0_i32, %c0_i32_0 : i32, i32
  }
  func.func @transform_3(%arg0: i32, %arg1: i32) -> (i32, i32, i32) {
    %c0_i32 = arith.constant 0 : i32
    %c0_i32_0 = arith.constant 0 : i32
    return %arg0, %c0_i32, %arg1 : i32, i32, i32
  }
}

module attributes {stable_mosaic.version = 11 : i64} {
  func.func @instnorm_relu_kernel(%arg0: i32, %arg1: i32, %arg2: memref<1x32x512xf32, #tpu.memory_space<vmem>>, %arg3: memref<32x1xf32, #tpu.memory_space<vmem>>, %arg4: memref<32x1xf32, #tpu.memory_space<vmem>>, %arg5: memref<1x32x512xf32, #tpu.memory_space<vmem>>) attributes {dimension_semantics = [#tpu.dimension_semantics<parallel>, #tpu.dimension_semantics<parallel>], iteration_bounds = array<i64: 2, 1>, scalar_prefetch = 0 : i64, scratch_operands = 0 : i64, tpu.core_type = #tpu.core_type<tc>, window_params = [{transform_indices = @transform_0, window_bounds = array<i64: 1, 32, 512>}, {transform_indices = @transform_1, window_bounds = array<i64: 32, 1>}, {transform_indices = @transform_2, window_bounds = array<i64: 32, 1>}, {transform_indices = @transform_3, window_bounds = array<i64: 1, 32, 512>}]} {
    %c0 = arith.constant 0 : index
    %c0_0 = arith.constant 0 : index
    %c0_1 = arith.constant 0 : index
    %0 = vector.load %arg2[%c0, %c0_0, %c0_1] : memref<1x32x512xf32, #tpu.memory_space<vmem>>, vector<1x32x512xf32>
    %1 = vector.shape_cast %0 : vector<1x32x512xf32> to vector<32x512xf32>
    %cst = arith.constant dense<0.000000e+00> : vector<32xf32>
    %2 = vector.multi_reduction <add>, %1, %cst [1] : vector<32x512xf32> to vector<32xf32>
    %3 = vector.shape_cast %2 : vector<32xf32> to vector<32x1xf32>
    %cst_2 = arith.constant 5.120000e+02 : f32
    %4 = vector.broadcast %cst_2 : f32 to vector<32x1xf32>
    %5 = arith.divf %3, %4 : vector<32x1xf32>
    %6 = vector.broadcast %5 : vector<32x1xf32> to vector<32x512xf32>
    %7 = arith.subf %1, %6 : vector<32x512xf32>
    %8 = arith.mulf %7, %7 : vector<32x512xf32>
    %cst_3 = arith.constant dense<0.000000e+00> : vector<32xf32>
    %9 = vector.multi_reduction <add>, %8, %cst_3 [1] : vector<32x512xf32> to vector<32xf32>
    %10 = vector.shape_cast %9 : vector<32xf32> to vector<32x1xf32>
    %cst_4 = arith.constant 5.120000e+02 : f32
    %11 = vector.broadcast %cst_4 : f32 to vector<32x1xf32>
    %12 = arith.divf %10, %11 : vector<32x1xf32>
    %13 = vector.broadcast %5 : vector<32x1xf32> to vector<32x512xf32>
    %14 = arith.subf %1, %13 : vector<32x512xf32>
    %cst_5 = arith.constant 9.99999974E-6 : f32
    %15 = vector.broadcast %cst_5 : f32 to vector<32x1xf32>
    %16 = arith.addf %12, %15 : vector<32x1xf32>
    %17 = math.rsqrt %16 : vector<32x1xf32>
    %18 = vector.broadcast %17 : vector<32x1xf32> to vector<32x512xf32>
    %19 = arith.mulf %14, %18 : vector<32x512xf32>
    %c0_6 = arith.constant 0 : index
    %c0_7 = arith.constant 0 : index
    %20 = vector.load %arg3[%c0_6, %c0_7] : memref<32x1xf32, #tpu.memory_space<vmem>>, vector<32x1xf32>
    %21 = vector.broadcast %20 : vector<32x1xf32> to vector<32x512xf32>
    %22 = arith.mulf %19, %21 : vector<32x512xf32>
    %c0_8 = arith.constant 0 : index
    %c0_9 = arith.constant 0 : index
    %23 = vector.load %arg4[%c0_8, %c0_9] : memref<32x1xf32, #tpu.memory_space<vmem>>, vector<32x1xf32>
    %24 = vector.broadcast %23 : vector<32x1xf32> to vector<32x512xf32>
    %25 = arith.addf %22, %24 : vector<32x512xf32>
    %cst_10 = arith.constant 0.000000e+00 : f32
    %26 = vector.broadcast %cst_10 : f32 to vector<32x512xf32>
    %27 = arith.maximumf %25, %26 : vector<32x512xf32>
    %c0_11 = arith.constant 0 : index
    %c0_12 = arith.constant 0 : index
    %c0_13 = arith.constant 0 : index
    %28 = vector.load %arg5[%c0_11, %c0_12, %c0_13] : memref<1x32x512xf32, #tpu.memory_space<vmem>>, vector<1x32x512xf32>
    %29 = vector.shape_cast %28 : vector<1x32x512xf32> to vector<32x512xf32>
    %30 = vector.shape_cast %27 : vector<32x512xf32> to vector<1x32x512xf32>
    tpu.vector_store %arg5[%c0_11, %c0_12, %c0_13], %30 {strides = array<i32>} : memref<1x32x512xf32, #tpu.memory_space<vmem>>, vector<1x32x512xf32>,
    return
  }
  func.func @transform_0(%arg0: i32, %arg1: i32) -> (i32, i32, i32) {
    %c0_i32 = arith.constant 0 : i32
    %c0_i32_0 = arith.constant 0 : i32
    return %arg0, %arg1, %c0_i32 : i32, i32, i32
  }
  func.func @transform_1(%arg0: i32, %arg1: i32) -> (i32, i32) {
    %c0_i32 = arith.constant 0 : i32
    %c0_i32_0 = arith.constant 0 : i32
    return %arg1, %c0_i32 : i32, i32
  }
  func.func @transform_2(%arg0: i32, %arg1: i32) -> (i32, i32) {
    %c0_i32 = arith.constant 0 : i32
    %c0_i32_0 = arith.constant 0 : i32
    return %arg1, %c0_i32 : i32, i32
  }
  func.func @transform_3(%arg0: i32, %arg1: i32) -> (i32, i32, i32) {
    %c0_i32 = arith.constant 0 : i32
    %c0_i32_0 = arith.constant 0 : i32
    return %arg0, %arg1, %c0_i32 : i32, i32, i32
  }
}

module attributes {stable_mosaic.version = 11 : i64} {
  func.func @matmul_bias_kernel(%arg0: i32, %arg1: i32, %arg2: memref<9x864xbf16, #tpu.memory_space<vmem>>, %arg3: memref<1x864x512xbf16, #tpu.memory_space<vmem>>, %arg4: memref<9x1xf32, #tpu.memory_space<vmem>>, %arg5: memref<1x9x512xf32, #tpu.memory_space<vmem>>) attributes {dimension_semantics = [#tpu.dimension_semantics<parallel>, #tpu.dimension_semantics<parallel>], iteration_bounds = array<i64: 2, 1>, scalar_prefetch = 0 : i64, scratch_operands = 0 : i64, tpu.core_type = #tpu.core_type<tc>, window_params = [{pipeline_mode = #tpu.pipeline_mode<synchronous>, transform_indices = @transform_0, window_bounds = array<i64: 9, 864>}, {transform_indices = @transform_1, window_bounds = array<i64: 1, 864, 512>}, {pipeline_mode = #tpu.pipeline_mode<synchronous>, transform_indices = @transform_2, window_bounds = array<i64: 9, 1>}, {transform_indices = @transform_3, window_bounds = array<i64: 1, 9, 512>}]} {
    %c0 = arith.constant 0 : index
    %c0_0 = arith.constant 0 : index
    %0 = vector.load %arg2[%c0, %c0_0] : memref<9x864xbf16, #tpu.memory_space<vmem>>, vector<9x864xbf16>
    %c0_1 = arith.constant 0 : index
    %c0_2 = arith.constant 0 : index
    %c0_3 = arith.constant 0 : index
    %1 = vector.load %arg3[%c0_1, %c0_2, %c0_3] : memref<1x864x512xbf16, #tpu.memory_space<vmem>>, vector<1x864x512xbf16>
    %2 = vector.shape_cast %1 : vector<1x864x512xbf16> to vector<864x512xbf16>
    %cst = arith.constant dense<0.000000e+00> : vector<9x512xf32>
    %3 = tpu.matmul %0, %2, %cst {dimension_numbers = #tpu.dot_dimension_numbers<[1], [0], [0], [1], [0, 0, 1, 1], [], []>} : vector<9x864xbf16>, vector<864x512xbf16>, vector<9x512xf32> -> vector<9x512xf32>
    %c0_4 = arith.constant 0 : index
    %c0_5 = arith.constant 0 : index
    %4 = vector.load %arg4[%c0_4, %c0_5] : memref<9x1xf32, #tpu.memory_space<vmem>>, vector<9x1xf32>
    %5 = vector.broadcast %4 : vector<9x1xf32> to vector<9x512xf32>
    %6 = arith.addf %3, %5 : vector<9x512xf32>
    %c0_6 = arith.constant 0 : index
    %c0_7 = arith.constant 0 : index
    %c0_8 = arith.constant 0 : index
    %7 = vector.load %arg5[%c0_6, %c0_7, %c0_8] : memref<1x9x512xf32, #tpu.memory_space<vmem>>, vector<1x9x512xf32>
    %8 = vector.shape_cast %7 : vector<1x9x512xf32> to vector<9x512xf32>
    %9 = vector.shape_cast %6 : vector<9x512xf32> to vector<1x9x512xf32>
    tpu.vector_store %arg5[%c0_6, %c0_7, %c0_8], %9 {strides = array<i32>} : memref<1x9x512xf32, #tpu.memory_space<vmem>>, vector<1x9x512xf32>,
    return
  }
  func.func @transform_0(%arg0: i32, %arg1: i32) -> (i32, i32) {
    %c0_i32 = arith.constant 0 : i32
    %c0_i32_0 = arith.constant 0 : i32
    %c0_i32_1 = arith.constant 0 : i32
    return %c0_i32, %c0_i32_0 : i32, i32
  }
  func.func @transform_1(%arg0: i32, %arg1: i32) -> (i32, i32, i32) {
    %c0_i32 = arith.constant 0 : i32
    %c0_i32_0 = arith.constant 0 : i32
    return %arg0, %c0_i32, %arg1 : i32, i32, i32
  }
  func.func @transform_2(%arg0: i32, %arg1: i32) -> (i32, i32) {
    %c0_i32 = arith.constant 0 : i32
    %c0_i32_0 = arith.constant 0 : i32
    %c0_i32_1 = arith.constant 0 : i32
    return %c0_i32, %c0_i32_0 : i32, i32
  }
  func.func @transform_3(%arg0: i32, %arg1: i32) -> (i32, i32, i32) {
    %c0_i32 = arith.constant 0 : i32
    %c0_i32_0 = arith.constant 0 : i32
    return %arg0, %c0_i32, %arg1 : i32, i32, i32
  }
}

module attributes {stable_mosaic.version = 11 : i64} {
  func.func @instnorm_relu_kernel(%arg0: i32, %arg1: i32, %arg2: memref<1x9x512xf32, #tpu.memory_space<vmem>>, %arg3: memref<9x1xf32, #tpu.memory_space<vmem>>, %arg4: memref<9x1xf32, #tpu.memory_space<vmem>>, %arg5: memref<1x9x512xf32, #tpu.memory_space<vmem>>) attributes {dimension_semantics = [#tpu.dimension_semantics<parallel>, #tpu.dimension_semantics<parallel>], iteration_bounds = array<i64: 2, 1>, scalar_prefetch = 0 : i64, scratch_operands = 0 : i64, tpu.core_type = #tpu.core_type<tc>, window_params = [{transform_indices = @transform_0, window_bounds = array<i64: 1, 9, 512>}, {transform_indices = @transform_1, window_bounds = array<i64: 9, 1>}, {transform_indices = @transform_2, window_bounds = array<i64: 9, 1>}, {transform_indices = @transform_3, window_bounds = array<i64: 1, 9, 512>}]} {
    %c0 = arith.constant 0 : index
    %c0_0 = arith.constant 0 : index
    %c0_1 = arith.constant 0 : index
    %0 = vector.load %arg2[%c0, %c0_0, %c0_1] : memref<1x9x512xf32, #tpu.memory_space<vmem>>, vector<1x9x512xf32>
    %1 = vector.shape_cast %0 : vector<1x9x512xf32> to vector<9x512xf32>
    %cst = arith.constant dense<0.000000e+00> : vector<9xf32>
    %2 = vector.multi_reduction <add>, %1, %cst [1] : vector<9x512xf32> to vector<9xf32>
    %3 = vector.shape_cast %2 : vector<9xf32> to vector<9x1xf32>
    %cst_2 = arith.constant 5.120000e+02 : f32
    %4 = vector.broadcast %cst_2 : f32 to vector<9x1xf32>
    %5 = arith.divf %3, %4 : vector<9x1xf32>
    %6 = vector.broadcast %5 : vector<9x1xf32> to vector<9x512xf32>
    %7 = arith.subf %1, %6 : vector<9x512xf32>
    %8 = arith.mulf %7, %7 : vector<9x512xf32>
    %cst_3 = arith.constant dense<0.000000e+00> : vector<9xf32>
    %9 = vector.multi_reduction <add>, %8, %cst_3 [1] : vector<9x512xf32> to vector<9xf32>
    %10 = vector.shape_cast %9 : vector<9xf32> to vector<9x1xf32>
    %cst_4 = arith.constant 5.120000e+02 : f32
    %11 = vector.broadcast %cst_4 : f32 to vector<9x1xf32>
    %12 = arith.divf %10, %11 : vector<9x1xf32>
    %13 = vector.broadcast %5 : vector<9x1xf32> to vector<9x512xf32>
    %14 = arith.subf %1, %13 : vector<9x512xf32>
    %cst_5 = arith.constant 9.99999974E-6 : f32
    %15 = vector.broadcast %cst_5 : f32 to vector<9x1xf32>
    %16 = arith.addf %12, %15 : vector<9x1xf32>
    %17 = math.rsqrt %16 : vector<9x1xf32>
    %18 = vector.broadcast %17 : vector<9x1xf32> to vector<9x512xf32>
    %19 = arith.mulf %14, %18 : vector<9x512xf32>
    %c0_6 = arith.constant 0 : index
    %c0_7 = arith.constant 0 : index
    %20 = vector.load %arg3[%c0_6, %c0_7] : memref<9x1xf32, #tpu.memory_space<vmem>>, vector<9x1xf32>
    %21 = vector.broadcast %20 : vector<9x1xf32> to vector<9x512xf32>
    %22 = arith.mulf %19, %21 : vector<9x512xf32>
    %c0_8 = arith.constant 0 : index
    %c0_9 = arith.constant 0 : index
    %23 = vector.load %arg4[%c0_8, %c0_9] : memref<9x1xf32, #tpu.memory_space<vmem>>, vector<9x1xf32>
    %24 = vector.broadcast %23 : vector<9x1xf32> to vector<9x512xf32>
    %25 = arith.addf %22, %24 : vector<9x512xf32>
    %cst_10 = arith.constant 0.000000e+00 : f32
    %26 = vector.broadcast %cst_10 : f32 to vector<9x512xf32>
    %27 = arith.maximumf %25, %26 : vector<9x512xf32>
    %c0_11 = arith.constant 0 : index
    %c0_12 = arith.constant 0 : index
    %c0_13 = arith.constant 0 : index
    %28 = vector.load %arg5[%c0_11, %c0_12, %c0_13] : memref<1x9x512xf32, #tpu.memory_space<vmem>>, vector<1x9x512xf32>
    %29 = vector.shape_cast %28 : vector<1x9x512xf32> to vector<9x512xf32>
    %30 = vector.shape_cast %27 : vector<9x512xf32> to vector<1x9x512xf32>
    tpu.vector_store %arg5[%c0_11, %c0_12, %c0_13], %30 {strides = array<i32>} : memref<1x9x512xf32, #tpu.memory_space<vmem>>, vector<1x9x512xf32>,
    return
  }
  func.func @transform_0(%arg0: i32, %arg1: i32) -> (i32, i32, i32) {
    %c0_i32 = arith.constant 0 : i32
    %c0_i32_0 = arith.constant 0 : i32
    return %arg0, %arg1, %c0_i32 : i32, i32, i32
  }
  func.func @transform_1(%arg0: i32, %arg1: i32) -> (i32, i32) {
    %c0_i32 = arith.constant 0 : i32
    %c0_i32_0 = arith.constant 0 : i32
    return %arg1, %c0_i32 : i32, i32
  }
  func.func @transform_2(%arg0: i32, %arg1: i32) -> (i32, i32) {
    %c0_i32 = arith.constant 0 : i32
    %c0_i32_0 = arith.constant 0 : i32
    return %arg1, %c0_i32 : i32, i32
  }
  func.func @transform_3(%arg0: i32, %arg1: i32) -> (i32, i32, i32) {
    %c0_i32 = arith.constant 0 : i32
    %c0_i32_0 = arith.constant 0 : i32
    return %arg0, %arg1, %c0_i32 : i32, i32, i32
  }
}

module attributes {stable_mosaic.version = 11 : i64} {
  func.func @depthwise_in_relu_kernel(%arg0: i32, %arg1: memref<1x27x9x64xf32, #tpu.memory_space<vmem>>, %arg2: memref<27x9x1xf32, #tpu.memory_space<vmem>>, %arg3: memref<9x1xf32, #tpu.memory_space<vmem>>, %arg4: memref<9x1xf32, #tpu.memory_space<vmem>>, %arg5: memref<9x1xf32, #tpu.memory_space<vmem>>, %arg6: memref<1x9x64xf32, #tpu.memory_space<vmem>>) attributes {dimension_semantics = [#tpu.dimension_semantics<parallel>], iteration_bounds = array<i64: 2>, scalar_prefetch = 0 : i64, scratch_operands = 0 : i64, tpu.core_type = #tpu.core_type<tc>, window_params = [{transform_indices = @transform_0, window_bounds = array<i64: 1, 27, 9, 64>}, {pipeline_mode = #tpu.pipeline_mode<synchronous>, transform_indices = @transform_1, window_bounds = array<i64: 27, 9, 1>}, {pipeline_mode = #tpu.pipeline_mode<synchronous>, transform_indices = @transform_2, window_bounds = array<i64: 9, 1>}, {pipeline_mode = #tpu.pipeline_mode<synchronous>, transform_indices = @transform_3, window_bounds = array<i64: 9, 1>}, {pipeline_mode = #tpu.pipeline_mode<synchronous>, transform_indices = @transform_4, window_bounds = array<i64: 9, 1>}, {transform_indices = @transform_5, window_bounds = array<i64: 1, 9, 64>}]} {
    %c0 = arith.constant 0 : index
    %c0_0 = arith.constant 0 : index
    %c0_1 = arith.constant 0 : index
    %c0_2 = arith.constant 0 : index
    %0 = vector.load %arg1[%c0, %c0_0, %c0_1, %c0_2] : memref<1x27x9x64xf32, #tpu.memory_space<vmem>>, vector<1x1x9x64xf32>
    %1 = vector.shape_cast %0 : vector<1x1x9x64xf32> to vector<9x64xf32>
    %c0_3 = arith.constant 0 : index
    %c0_4 = arith.constant 0 : index
    %c0_5 = arith.constant 0 : index
    %2 = vector.load %arg2[%c0_3, %c0_4, %c0_5] : memref<27x9x1xf32, #tpu.memory_space<vmem>>, vector<1x9x1xf32>
    %3 = vector.shape_cast %2 : vector<1x9x1xf32> to vector<9x1xf32>
    %4 = vector.broadcast %3 : vector<9x1xf32> to vector<9x64xf32>
    %5 = arith.mulf %1, %4 : vector<9x64xf32>
    %c0_6 = arith.constant 0 : index
    %c1 = arith.constant 1 : index
    %c0_7 = arith.constant 0 : index
    %c0_8 = arith.constant 0 : index
    %6 = vector.load %arg1[%c0_6, %c1, %c0_7, %c0_8] : memref<1x27x9x64xf32, #tpu.memory_space<vmem>>, vector<1x1x9x64xf32>
    %7 = vector.shape_cast %6 : vector<1x1x9x64xf32> to vector<9x64xf32>
    %c1_9 = arith.constant 1 : index
    %c0_10 = arith.constant 0 : index
    %c0_11 = arith.constant 0 : index
    %8 = vector.load %arg2[%c1_9, %c0_10, %c0_11] : memref<27x9x1xf32, #tpu.memory_space<vmem>>, vector<1x9x1xf32>
    %9 = vector.shape_cast %8 : vector<1x9x1xf32> to vector<9x1xf32>
    %10 = vector.broadcast %9 : vector<9x1xf32> to vector<9x64xf32>
    %11 = arith.mulf %7, %10 : vector<9x64xf32>
    %12 = arith.addf %5, %11 : vector<9x64xf32>
    %c0_12 = arith.constant 0 : index
    %c2 = arith.constant 2 : index
    %c0_13 = arith.constant 0 : index
    %c0_14 = arith.constant 0 : index
    %13 = vector.load %arg1[%c0_12, %c2, %c0_13, %c0_14] : memref<1x27x9x64xf32, #tpu.memory_space<vmem>>, vector<1x1x9x64xf32>
    %14 = vector.shape_cast %13 : vector<1x1x9x64xf32> to vector<9x64xf32>
    %c2_15 = arith.constant 2 : index
    %c0_16 = arith.constant 0 : index
    %c0_17 = arith.constant 0 : index
    %15 = vector.load %arg2[%c2_15, %c0_16, %c0_17] : memref<27x9x1xf32, #tpu.memory_space<vmem>>, vector<1x9x1xf32>
    %16 = vector.shape_cast %15 : vector<1x9x1xf32> to vector<9x1xf32>
    %17 = vector.broadcast %16 : vector<9x1xf32> to vector<9x64xf32>
    %18 = arith.mulf %14, %17 : vector<9x64xf32>
    %19 = arith.addf %12, %18 : vector<9x64xf32>
    %c0_18 = arith.constant 0 : index
    %c3 = arith.constant 3 : index
    %c0_19 = arith.constant 0 : index
    %c0_20 = arith.constant 0 : index
    %20 = vector.load %arg1[%c0_18, %c3, %c0_19, %c0_20] : memref<1x27x9x64xf32, #tpu.memory_space<vmem>>, vector<1x1x9x64xf32>
    %21 = vector.shape_cast %20 : vector<1x1x9x64xf32> to vector<9x64xf32>
    %c3_21 = arith.constant 3 : index
    %c0_22 = arith.constant 0 : index
    %c0_23 = arith.constant 0 : index
    %22 = vector.load %arg2[%c3_21, %c0_22, %c0_23] : memref<27x9x1xf32, #tpu.memory_space<vmem>>, vector<1x9x1xf32>
    %23 = vector.shape_cast %22 : vector<1x9x1xf32> to vector<9x1xf32>
    %24 = vector.broadcast %23 : vector<9x1xf32> to vector<9x64xf32>
    %25 = arith.mulf %21, %24 : vector<9x64xf32>
    %26 = arith.addf %19, %25 : vector<9x64xf32>
    %c0_24 = arith.constant 0 : index
    %c4 = arith.constant 4 : index
    %c0_25 = arith.constant 0 : index
    %c0_26 = arith.constant 0 : index
    %27 = vector.load %arg1[%c0_24, %c4, %c0_25, %c0_26] : memref<1x27x9x64xf32, #tpu.memory_space<vmem>>, vector<1x1x9x64xf32>
    %28 = vector.shape_cast %27 : vector<1x1x9x64xf32> to vector<9x64xf32>
    %c4_27 = arith.constant 4 : index
    %c0_28 = arith.constant 0 : index
    %c0_29 = arith.constant 0 : index
    %29 = vector.load %arg2[%c4_27, %c0_28, %c0_29] : memref<27x9x1xf32, #tpu.memory_space<vmem>>, vector<1x9x1xf32>
    %30 = vector.shape_cast %29 : vector<1x9x1xf32> to vector<9x1xf32>
    %31 = vector.broadcast %30 : vector<9x1xf32> to vector<9x64xf32>
    %32 = arith.mulf %28, %31 : vector<9x64xf32>
    %33 = arith.addf %26, %32 : vector<9x64xf32>
    %c0_30 = arith.constant 0 : index
    %c5 = arith.constant 5 : index
    %c0_31 = arith.constant 0 : index
    %c0_32 = arith.constant 0 : index
    %34 = vector.load %arg1[%c0_30, %c5, %c0_31, %c0_32] : memref<1x27x9x64xf32, #tpu.memory_space<vmem>>, vector<1x1x9x64xf32>
    %35 = vector.shape_cast %34 : vector<1x1x9x64xf32> to vector<9x64xf32>
    %c5_33 = arith.constant 5 : index
    %c0_34 = arith.constant 0 : index
    %c0_35 = arith.constant 0 : index
    %36 = vector.load %arg2[%c5_33, %c0_34, %c0_35] : memref<27x9x1xf32, #tpu.memory_space<vmem>>, vector<1x9x1xf32>
    %37 = vector.shape_cast %36 : vector<1x9x1xf32> to vector<9x1xf32>
    %38 = vector.broadcast %37 : vector<9x1xf32> to vector<9x64xf32>
    %39 = arith.mulf %35, %38 : vector<9x64xf32>
    %40 = arith.addf %33, %39 : vector<9x64xf32>
    %c0_36 = arith.constant 0 : index
    %c6 = arith.constant 6 : index
    %c0_37 = arith.constant 0 : index
    %c0_38 = arith.constant 0 : index
    %41 = vector.load %arg1[%c0_36, %c6, %c0_37, %c0_38] : memref<1x27x9x64xf32, #tpu.memory_space<vmem>>, vector<1x1x9x64xf32>
    %42 = vector.shape_cast %41 : vector<1x1x9x64xf32> to vector<9x64xf32>
    %c6_39 = arith.constant 6 : index
    %c0_40 = arith.constant 0 : index
    %c0_41 = arith.constant 0 : index
    %43 = vector.load %arg2[%c6_39, %c0_40, %c0_41] : memref<27x9x1xf32, #tpu.memory_space<vmem>>, vector<1x9x1xf32>
    %44 = vector.shape_cast %43 : vector<1x9x1xf32> to vector<9x1xf32>
    %45 = vector.broadcast %44 : vector<9x1xf32> to vector<9x64xf32>
    %46 = arith.mulf %42, %45 : vector<9x64xf32>
    %47 = arith.addf %40, %46 : vector<9x64xf32>
    %c0_42 = arith.constant 0 : index
    %c7 = arith.constant 7 : index
    %c0_43 = arith.constant 0 : index
    %c0_44 = arith.constant 0 : index
    %48 = vector.load %arg1[%c0_42, %c7, %c0_43, %c0_44] : memref<1x27x9x64xf32, #tpu.memory_space<vmem>>, vector<1x1x9x64xf32>
    %49 = vector.shape_cast %48 : vector<1x1x9x64xf32> to vector<9x64xf32>
    %c7_45 = arith.constant 7 : index
    %c0_46 = arith.constant 0 : index
    %c0_47 = arith.constant 0 : index
    %50 = vector.load %arg2[%c7_45, %c0_46, %c0_47] : memref<27x9x1xf32, #tpu.memory_space<vmem>>, vector<1x9x1xf32>
    %51 = vector.shape_cast %50 : vector<1x9x1xf32> to vector<9x1xf32>
    %52 = vector.broadcast %51 : vector<9x1xf32> to vector<9x64xf32>
    %53 = arith.mulf %49, %52 : vector<9x64xf32>
    %54 = arith.addf %47, %53 : vector<9x64xf32>
    %c0_48 = arith.constant 0 : index
    %c8 = arith.constant 8 : index
    %c0_49 = arith.constant 0 : index
    %c0_50 = arith.constant 0 : index
    %55 = vector.load %arg1[%c0_48, %c8, %c0_49, %c0_50] : memref<1x27x9x64xf32, #tpu.memory_space<vmem>>, vector<1x1x9x64xf32>
    %56 = vector.shape_cast %55 : vector<1x1x9x64xf32> to vector<9x64xf32>
    %c8_51 = arith.constant 8 : index
    %c0_52 = arith.constant 0 : index
    %c0_53 = arith.constant 0 : index
    %57 = vector.load %arg2[%c8_51, %c0_52, %c0_53] : memref<27x9x1xf32, #tpu.memory_space<vmem>>, vector<1x9x1xf32>
    %58 = vector.shape_cast %57 : vector<1x9x1xf32> to vector<9x1xf32>
    %59 = vector.broadcast %58 : vector<9x1xf32> to vector<9x64xf32>
    %60 = arith.mulf %56, %59 : vector<9x64xf32>
    %61 = arith.addf %54, %60 : vector<9x64xf32>
    %c0_54 = arith.constant 0 : index
    %c9 = arith.constant 9 : index
    %c0_55 = arith.constant 0 : index
    %c0_56 = arith.constant 0 : index
    %62 = vector.load %arg1[%c0_54, %c9, %c0_55, %c0_56] : memref<1x27x9x64xf32, #tpu.memory_space<vmem>>, vector<1x1x9x64xf32>
    %63 = vector.shape_cast %62 : vector<1x1x9x64xf32> to vector<9x64xf32>
    %c9_57 = arith.constant 9 : index
    %c0_58 = arith.constant 0 : index
    %c0_59 = arith.constant 0 : index
    %64 = vector.load %arg2[%c9_57, %c0_58, %c0_59] : memref<27x9x1xf32, #tpu.memory_space<vmem>>, vector<1x9x1xf32>
    %65 = vector.shape_cast %64 : vector<1x9x1xf32> to vector<9x1xf32>
    %66 = vector.broadcast %65 : vector<9x1xf32> to vector<9x64xf32>
    %67 = arith.mulf %63, %66 : vector<9x64xf32>
    %68 = arith.addf %61, %67 : vector<9x64xf32>
    %c0_60 = arith.constant 0 : index
    %c10 = arith.constant 10 : index
    %c0_61 = arith.constant 0 : index
    %c0_62 = arith.constant 0 : index
    %69 = vector.load %arg1[%c0_60, %c10, %c0_61, %c0_62] : memref<1x27x9x64xf32, #tpu.memory_space<vmem>>, vector<1x1x9x64xf32>
    %70 = vector.shape_cast %69 : vector<1x1x9x64xf32> to vector<9x64xf32>
    %c10_63 = arith.constant 10 : index
    %c0_64 = arith.constant 0 : index
    %c0_65 = arith.constant 0 : index
    %71 = vector.load %arg2[%c10_63, %c0_64, %c0_65] : memref<27x9x1xf32, #tpu.memory_space<vmem>>, vector<1x9x1xf32>
    %72 = vector.shape_cast %71 : vector<1x9x1xf32> to vector<9x1xf32>
    %73 = vector.broadcast %72 : vector<9x1xf32> to vector<9x64xf32>
    %74 = arith.mulf %70, %73 : vector<9x64xf32>
    %75 = arith.addf %68, %74 : vector<9x64xf32>
    %c0_66 = arith.constant 0 : index
    %c11 = arith.constant 11 : index
    %c0_67 = arith.constant 0 : index
    %c0_68 = arith.constant 0 : index
    %76 = vector.load %arg1[%c0_66, %c11, %c0_67, %c0_68] : memref<1x27x9x64xf32, #tpu.memory_space<vmem>>, vector<1x1x9x64xf32>
    %77 = vector.shape_cast %76 : vector<1x1x9x64xf32> to vector<9x64xf32>
    %c11_69 = arith.constant 11 : index
    %c0_70 = arith.constant 0 : index
    %c0_71 = arith.constant 0 : index
    %78 = vector.load %arg2[%c11_69, %c0_70, %c0_71] : memref<27x9x1xf32, #tpu.memory_space<vmem>>, vector<1x9x1xf32>
    %79 = vector.shape_cast %78 : vector<1x9x1xf32> to vector<9x1xf32>
    %80 = vector.broadcast %79 : vector<9x1xf32> to vector<9x64xf32>
    %81 = arith.mulf %77, %80 : vector<9x64xf32>
    %82 = arith.addf %75, %81 : vector<9x64xf32>
    %c0_72 = arith.constant 0 : index
    %c12 = arith.constant 12 : index
    %c0_73 = arith.constant 0 : index
    %c0_74 = arith.constant 0 : index
    %83 = vector.load %arg1[%c0_72, %c12, %c0_73, %c0_74] : memref<1x27x9x64xf32, #tpu.memory_space<vmem>>, vector<1x1x9x64xf32>
    %84 = vector.shape_cast %83 : vector<1x1x9x64xf32> to vector<9x64xf32>
    %c12_75 = arith.constant 12 : index
    %c0_76 = arith.constant 0 : index
    %c0_77 = arith.constant 0 : index
    %85 = vector.load %arg2[%c12_75, %c0_76, %c0_77] : memref<27x9x1xf32, #tpu.memory_space<vmem>>, vector<1x9x1xf32>
    %86 = vector.shape_cast %85 : vector<1x9x1xf32> to vector<9x1xf32>
    %87 = vector.broadcast %86 : vector<9x1xf32> to vector<9x64xf32>
    %88 = arith.mulf %84, %87 : vector<9x64xf32>
    %89 = arith.addf %82, %88 : vector<9x64xf32>
    %c0_78 = arith.constant 0 : index
    %c13 = arith.constant 13 : index
    %c0_79 = arith.constant 0 : index
    %c0_80 = arith.constant 0 : index
    %90 = vector.load %arg1[%c0_78, %c13, %c0_79, %c0_80] : memref<1x27x9x64xf32, #tpu.memory_space<vmem>>, vector<1x1x9x64xf32>
    %91 = vector.shape_cast %90 : vector<1x1x9x64xf32> to vector<9x64xf32>
    %c13_81 = arith.constant 13 : index
    %c0_82 = arith.constant 0 : index
    %c0_83 = arith.constant 0 : index
    %92 = vector.load %arg2[%c13_81, %c0_82, %c0_83] : memref<27x9x1xf32, #tpu.memory_space<vmem>>, vector<1x9x1xf32>
    %93 = vector.shape_cast %92 : vector<1x9x1xf32> to vector<9x1xf32>
    %94 = vector.broadcast %93 : vector<9x1xf32> to vector<9x64xf32>
    %95 = arith.mulf %91, %94 : vector<9x64xf32>
    %96 = arith.addf %89, %95 : vector<9x64xf32>
    %c0_84 = arith.constant 0 : index
    %c14 = arith.constant 14 : index
    %c0_85 = arith.constant 0 : index
    %c0_86 = arith.constant 0 : index
    %97 = vector.load %arg1[%c0_84, %c14, %c0_85, %c0_86] : memref<1x27x9x64xf32, #tpu.memory_space<vmem>>, vector<1x1x9x64xf32>
    %98 = vector.shape_cast %97 : vector<1x1x9x64xf32> to vector<9x64xf32>
    %c14_87 = arith.constant 14 : index
    %c0_88 = arith.constant 0 : index
    %c0_89 = arith.constant 0 : index
    %99 = vector.load %arg2[%c14_87, %c0_88, %c0_89] : memref<27x9x1xf32, #tpu.memory_space<vmem>>, vector<1x9x1xf32>
    %100 = vector.shape_cast %99 : vector<1x9x1xf32> to vector<9x1xf32>
    %101 = vector.broadcast %100 : vector<9x1xf32> to vector<9x64xf32>
    %102 = arith.mulf %98, %101 : vector<9x64xf32>
    %103 = arith.addf %96, %102 : vector<9x64xf32>
    %c0_90 = arith.constant 0 : index
    %c15 = arith.constant 15 : index
    %c0_91 = arith.constant 0 : index
    %c0_92 = arith.constant 0 : index
    %104 = vector.load %arg1[%c0_90, %c15, %c0_91, %c0_92] : memref<1x27x9x64xf32, #tpu.memory_space<vmem>>, vector<1x1x9x64xf32>
    %105 = vector.shape_cast %104 : vector<1x1x9x64xf32> to vector<9x64xf32>
    %c15_93 = arith.constant 15 : index
    %c0_94 = arith.constant 0 : index
    %c0_95 = arith.constant 0 : index
    %106 = vector.load %arg2[%c15_93, %c0_94, %c0_95] : memref<27x9x1xf32, #tpu.memory_space<vmem>>, vector<1x9x1xf32>
    %107 = vector.shape_cast %106 : vector<1x9x1xf32> to vector<9x1xf32>
    %108 = vector.broadcast %107 : vector<9x1xf32> to vector<9x64xf32>
    %109 = arith.mulf %105, %108 : vector<9x64xf32>
    %110 = arith.addf %103, %109 : vector<9x64xf32>
    %c0_96 = arith.constant 0 : index
    %c16 = arith.constant 16 : index
    %c0_97 = arith.constant 0 : index
    %c0_98 = arith.constant 0 : index
    %111 = vector.load %arg1[%c0_96, %c16, %c0_97, %c0_98] : memref<1x27x9x64xf32, #tpu.memory_space<vmem>>, vector<1x1x9x64xf32>
    %112 = vector.shape_cast %111 : vector<1x1x9x64xf32> to vector<9x64xf32>
    %c16_99 = arith.constant 16 : index
    %c0_100 = arith.constant 0 : index
    %c0_101 = arith.constant 0 : index
    %113 = vector.load %arg2[%c16_99, %c0_100, %c0_101] : memref<27x9x1xf32, #tpu.memory_space<vmem>>, vector<1x9x1xf32>
    %114 = vector.shape_cast %113 : vector<1x9x1xf32> to vector<9x1xf32>
    %115 = vector.broadcast %114 : vector<9x1xf32> to vector<9x64xf32>
    %116 = arith.mulf %112, %115 : vector<9x64xf32>
    %117 = arith.addf %110, %116 : vector<9x64xf32>
    %c0_102 = arith.constant 0 : index
    %c17 = arith.constant 17 : index
    %c0_103 = arith.constant 0 : index
    %c0_104 = arith.constant 0 : index
    %118 = vector.load %arg1[%c0_102, %c17, %c0_103, %c0_104] : memref<1x27x9x64xf32, #tpu.memory_space<vmem>>, vector<1x1x9x64xf32>
    %119 = vector.shape_cast %118 : vector<1x1x9x64xf32> to vector<9x64xf32>
    %c17_105 = arith.constant 17 : index
    %c0_106 = arith.constant 0 : index
    %c0_107 = arith.constant 0 : index
    %120 = vector.load %arg2[%c17_105, %c0_106, %c0_107] : memref<27x9x1xf32, #tpu.memory_space<vmem>>, vector<1x9x1xf32>
    %121 = vector.shape_cast %120 : vector<1x9x1xf32> to vector<9x1xf32>
    %122 = vector.broadcast %121 : vector<9x1xf32> to vector<9x64xf32>
    %123 = arith.mulf %119, %122 : vector<9x64xf32>
    %124 = arith.addf %117, %123 : vector<9x64xf32>
    %c0_108 = arith.constant 0 : index
    %c18 = arith.constant 18 : index
    %c0_109 = arith.constant 0 : index
    %c0_110 = arith.constant 0 : index
    %125 = vector.load %arg1[%c0_108, %c18, %c0_109, %c0_110] : memref<1x27x9x64xf32, #tpu.memory_space<vmem>>, vector<1x1x9x64xf32>
    %126 = vector.shape_cast %125 : vector<1x1x9x64xf32> to vector<9x64xf32>
    %c18_111 = arith.constant 18 : index
    %c0_112 = arith.constant 0 : index
    %c0_113 = arith.constant 0 : index
    %127 = vector.load %arg2[%c18_111, %c0_112, %c0_113] : memref<27x9x1xf32, #tpu.memory_space<vmem>>, vector<1x9x1xf32>
    %128 = vector.shape_cast %127 : vector<1x9x1xf32> to vector<9x1xf32>
    %129 = vector.broadcast %128 : vector<9x1xf32> to vector<9x64xf32>
    %130 = arith.mulf %126, %129 : vector<9x64xf32>
    %131 = arith.addf %124, %130 : vector<9x64xf32>
    %c0_114 = arith.constant 0 : index
    %c19 = arith.constant 19 : index
    %c0_115 = arith.constant 0 : index
    %c0_116 = arith.constant 0 : index
    %132 = vector.load %arg1[%c0_114, %c19, %c0_115, %c0_116] : memref<1x27x9x64xf32, #tpu.memory_space<vmem>>, vector<1x1x9x64xf32>
    %133 = vector.shape_cast %132 : vector<1x1x9x64xf32> to vector<9x64xf32>
    %c19_117 = arith.constant 19 : index
    %c0_118 = arith.constant 0 : index
    %c0_119 = arith.constant 0 : index
    %134 = vector.load %arg2[%c19_117, %c0_118, %c0_119] : memref<27x9x1xf32, #tpu.memory_space<vmem>>, vector<1x9x1xf32>
    %135 = vector.shape_cast %134 : vector<1x9x1xf32> to vector<9x1xf32>
    %136 = vector.broadcast %135 : vector<9x1xf32> to vector<9x64xf32>
    %137 = arith.mulf %133, %136 : vector<9x64xf32>
    %138 = arith.addf %131, %137 : vector<9x64xf32>
    %c0_120 = arith.constant 0 : index
    %c20 = arith.constant 20 : index
    %c0_121 = arith.constant 0 : index
    %c0_122 = arith.constant 0 : index
    %139 = vector.load %arg1[%c0_120, %c20, %c0_121, %c0_122] : memref<1x27x9x64xf32, #tpu.memory_space<vmem>>, vector<1x1x9x64xf32>
    %140 = vector.shape_cast %139 : vector<1x1x9x64xf32> to vector<9x64xf32>
    %c20_123 = arith.constant 20 : index
    %c0_124 = arith.constant 0 : index
    %c0_125 = arith.constant 0 : index
    %141 = vector.load %arg2[%c20_123, %c0_124, %c0_125] : memref<27x9x1xf32, #tpu.memory_space<vmem>>, vector<1x9x1xf32>
    %142 = vector.shape_cast %141 : vector<1x9x1xf32> to vector<9x1xf32>
    %143 = vector.broadcast %142 : vector<9x1xf32> to vector<9x64xf32>
    %144 = arith.mulf %140, %143 : vector<9x64xf32>
    %145 = arith.addf %138, %144 : vector<9x64xf32>
    %c0_126 = arith.constant 0 : index
    %c21 = arith.constant 21 : index
    %c0_127 = arith.constant 0 : index
    %c0_128 = arith.constant 0 : index
    %146 = vector.load %arg1[%c0_126, %c21, %c0_127, %c0_128] : memref<1x27x9x64xf32, #tpu.memory_space<vmem>>, vector<1x1x9x64xf32>
    %147 = vector.shape_cast %146 : vector<1x1x9x64xf32> to vector<9x64xf32>
    %c21_129 = arith.constant 21 : index
    %c0_130 = arith.constant 0 : index
    %c0_131 = arith.constant 0 : index
    %148 = vector.load %arg2[%c21_129, %c0_130, %c0_131] : memref<27x9x1xf32, #tpu.memory_space<vmem>>, vector<1x9x1xf32>
    %149 = vector.shape_cast %148 : vector<1x9x1xf32> to vector<9x1xf32>
    %150 = vector.broadcast %149 : vector<9x1xf32> to vector<9x64xf32>
    %151 = arith.mulf %147, %150 : vector<9x64xf32>
    %152 = arith.addf %145, %151 : vector<9x64xf32>
    %c0_132 = arith.constant 0 : index
    %c22 = arith.constant 22 : index
    %c0_133 = arith.constant 0 : index
    %c0_134 = arith.constant 0 : index
    %153 = vector.load %arg1[%c0_132, %c22, %c0_133, %c0_134] : memref<1x27x9x64xf32, #tpu.memory_space<vmem>>, vector<1x1x9x64xf32>
    %154 = vector.shape_cast %153 : vector<1x1x9x64xf32> to vector<9x64xf32>
    %c22_135 = arith.constant 22 : index
    %c0_136 = arith.constant 0 : index
    %c0_137 = arith.constant 0 : index
    %155 = vector.load %arg2[%c22_135, %c0_136, %c0_137] : memref<27x9x1xf32, #tpu.memory_space<vmem>>, vector<1x9x1xf32>
    %156 = vector.shape_cast %155 : vector<1x9x1xf32> to vector<9x1xf32>
    %157 = vector.broadcast %156 : vector<9x1xf32> to vector<9x64xf32>
    %158 = arith.mulf %154, %157 : vector<9x64xf32>
    %159 = arith.addf %152, %158 : vector<9x64xf32>
    %c0_138 = arith.constant 0 : index
    %c23 = arith.constant 23 : index
    %c0_139 = arith.constant 0 : index
    %c0_140 = arith.constant 0 : index
    %160 = vector.load %arg1[%c0_138, %c23, %c0_139, %c0_140] : memref<1x27x9x64xf32, #tpu.memory_space<vmem>>, vector<1x1x9x64xf32>
    %161 = vector.shape_cast %160 : vector<1x1x9x64xf32> to vector<9x64xf32>
    %c23_141 = arith.constant 23 : index
    %c0_142 = arith.constant 0 : index
    %c0_143 = arith.constant 0 : index
    %162 = vector.load %arg2[%c23_141, %c0_142, %c0_143] : memref<27x9x1xf32, #tpu.memory_space<vmem>>, vector<1x9x1xf32>
    %163 = vector.shape_cast %162 : vector<1x9x1xf32> to vector<9x1xf32>
    %164 = vector.broadcast %163 : vector<9x1xf32> to vector<9x64xf32>
    %165 = arith.mulf %161, %164 : vector<9x64xf32>
    %166 = arith.addf %159, %165 : vector<9x64xf32>
    %c0_144 = arith.constant 0 : index
    %c24 = arith.constant 24 : index
    %c0_145 = arith.constant 0 : index
    %c0_146 = arith.constant 0 : index
    %167 = vector.load %arg1[%c0_144, %c24, %c0_145, %c0_146] : memref<1x27x9x64xf32, #tpu.memory_space<vmem>>, vector<1x1x9x64xf32>
    %168 = vector.shape_cast %167 : vector<1x1x9x64xf32> to vector<9x64xf32>
    %c24_147 = arith.constant 24 : index
    %c0_148 = arith.constant 0 : index
    %c0_149 = arith.constant 0 : index
    %169 = vector.load %arg2[%c24_147, %c0_148, %c0_149] : memref<27x9x1xf32, #tpu.memory_space<vmem>>, vector<1x9x1xf32>
    %170 = vector.shape_cast %169 : vector<1x9x1xf32> to vector<9x1xf32>
    %171 = vector.broadcast %170 : vector<9x1xf32> to vector<9x64xf32>
    %172 = arith.mulf %168, %171 : vector<9x64xf32>
    %173 = arith.addf %166, %172 : vector<9x64xf32>
    %c0_150 = arith.constant 0 : index
    %c25 = arith.constant 25 : index
    %c0_151 = arith.constant 0 : index
    %c0_152 = arith.constant 0 : index
    %174 = vector.load %arg1[%c0_150, %c25, %c0_151, %c0_152] : memref<1x27x9x64xf32, #tpu.memory_space<vmem>>, vector<1x1x9x64xf32>
    %175 = vector.shape_cast %174 : vector<1x1x9x64xf32> to vector<9x64xf32>
    %c25_153 = arith.constant 25 : index
    %c0_154 = arith.constant 0 : index
    %c0_155 = arith.constant 0 : index
    %176 = vector.load %arg2[%c25_153, %c0_154, %c0_155] : memref<27x9x1xf32, #tpu.memory_space<vmem>>, vector<1x9x1xf32>
    %177 = vector.shape_cast %176 : vector<1x9x1xf32> to vector<9x1xf32>
    %178 = vector.broadcast %177 : vector<9x1xf32> to vector<9x64xf32>
    %179 = arith.mulf %175, %178 : vector<9x64xf32>
    %180 = arith.addf %173, %179 : vector<9x64xf32>
    %c0_156 = arith.constant 0 : index
    %c26 = arith.constant 26 : index
    %c0_157 = arith.constant 0 : index
    %c0_158 = arith.constant 0 : index
    %181 = vector.load %arg1[%c0_156, %c26, %c0_157, %c0_158] : memref<1x27x9x64xf32, #tpu.memory_space<vmem>>, vector<1x1x9x64xf32>
    %182 = vector.shape_cast %181 : vector<1x1x9x64xf32> to vector<9x64xf32>
    %c26_159 = arith.constant 26 : index
    %c0_160 = arith.constant 0 : index
    %c0_161 = arith.constant 0 : index
    %183 = vector.load %arg2[%c26_159, %c0_160, %c0_161] : memref<27x9x1xf32, #tpu.memory_space<vmem>>, vector<1x9x1xf32>
    %184 = vector.shape_cast %183 : vector<1x9x1xf32> to vector<9x1xf32>
    %185 = vector.broadcast %184 : vector<9x1xf32> to vector<9x64xf32>
    %186 = arith.mulf %182, %185 : vector<9x64xf32>
    %187 = arith.addf %180, %186 : vector<9x64xf32>
    %c0_162 = arith.constant 0 : index
    %c0_163 = arith.constant 0 : index
    %188 = vector.load %arg3[%c0_162, %c0_163] : memref<9x1xf32, #tpu.memory_space<vmem>>, vector<9x1xf32>
    %189 = vector.broadcast %188 : vector<9x1xf32> to vector<9x64xf32>
    %190 = arith.addf %187, %189 : vector<9x64xf32>
    %cst = arith.constant dense<0.000000e+00> : vector<9xf32>
    %191 = vector.multi_reduction <add>, %190, %cst [1] : vector<9x64xf32> to vector<9xf32>
    %192 = vector.shape_cast %191 : vector<9xf32> to vector<9x1xf32>
    %cst_164 = arith.constant 6.400000e+01 : f32
    %193 = vector.broadcast %cst_164 : f32 to vector<9x1xf32>
    %194 = arith.divf %192, %193 : vector<9x1xf32>
    %195 = vector.broadcast %194 : vector<9x1xf32> to vector<9x64xf32>
    %196 = arith.subf %190, %195 : vector<9x64xf32>
    %197 = arith.mulf %196, %196 : vector<9x64xf32>
    %cst_165 = arith.constant dense<0.000000e+00> : vector<9xf32>
    %198 = vector.multi_reduction <add>, %197, %cst_165 [1] : vector<9x64xf32> to vector<9xf32>
    %199 = vector.shape_cast %198 : vector<9xf32> to vector<9x1xf32>
    %cst_166 = arith.constant 6.400000e+01 : f32
    %200 = vector.broadcast %cst_166 : f32 to vector<9x1xf32>
    %201 = arith.divf %199, %200 : vector<9x1xf32>
    %202 = vector.broadcast %194 : vector<9x1xf32> to vector<9x64xf32>
    %203 = arith.subf %190, %202 : vector<9x64xf32>
    %cst_167 = arith.constant 9.99999974E-6 : f32
    %204 = vector.broadcast %cst_167 : f32 to vector<9x1xf32>
    %205 = arith.addf %201, %204 : vector<9x1xf32>
    %206 = math.rsqrt %205 : vector<9x1xf32>
    %207 = vector.broadcast %206 : vector<9x1xf32> to vector<9x64xf32>
    %208 = arith.mulf %203, %207 : vector<9x64xf32>
    %c0_168 = arith.constant 0 : index
    %c0_169 = arith.constant 0 : index
    %209 = vector.load %arg4[%c0_168, %c0_169] : memref<9x1xf32, #tpu.memory_space<vmem>>, vector<9x1xf32>
    %210 = vector.broadcast %209 : vector<9x1xf32> to vector<9x64xf32>
    %211 = arith.mulf %208, %210 : vector<9x64xf32>
    %c0_170 = arith.constant 0 : index
    %c0_171 = arith.constant 0 : index
    %212 = vector.load %arg5[%c0_170, %c0_171] : memref<9x1xf32, #tpu.memory_space<vmem>>, vector<9x1xf32>
    %213 = vector.broadcast %212 : vector<9x1xf32> to vector<9x64xf32>
    %214 = arith.addf %211, %213 : vector<9x64xf32>
    %cst_172 = arith.constant 0.000000e+00 : f32
    %215 = vector.broadcast %cst_172 : f32 to vector<9x64xf32>
    %216 = arith.maximumf %214, %215 : vector<9x64xf32>
    %c0_173 = arith.constant 0 : index
    %c0_174 = arith.constant 0 : index
    %c0_175 = arith.constant 0 : index
    %217 = vector.load %arg6[%c0_173, %c0_174, %c0_175] : memref<1x9x64xf32, #tpu.memory_space<vmem>>, vector<1x9x64xf32>
    %218 = vector.shape_cast %217 : vector<1x9x64xf32> to vector<9x64xf32>
    %219 = vector.shape_cast %216 : vector<9x64xf32> to vector<1x9x64xf32>
    tpu.vector_store %arg6[%c0_173, %c0_174, %c0_175], %219 {strides = array<i32>} : memref<1x9x64xf32, #tpu.memory_space<vmem>>, vector<1x9x64xf32>,
    return
  }
  func.func @transform_0(%arg0: i32) -> (i32, i32, i32, i32) {
    %c0_i32 = arith.constant 0 : i32
    %c0_i32_0 = arith.constant 0 : i32
    %c0_i32_1 = arith.constant 0 : i32
    %c0_i32_2 = arith.constant 0 : i32
    return %arg0, %c0_i32, %c0_i32_0, %c0_i32_1 : i32, i32, i32, i32
  }
  func.func @transform_1(%arg0: i32) -> (i32, i32, i32) {
    %c0_i32 = arith.constant 0 : i32
    %c0_i32_0 = arith.constant 0 : i32
    %c0_i32_1 = arith.constant 0 : i32
    %c0_i32_2 = arith.constant 0 : i32
    return %c0_i32, %c0_i32_0, %c0_i32_1 : i32, i32, i32
  }
  func.func @transform_2(%arg0: i32) -> (i32, i32) {
    %c0_i32 = arith.constant 0 : i32
    %c0_i32_0 = arith.constant 0 : i32
    %c0_i32_1 = arith.constant 0 : i32
    return %c0_i32, %c0_i32_0 : i32, i32
  }
  func.func @transform_3(%arg0: i32) -> (i32, i32) {
    %c0_i32 = arith.constant 0 : i32
    %c0_i32_0 = arith.constant 0 : i32
    %c0_i32_1 = arith.constant 0 : i32
    return %c0_i32, %c0_i32_0 : i32, i32
  }
  func.func @transform_4(%arg0: i32) -> (i32, i32) {
    %c0_i32 = arith.constant 0 : i32
    %c0_i32_0 = arith.constant 0 : i32
    %c0_i32_1 = arith.constant 0 : i32
    return %c0_i32, %c0_i32_0 : i32, i32
  }
  func.func @transform_5(%arg0: i32) -> (i32, i32, i32) {
    %c0_i32 = arith.constant 0 : i32
    %c0_i32_0 = arith.constant 0 : i32
    %c0_i32_1 = arith.constant 0 : i32
    return %arg0, %c0_i32, %c0_i32_0 : i32, i32, i32
  }
}

module attributes {stable_mosaic.version = 11 : i64} {
  func.func @matmul_in_relu_kernel(%arg0: i32, %arg1: memref<9x9xf32, #tpu.memory_space<vmem>>, %arg2: memref<1x9x64xf32, #tpu.memory_space<vmem>>, %arg3: memref<9x1xf32, #tpu.memory_space<vmem>>, %arg4: memref<9x1xf32, #tpu.memory_space<vmem>>, %arg5: memref<9x1xf32, #tpu.memory_space<vmem>>, %arg6: memref<1x9x64xf32, #tpu.memory_space<vmem>>) attributes {dimension_semantics = [#tpu.dimension_semantics<parallel>], iteration_bounds = array<i64: 2>, scalar_prefetch = 0 : i64, scratch_operands = 0 : i64, tpu.core_type = #tpu.core_type<tc>, window_params = [{pipeline_mode = #tpu.pipeline_mode<synchronous>, transform_indices = @transform_0, window_bounds = array<i64: 9, 9>}, {transform_indices = @transform_1, window_bounds = array<i64: 1, 9, 64>}, {pipeline_mode = #tpu.pipeline_mode<synchronous>, transform_indices = @transform_2, window_bounds = array<i64: 9, 1>}, {pipeline_mode = #tpu.pipeline_mode<synchronous>, transform_indices = @transform_3, window_bounds = array<i64: 9, 1>}, {pipeline_mode = #tpu.pipeline_mode<synchronous>, transform_indices = @transform_4, window_bounds = array<i64: 9, 1>}, {transform_indices = @transform_5, window_bounds = array<i64: 1, 9, 64>}]} {
    %c0 = arith.constant 0 : index
    %c0_0 = arith.constant 0 : index
    %0 = vector.load %arg1[%c0, %c0_0] : memref<9x9xf32, #tpu.memory_space<vmem>>, vector<9x9xf32>
    %c0_1 = arith.constant 0 : index
    %c0_2 = arith.constant 0 : index
    %c0_3 = arith.constant 0 : index
    %1 = vector.load %arg2[%c0_1, %c0_2, %c0_3] : memref<1x9x64xf32, #tpu.memory_space<vmem>>, vector<1x9x64xf32>
    %2 = vector.shape_cast %1 : vector<1x9x64xf32> to vector<9x64xf32>
    %cst = arith.constant dense<0.000000e+00> : vector<9x64xf32>
    %3 = tpu.matmul %0, %2, %cst {dimension_numbers = #tpu.dot_dimension_numbers<[1], [0], [0], [1], [0, 0, 1, 1], [], []>} : vector<9x9xf32>, vector<9x64xf32>, vector<9x64xf32> -> vector<9x64xf32>
    %c0_4 = arith.constant 0 : index
    %c0_5 = arith.constant 0 : index
    %4 = vector.load %arg3[%c0_4, %c0_5] : memref<9x1xf32, #tpu.memory_space<vmem>>, vector<9x1xf32>
    %5 = vector.broadcast %4 : vector<9x1xf32> to vector<9x64xf32>
    %6 = arith.addf %3, %5 : vector<9x64xf32>
    %cst_6 = arith.constant dense<0.000000e+00> : vector<9xf32>
    %7 = vector.multi_reduction <add>, %6, %cst_6 [1] : vector<9x64xf32> to vector<9xf32>
    %8 = vector.shape_cast %7 : vector<9xf32> to vector<9x1xf32>
    %cst_7 = arith.constant 6.400000e+01 : f32
    %9 = vector.broadcast %cst_7 : f32 to vector<9x1xf32>
    %10 = arith.divf %8, %9 : vector<9x1xf32>
    %11 = vector.broadcast %10 : vector<9x1xf32> to vector<9x64xf32>
    %12 = arith.subf %6, %11 : vector<9x64xf32>
    %13 = arith.mulf %12, %12 : vector<9x64xf32>
    %cst_8 = arith.constant dense<0.000000e+00> : vector<9xf32>
    %14 = vector.multi_reduction <add>, %13, %cst_8 [1] : vector<9x64xf32> to vector<9xf32>
    %15 = vector.shape_cast %14 : vector<9xf32> to vector<9x1xf32>
    %cst_9 = arith.constant 6.400000e+01 : f32
    %16 = vector.broadcast %cst_9 : f32 to vector<9x1xf32>
    %17 = arith.divf %15, %16 : vector<9x1xf32>
    %18 = vector.broadcast %10 : vector<9x1xf32> to vector<9x64xf32>
    %19 = arith.subf %6, %18 : vector<9x64xf32>
    %cst_10 = arith.constant 9.99999974E-6 : f32
    %20 = vector.broadcast %cst_10 : f32 to vector<9x1xf32>
    %21 = arith.addf %17, %20 : vector<9x1xf32>
    %22 = math.rsqrt %21 : vector<9x1xf32>
    %23 = vector.broadcast %22 : vector<9x1xf32> to vector<9x64xf32>
    %24 = arith.mulf %19, %23 : vector<9x64xf32>
    %c0_11 = arith.constant 0 : index
    %c0_12 = arith.constant 0 : index
    %25 = vector.load %arg4[%c0_11, %c0_12] : memref<9x1xf32, #tpu.memory_space<vmem>>, vector<9x1xf32>
    %26 = vector.broadcast %25 : vector<9x1xf32> to vector<9x64xf32>
    %27 = arith.mulf %24, %26 : vector<9x64xf32>
    %c0_13 = arith.constant 0 : index
    %c0_14 = arith.constant 0 : index
    %28 = vector.load %arg5[%c0_13, %c0_14] : memref<9x1xf32, #tpu.memory_space<vmem>>, vector<9x1xf32>
    %29 = vector.broadcast %28 : vector<9x1xf32> to vector<9x64xf32>
    %30 = arith.addf %27, %29 : vector<9x64xf32>
    %cst_15 = arith.constant 0.000000e+00 : f32
    %31 = vector.broadcast %cst_15 : f32 to vector<9x64xf32>
    %32 = arith.maximumf %30, %31 : vector<9x64xf32>
    %c0_16 = arith.constant 0 : index
    %c0_17 = arith.constant 0 : index
    %c0_18 = arith.constant 0 : index
    %33 = vector.load %arg6[%c0_16, %c0_17, %c0_18] : memref<1x9x64xf32, #tpu.memory_space<vmem>>, vector<1x9x64xf32>
    %34 = vector.shape_cast %33 : vector<1x9x64xf32> to vector<9x64xf32>
    %35 = vector.shape_cast %32 : vector<9x64xf32> to vector<1x9x64xf32>
    tpu.vector_store %arg6[%c0_16, %c0_17, %c0_18], %35 {strides = array<i32>} : memref<1x9x64xf32, #tpu.memory_space<vmem>>, vector<1x9x64xf32>,
    return
  }
  func.func @transform_0(%arg0: i32) -> (i32, i32) {
    %c0_i32 = arith.constant 0 : i32
    %c0_i32_0 = arith.constant 0 : i32
    %c0_i32_1 = arith.constant 0 : i32
    return %c0_i32, %c0_i32_0 : i32, i32
  }
  func.func @transform_1(%arg0: i32) -> (i32, i32, i32) {
    %c0_i32 = arith.constant 0 : i32
    %c0_i32_0 = arith.constant 0 : i32
    %c0_i32_1 = arith.constant 0 : i32
    return %arg0, %c0_i32, %c0_i32_0 : i32, i32, i32
  }
  func.func @transform_2(%arg0: i32) -> (i32, i32) {
    %c0_i32 = arith.constant 0 : i32
    %c0_i32_0 = arith.constant 0 : i32
    %c0_i32_1 = arith.constant 0 : i32
    return %c0_i32, %c0_i32_0 : i32, i32
  }
  func.func @transform_3(%arg0: i32) -> (i32, i32) {
    %c0_i32 = arith.constant 0 : i32
    %c0_i32_0 = arith.constant 0 : i32
    %c0_i32_1 = arith.constant 0 : i32
    return %c0_i32, %c0_i32_0 : i32, i32
  }
  func.func @transform_4(%arg0: i32) -> (i32, i32) {
    %c0_i32 = arith.constant 0 : i32
    %c0_i32_0 = arith.constant 0 : i32
    %c0_i32_1 = arith.constant 0 : i32
    return %c0_i32, %c0_i32_0 : i32, i32
  }
  func.func @transform_5(%arg0: i32) -> (i32, i32, i32) {
    %c0_i32 = arith.constant 0 : i32
    %c0_i32_0 = arith.constant 0 : i32
    %c0_i32_1 = arith.constant 0 : i32
    return %arg0, %c0_i32, %c0_i32_0 : i32, i32, i32
  }
}

module attributes {stable_mosaic.version = 11 : i64} {
  func.func @combine_conv_out_kernel(%arg0: i32, %arg1: i32, %arg2: memref<9x9xf32, #tpu.memory_space<vmem>>, %arg3: memref<1x9x512xf32, #tpu.memory_space<vmem>>, %arg4: memref<1x9x512xf32, #tpu.memory_space<vmem>>, %arg5: memref<9x1xf32, #tpu.memory_space<vmem>>, %arg6: memref<1x9x512xf32, #tpu.memory_space<vmem>>) attributes {dimension_semantics = [#tpu.dimension_semantics<parallel>, #tpu.dimension_semantics<parallel>], iteration_bounds = array<i64: 2, 1>, scalar_prefetch = 0 : i64, scratch_operands = 0 : i64, tpu.core_type = #tpu.core_type<tc>, window_params = [{pipeline_mode = #tpu.pipeline_mode<synchronous>, transform_indices = @transform_0, window_bounds = array<i64: 9, 9>}, {transform_indices = @transform_1, window_bounds = array<i64: 1, 9, 512>}, {transform_indices = @transform_2, window_bounds = array<i64: 1, 9, 512>}, {pipeline_mode = #tpu.pipeline_mode<synchronous>, transform_indices = @transform_3, window_bounds = array<i64: 9, 1>}, {transform_indices = @transform_4, window_bounds = array<i64: 1, 9, 512>}]} {
    %c0 = arith.constant 0 : index
    %c0_0 = arith.constant 0 : index
    %c0_1 = arith.constant 0 : index
    %0 = vector.load %arg3[%c0, %c0_0, %c0_1] : memref<1x9x512xf32, #tpu.memory_space<vmem>>, vector<1x9x512xf32>
    %1 = vector.shape_cast %0 : vector<1x9x512xf32> to vector<9x512xf32>
    %c0_2 = arith.constant 0 : index
    %c0_3 = arith.constant 0 : index
    %c0_4 = arith.constant 0 : index
    %2 = vector.load %arg4[%c0_2, %c0_3, %c0_4] : memref<1x9x512xf32, #tpu.memory_space<vmem>>, vector<1x9x512xf32>
    %3 = vector.shape_cast %2 : vector<1x9x512xf32> to vector<9x512xf32>
    %4 = arith.mulf %1, %3 : vector<9x512xf32>
    %c0_5 = arith.constant 0 : index
    %c0_6 = arith.constant 0 : index
    %5 = vector.load %arg2[%c0_5, %c0_6] : memref<9x9xf32, #tpu.memory_space<vmem>>, vector<9x9xf32>
    %cst = arith.constant dense<0.000000e+00> : vector<9x512xf32>
    %6 = tpu.matmul %5, %4, %cst {dimension_numbers = #tpu.dot_dimension_numbers<[1], [0], [0], [1], [0, 0, 1, 1], [], []>} : vector<9x9xf32>, vector<9x512xf32>, vector<9x512xf32> -> vector<9x512xf32>
    %c0_7 = arith.constant 0 : index
    %c0_8 = arith.constant 0 : index
    %7 = vector.load %arg5[%c0_7, %c0_8] : memref<9x1xf32, #tpu.memory_space<vmem>>, vector<9x1xf32>
    %8 = vector.broadcast %7 : vector<9x1xf32> to vector<9x512xf32>
    %9 = arith.addf %6, %8 : vector<9x512xf32>
    %c0_9 = arith.constant 0 : index
    %c0_10 = arith.constant 0 : index
    %c0_11 = arith.constant 0 : index
    %10 = vector.load %arg6[%c0_9, %c0_10, %c0_11] : memref<1x9x512xf32, #tpu.memory_space<vmem>>, vector<1x9x512xf32>
    %11 = vector.shape_cast %10 : vector<1x9x512xf32> to vector<9x512xf32>
    %12 = vector.shape_cast %9 : vector<9x512xf32> to vector<1x9x512xf32>
    tpu.vector_store %arg6[%c0_9, %c0_10, %c0_11], %12 {strides = array<i32>} : memref<1x9x512xf32, #tpu.memory_space<vmem>>, vector<1x9x512xf32>,
    return
  }
  func.func @transform_0(%arg0: i32, %arg1: i32) -> (i32, i32) {
    %c0_i32 = arith.constant 0 : i32
    %c0_i32_0 = arith.constant 0 : i32
    %c0_i32_1 = arith.constant 0 : i32
    return %c0_i32, %c0_i32_0 : i32, i32
  }
  func.func @transform_1(%arg0: i32, %arg1: i32) -> (i32, i32, i32) {
    %c0_i32 = arith.constant 0 : i32
    %c0_i32_0 = arith.constant 0 : i32
    return %arg0, %c0_i32, %arg1 : i32, i32, i32
  }
  func.func @transform_2(%arg0: i32, %arg1: i32) -> (i32, i32, i32) {
    %c0_i32 = arith.constant 0 : i32
    %c0_i32_0 = arith.constant 0 : i32
    return %arg0, %c0_i32, %arg1 : i32, i32, i32
  }
  func.func @transform_3(%arg0: i32, %arg1: i32) -> (i32, i32) {
    %c0_i32 = arith.constant 0 : i32
    %c0_i32_0 = arith.constant 0 : i32
    %c0_i32_1 = arith.constant 0 : i32
    return %c0_i32, %c0_i32_0 : i32, i32
  }
  func.func @transform_4(%arg0: i32, %arg1: i32) -> (i32, i32, i32) {
    %c0_i32 = arith.constant 0 : i32
    %c0_i32_0 = arith.constant 0 : i32
    return %arg0, %c0_i32, %arg1 : i32, i32, i32
  }
}

</mosaic_0001>

<bundles_post_ra>
// kernel: model_forward.7
= control target key start
LH: loop header
LB: loop body
LE: loop exit
PB: predicated region body
PF: predicated region fallthrough
CT: control target
= control target key end

     0   :  { %8 = vsyncpa [#allocation3], 0  ;;  %s717_s12 = smov 0   ;;  %s719_s13 = smov 0   ;;  %s827_s0 = inlined_call_operand.hbm [shape: bf16[32,27], index: 0, kind: input, shape index: {}]   ;;  %s828_s1 = inlined_call_operand.vmem [shape: bf16[2,27,512], index: 1, kind: input, shape index: {}]   ;;  %s829_s2 = inlined_call_operand.vmem [shape: f32[32,1], index: 2, kind: input, shape index: {}]   ;;  %s830_s3 = inlined_call_operand.vmem [shape: f32[2,32,512], index: 3, kind: output, shape index: {}]  }
   0x1   :  { %s721_s14 = smov 0  }
   0x2 LB: > { %s552_s15 = sadd.s32 4294967295, %s690_s14   ;;  %s26_s16 = sadd.s32 1, %s686_s13  ;;  %s690_s14 = sphi %s721_s14, %s14_s14   ;;  %s686_s13 = sphi %s719_s13, %s840_s13   ;;  %s682_s12 = sphi %s717_s12, %s839_s12  }
   0x3   : > { %p28_p0 = scmp.ge.s32.totalorder %s26_s16, 2  ;;  %p554_p1 = scmp.ge.s32.totalorder %s690_s14, 1 }
   0x4   : > { %p129_p2 = scmp.lt.s32.totalorder %s690_s14, 3  ;;  %p742_p4 = scmp.eq.s32.totalorder %s552_s15, 0 }
   0x5   : > { %s842_s16 = smov (%p28_p0, %s26_s16), 0  ;;  %s692_s19 = smov [#allocation2]  }
   0x6   : > { %p738_p3 = pnand %p554_p1, %p129_p2  ;;  %s141_s20 = sshll.u32 %s692_s19, 4  ;;  %s142_s20 = int_to_ptr.vmem [resolvable:$true] %s141_s20 }
   0x7   : > { %s835_s18 = scalar_select %p742_p4, 1, 0 }
   0x8   : > { %s834_s17 = scalar_select %p738_p3, 1, 0 }
   0x9   : > { %p585_p5 = pneg %p738_p3  ;;  %s636_s24 = scalar_lea.hbm %s827_s0, 256 }
   0xa   : > { %p637_p7 = scmp.ne.s32.totalorder %s827_s0, %s636_s24  ;;  %p643_p11 = scmp.lt.u32.totalorder %s636_s24, %s827_s0 }
   0xb   : > { %p750_p6 = pnand %p742_p4, %p585_p5 }
   0xd   : > { %p638_p8 = pneg %p750_p6 }
   0xf   : > { %p639_p9 = pnand %p638_p8, %p637_p7 }
  0x11   : > { %p640_p10 = pneg %p639_p9 }
  0x13   : > { %p645_p12 = pnand %p643_p11, %p640_p10 }
  0x15   : > { %648 = shalt.err (!%p645_p12)
}
  0x16   : > { %s649_s29 = scalar_lea.vmem %s142_s20, 256  ;;  %p657_p2 = scmp.lt.s32.totalorder %s142_s20, %s142_s20 }
  0x17   : > { %p650_p13 = scmp.ne.s32.totalorder %s142_s20, %s649_s29  ;;  %p658_p5 = scmp.lt.s32.totalorder %s649_s29, %s649_s29 }
  0x19   : > { %p652_p0 = pnand %p650_p13, %p638_p8  ;;  %p659_p4 = por %p658_p5, %p657_p2 }
  0x1b   : > { %p653_p1 = pneg %p652_p0 }
  0x1d   : > { %p660_p3 = pnand %p659_p4, %p653_p1 }
  0x1f   : > { %663 = shalt.err (!%p660_p3)
}
  0x20   : > { %s693_s30 = smov 64   ;;  %s694_s4 = smov 4  }
  0x21   : > { %588 = dma.hbm_to_vmem [thread:$0]  (!%p750_p6), %s827_s0, 256, %s142_s20, [#allocation3], %s693_s30, %s693_s30, %s694_s4  }
  0x22   : > { %p837_p7 = scmp.ne.s32.totalorder %s834_s17, 0 }
  0x23   : > { %p838_p9 = scmp.ne.s32.totalorder (!%p837_p7), %s835_s18, 0 }
  0x24   : > { %173 = sbr.rel (%p837_p7) target bundleno = 284 (0x11c), region = 32 }
  0x2b   : > { %677 = dma.done.wait (%p838_p9), [#allocation3], 256  }
  0x2c   : > { %679 = vsyncadd (%p838_p9), [#allocation3], 4294967040  ;;  %p206_p3 = scmp.lt.s32.totalorder %s682_s12, 1  ;;  %v695_v0 = vmov 0   ;;  %vm315_vm0 = vcmask 1044480   ;;  %vm316_vm1 = vcmask 1045504  }
  0x2d   : > { %363 = vmatprep.mubr.bf16.mxu0 %v695_v0  ;;  %416 = vmatprep.mubr.bf16.mxu1 %v695_v0  ;;  %v696_v1 = vmov 65535   ;;  %v238_v16 = vld [vmem:[%s829_s2] sm:$0xff]  ;;  %v240_v18 = vld [vmem:[%s829_s2 + $0x10] sm:$0xff]  ;;  %vm308_vm2 = vcmask 220160   ;;  %v239_v19 = vld [vmem:[%s829_s2 + $0x8] sm:$0xff] }
  0x2e   : > { %s844_s12 = smov (!%p206_p3, %s682_s12), 1  ;;  %620 = vset.pattern.permute.xlu0 %v695_v0  ;;  %621 = vset.pattern.permute.xlu1 %v695_v0  ;;  %v317_v2 = vsel %vm315_vm0, 4294967295, %v696_v1  ;;  %v634_v17 = vld [vmem:[#allocation2] sm:$0xff]   ;;  %v241_v20 = vld [vmem:[%s829_s2 + $0x18] sm:$0xff]  ;;  %v635_v21 = vld [vmem:[#allocation2 + $0x8] sm:$0xff]  }
  0x2f   : > { %s579_s7 = sshll.u32 %s844_s12, 6  ;;  %v318_v7 = vsel %vm316_vm1, %v317_v2, 0  ;;  %244 = vperm.xlu0 %620, %v238_v16   ;;  %254 = vperm.xlu1 %621, %v240_v18   ;;  %s580_s23 = sshll.u32 %s844_s12, 7 }
  0x30   : > { %s213_s10 = scalar_lea.vmem %s828_s1, %s579_s7  ;;  %s800_s26 = scalar_lea.vmem %s830_s3, %s580_s23 }
  0x31   : > { %v622_v3 = vld [vmem:[%s213_s10 + $0x4] ss:$16 sps:$4 sm:$0xff]   ;;  %v624_v4 = vld [vmem:[%s213_s10 + $0xc] ss:$16 sps:$4 sm:$0xff]   ;;  %v626_v5 = vld [vmem:[%s213_s10] ss:$16 sps:$4 sm:$0xff]  }
  0x32   : > { %331 = vmatprep.subr.bf16.mxu0 %v622_v3  ;;  %v627_v6 = vld [vmem:[%s213_s10 + $0x8] ss:$16 sps:$4 sm:$0xff]   ;;  %384 = vmatprep.subr.bf16.mxu1 %v624_v4  ;;  %v628_v8 = vld [vmem:[%s213_s10 + $0x24] ss:$16 sps:$4 sm:$0x3f]  }
  0x33   : > { %332 = vmatpush1.bf16.msra.mxu0 %v626_v5  ;;  %385 = vmatpush1.bf16.msra.mxu1 %v627_v6  ;;  %v630_v9 = vld [vmem:[%s213_s10 + $0x2c] ss:$16 sps:$4 sm:$0x3f]   ;;  %v323_v10 = vand.u32 %v628_v8, %v318_v7  ;;  %v632_v11 = vld [vmem:[%s213_s10 + $0x20] ss:$16 sps:$4 sm:$0x3f]  }
  0x34   : > { %v633_v12 = vld [vmem:[%s213_s10 + $0x28] ss:$16 sps:$4 sm:$0x3f]   ;;  %v329_v13 = vand.u32 %v630_v9, %v318_v7  ;;  %v320_v14 = vand.u32 %v632_v11, %v318_v7  ;;  %249 = vperm.xlu0 %620, %v239_v19   ;;  %259 = vperm.xlu1 %621, %v241_v20  }
  0x35   : > { %333 = vmatprep.subr.bf16.mxu0 %v323_v10  ;;  %v326_v15 = vand.u32 %v633_v12, %v318_v7 }
  0x36   : > { %386 = vmatprep.subr.bf16.mxu1 %v329_v13 }
  0x37   : > { %334 = vmatpush1.bf16.msra.mxu0 %v320_v14  ;;  %387 = vmatpush1.bf16.msra.mxu1 %v326_v15 }
  0x3a   : > { %573 = vmatmul.mubr.msk.bf16.vlgmr.msra.gmra.mrb[0].mxu0 %vm308_vm2, %v634_v17  ;;  %575 = vmatmul.mubr.msk.bf16.vlgmr.msra.gmra.mrb[0].mxu1 %vm308_vm2, %v634_v17 }
  0x3b   : > { %373 = vmatprep.mubr.bf16.mxu0 %v695_v0  ;;  %426 = vmatprep.mubr.bf16.mxu1 %v695_v0 }
  0x42   : > { %574 = vmatmul.mubr.msk.bf16.gmra.mrb[4].mxu0 %vm308_vm2, %v635_v21  ;;  %576 = vmatmul.mubr.msk.bf16.gmra.mrb[4].mxu1 %vm308_vm2, %v635_v21 }
  0xae   : > { %v245_v22 = vpop.permute.xlu0 %244  ;;  %v255_v24 = vpop.permute.xlu1 %254 }
  0xb3   : > { %v250_v23 = vpop.permute.xlu0 %249  ;;  %v260_v41 = vpop.permute.xlu1 %259 }
 0x10d   : > { %v365_v25 = vpop.f32.mrb[0].mxu0  ;;  %v418_v26 = vpop.f32.mrb[0].mxu1 }
 0x10e   : > { %v366_v27 = vadd.f32 %v365_v25, %v245_v22  ;;  %v419_v28 = vadd.f32 %v418_v26, %v245_v22  ;;  %v367_v29 = vpop.f32.mrb[1].mxu0  ;;  %v420_v30 = vpop.f32.mrb[1].mxu1 }
 0x10f   : > { %v368_v31 = vadd.f32 %v367_v29, %v245_v22  ;;  %v421_v32 = vadd.f32 %v420_v30, %v245_v22  ;;  %v369_v33 = vpop.f32.mrb[2].mxu0  ;;  %v422_v34 = vpop.f32.mrb[2].mxu1 }
 0x110   : > { %437 = vst [vmem:[%s800_s26] sm:$0xff] %v366_v27  ;;  %439 = vst [vmem:[%s800_s26 + $0x10] sm:$0xff] %v419_v28  ;;  %v370_v35 = vadd.f32 %v369_v33, %v250_v23  ;;  %v423_v36 = vadd.f32 %v422_v34, %v250_v23  ;;  %v371_v37 = vpop.f32.mrb[3].mxu0  ;;  %v424_v38 = vpop.f32.mrb[3].mxu1 }
 0x111   : > { %438 = vst [vmem:[%s800_s26 + $0x8] sm:$0xff] %v368_v31  ;;  %440 = vst [vmem:[%s800_s26 + $0x18] sm:$0xff] %v421_v32  ;;  %v372_v39 = vadd.f32 %v371_v37, %v250_v23  ;;  %v425_v40 = vadd.f32 %v424_v38, %v250_v23 }
 0x112   : > { %441 = vst [vmem:[%s800_s26 + $0x20] sm:$0xff] %v370_v35  ;;  %443 = vst [vmem:[%s800_s26 + $0x30] sm:$0xff] %v423_v36 }
 0x113   : > { %442 = vst [vmem:[%s800_s26 + $0x28] sm:$0xff] %v372_v39  ;;  %444 = vst [vmem:[%s800_s26 + $0x38] sm:$0xff] %v425_v40 }
 0x115   : > { %v375_v42 = vpop.f32.mrb[4].mxu0  ;;  %v428_v43 = vpop.f32.mrb[4].mxu1 }
 0x116   : > { %v376_v44 = vadd.f32 %v375_v42, %v255_v24  ;;  %v429_v45 = vadd.f32 %v428_v43, %v255_v24  ;;  %v377_v46 = vpop.f32.mrb[5].mxu0  ;;  %v430_v47 = vpop.f32.mrb[5].mxu1 }
 0x117   : > { %v378_v48 = vadd.f32 %v377_v46, %v255_v24  ;;  %v431_v49 = vadd.f32 %v430_v47, %v255_v24  ;;  %v379_v50 = vpop.f32.mrb[6].mxu0  ;;  %v432_v51 = vpop.f32.mrb[6].mxu1 }
 0x118   : > { %445 = vst [vmem:[%s800_s26 + $0x40] sm:$0xff] %v376_v44  ;;  %447 = vst [vmem:[%s800_s26 + $0x50] sm:$0xff] %v429_v45  ;;  %v380_v52 = vadd.f32 %v379_v50, %v260_v41  ;;  %v433_v53 = vadd.f32 %v432_v51, %v260_v41  ;;  %v381_v54 = vpop.f32.mrb[7].mxu0  ;;  %v434_v55 = vpop.f32.mrb[7].mxu1 }
 0x119   : > { %446 = vst [vmem:[%s800_s26 + $0x48] sm:$0xff] %v378_v48  ;;  %448 = vst [vmem:[%s800_s26 + $0x58] sm:$0xff] %v431_v49  ;;  %v382_v56 = vadd.f32 %v381_v54, %v260_v41  ;;  %v435_v57 = vadd.f32 %v434_v55, %v260_v41 }
 0x11a   : > { %449 = vst [vmem:[%s800_s26 + $0x60] sm:$0xff] %v380_v52  ;;  %451 = vst [vmem:[%s800_s26 + $0x70] sm:$0xff] %v433_v53 }
 0x11b   : > { %450 = vst [vmem:[%s800_s26 + $0x68] sm:$0xff] %v382_v56  ;;  %452 = vst [vmem:[%s800_s26 + $0x78] sm:$0xff] %v435_v57 }
 0x11c PF: > { %s14_s14 = sadd.s32 1, %s690_s14   ;;  %s839_s12 = smov %s686_s13 }
 0x11d   : > { %p11_p4 = scmp.ge.s32.totalorder %s14_s14, 4   ;;  %s840_s13 = smov %s842_s16 }
 0x11f   :  { %13 = sbr.rel (!%p11_p4) target bundleno = 2 (0x2), region = 67 }
 0x126   :  { %483 = vsyncpa [#allocation3], 1 }
 0x127   :  { %485 = vsyncpa [#allocation3 + $0x1], 1 }

// kernel: model_forward.8
= control target key start
LH: loop header
LB: loop body
LE: loop exit
PB: predicated region body
PF: predicated region fallthrough
CT: control target
= control target key end

     0   :  { %s713_s12 = smov 0   ;;  %s715_s13 = smov 0   ;;  %s897_s0 = inlined_call_operand.vmem [shape: f32[2,32,512], index: 0, kind: input, shape index: {}]   ;;  %s898_s1 = inlined_call_operand.vmem [shape: f32[32,1], index: 1, kind: input, shape index: {}]   ;;  %s899_s2 = inlined_call_operand.vmem [shape: f32[32,1], index: 2, kind: input, shape index: {}]   ;;  %s900_s3 = inlined_call_operand.vmem [shape: f32[2,32,512], index: 3, kind: output, shape index: {}]  }
   0x1   :  { %s717_s14 = smov 0  }
   0x2 LB: > { %s25_s15 = sadd.s32 1, %s686_s13  ;;  %p624_p0 = scmp.ge.s32.totalorder %s690_s14, 1  ;;  %s690_s14 = sphi %s717_s14, %s13_s14   ;;  %s686_s13 = sphi %s715_s13, %s902_s13   ;;  %s682_s12 = sphi %s713_s12, %s901_s12  }
   0x3   : > { %p27_p1 = scmp.ge.s32.totalorder %s25_s15, 2  ;;  %p181_p2 = scmp.lt.s32.totalorder %s690_s14, 3 }
   0x5   : > { %s904_s15 = smov (%p27_p1, %s25_s15), 0  ;;  %p182_p3 = pnand %p624_p0, %p181_p2 }
   0x6   : > { %p226_p4 = scmp.lt.s32.totalorder (!%p182_p3), %s682_s12, 1  ;;  %v692_v28 = vmov (!%p182_p3), 0  }
   0x7   : > { %185 = sbr.rel (%p182_p3) target bundleno = 422 (0x1a6), region = 32  ;;  %659 = vset.pattern.permute.xlu1 (!%p182_p3), %v692_v28  ;;  %658 = vset.pattern.permute.xlu0 (!%p182_p3), %v692_v28 }
   0xe   : > { %s906_s12 = smov (!%p226_p4, %s682_s12), 1 }
   0xf   : > { %s631_s16 = sshll.u32 %s906_s12, 7 }
  0x10   : > { %s234_s19 = scalar_lea.vmem %s897_s0, %s631_s16  ;;  %s862_s11 = scalar_lea.vmem %s900_s3, %s631_s16 }
  0x11   : > { %v259_v0 = vld [vmem:[%s234_s19] sm:$0xff]  ;;  %v260_v1 = vld [vmem:[%s234_s19 + $0x8] sm:$0xff]  ;;  %v261_v2 = vld [vmem:[%s234_s19 + $0x10] sm:$0xff] }
  0x12   : > { %v275_v3 = vadd.f32 %v260_v1, %v259_v0  ;;  %v267_v4 = vld [vmem:[%s234_s19 + $0x40] sm:$0xff]  ;;  %v268_v5 = vld [vmem:[%s234_s19 + $0x48] sm:$0xff]  ;;  %v262_v6 = vld [vmem:[%s234_s19 + $0x18] sm:$0xff] }
  0x13   : > { %v269_v7 = vld [vmem:[%s234_s19 + $0x50] sm:$0xff]  ;;  %v285_v8 = vadd.f32 %v268_v5, %v267_v4  ;;  %v263_v9 = vld [vmem:[%s234_s19 + $0x20] sm:$0xff]  ;;  %v270_v11 = vld [vmem:[%s234_s19 + $0x58] sm:$0xff] }
  0x14   : > { %v276_v10 = vadd.f32 %v275_v3, %v261_v2  ;;  %v264_v12 = vld [vmem:[%s234_s19 + $0x28] sm:$0xff]  ;;  %v265_v13 = vld [vmem:[%s234_s19 + $0x30] sm:$0xff]  ;;  %v739_v16 = vld [vmem:[%s234_s19 + $0x60] sm:$0xff] }
  0x15   : > { %v286_v14 = vadd.f32 %v285_v8, %v269_v7  ;;  %v280_v15 = vadd.f32 %v264_v12, %v263_v9  ;;  %v741_v17 = vld [vmem:[%s234_s19 + $0x68] sm:$0xff]  ;;  %v743_v18 = vld [vmem:[%s234_s19 + $0x70] sm:$0xff]  ;;  %v266_v20 = vld [vmem:[%s234_s19 + $0x38] sm:$0xff] }
  0x16   : > { %v277_v19 = vadd.f32 %v276_v10, %v262_v6  ;;  %v290_v21 = vadd.f32 %v741_v17, %v739_v16  ;;  %v747_v24 = vld [vmem:[%s234_s19 + $0x78] sm:$0xff]  ;;  %v420_v8 = vld [vmem:[%s899_s2] sm:$0xff]  ;;  %v422_v10 = vld [vmem:[%s899_s2 + $0x10] sm:$0xff] }
  0x17   : > { %v287_v22 = vadd.f32 %v286_v14, %v270_v11  ;;  %v281_v23 = vadd.f32 %v280_v15, %v265_v13 }
  0x18   : > { %278 = vadd.xlane.f32.xlu0 %v277_v19  ;;  %v291_v25 = vadd.f32 %v290_v21, %v743_v18 }
  0x19   : > { %288 = vadd.xlane.f32.xlu1 %v287_v22  ;;  %v282_v26 = vadd.f32 %v281_v23, %v266_v20 }
  0x1a   : > { %v292_v27 = vadd.f32 %v291_v25, %v747_v24 }
  0x1c   : > { %283 = vadd.xlane.f32.xlu0 %v282_v26 }
  0x1d   : > { %293 = vadd.xlane.f32.xlu1 %v292_v27 }
  0xa5   : > { %v279_v29 = vpop.xlane.xlu0 %278 }
  0xa6   : > { %v296_v30 = vmul.f32 0.001953125, %v279_v29  ;;  %v289_v31 = vpop.xlane.xlu1 %288 }
  0xa7   : > { %v298_v32 = vmul.f32 0.001953125, %v289_v31 }
  0xa8   : > { %v751_v33 = vsub.f32 %v259_v0, %v296_v30  ;;  %v753_v34 = vsub.f32 %v260_v1, %v296_v30  ;;  %v755_v35 = vsub.f32 %v261_v2, %v296_v30  ;;  %v757_v36 = vsub.f32 %v262_v6, %v296_v30  ;;  %v380_v6 = vld [vmem:[%s898_s1] sm:$0xff] }
  0xa9   : > { %v759_v37 = vsub.f32 %v267_v4, %v298_v32  ;;  %v761_v38 = vsub.f32 %v268_v5, %v298_v32  ;;  %v284_v39 = vpop.xlane.xlu0 %283  ;;  %v763_v40 = vsub.f32 %v269_v7, %v298_v32  ;;  %v765_v41 = vsub.f32 %v270_v11, %v298_v32  ;;  %v381_v4 = vld [vmem:[%s898_s1 + $0x8] sm:$0xff]  ;;  %v382_v5 = vld [vmem:[%s898_s1 + $0x10] sm:$0xff]  ;;  %v383_v7 = vld [vmem:[%s898_s1 + $0x18] sm:$0xff] }
  0xaa   : > { %v297_v42 = vmul.f32 0.001953125, %v284_v39  ;;  %v316_v43 = vmul.f32 %v751_v33, %v751_v33  ;;  %v317_v44 = vmul.f32 %v753_v34, %v753_v34  ;;  %v318_v50 = vmul.f32 %v755_v35, %v755_v35  ;;  %v294_v11 = vpop.xlane.xlu1 %293 }
  0xab   : > { %v324_v45 = vmul.f32 %v759_v37, %v759_v37  ;;  %v325_v46 = vmul.f32 %v761_v38, %v761_v38  ;;  %v326_v47 = vmul.f32 %v763_v40, %v763_v40  ;;  %v319_v52 = vmul.f32 %v757_v36, %v757_v36 }
  0xac   : > { %v777_v48 = vsub.f32 %v263_v9, %v297_v42  ;;  %v779_v49 = vsub.f32 %v264_v12, %v297_v42  ;;  %v332_v51 = vadd.f32 %v317_v44, %v316_v43  ;;  %v327_v53 = vmul.f32 %v765_v41, %v765_v41  ;;  %v421_v9 = vld [vmem:[%s899_s2 + $0x8] sm:$0xff] }
  0xad   : > { %v342_v54 = vadd.f32 %v325_v46, %v324_v45  ;;  %v787_v55 = vsub.f32 %v265_v13, %v297_v42  ;;  %v789_v57 = vsub.f32 %v266_v20, %v297_v42  ;;  %v299_v12 = vmul.f32 0.001953125, %v294_v11 }
  0xae   : > { %v333_v56 = vadd.f32 %v332_v51, %v318_v50  ;;  %v320_v58 = vmul.f32 %v777_v48, %v777_v48  ;;  %v321_v59 = vmul.f32 %v779_v49, %v779_v49 }
  0xaf   : > { %v343_v60 = vadd.f32 %v342_v54, %v326_v47  ;;  %v322_v62 = vmul.f32 %v787_v55, %v787_v55  ;;  %v323_v1 = vmul.f32 %v789_v57, %v789_v57  ;;  %v821_v13 = vsub.f32 %v739_v16, %v299_v12 }
  0xb0   : > { %v334_v61 = vadd.f32 %v333_v56, %v319_v52  ;;  %v337_v63 = vadd.f32 %v321_v59, %v320_v58  ;;  %v824_v14 = vsub.f32 %v741_v17, %v299_v12  ;;  %v827_v15 = vsub.f32 %v743_v18, %v299_v12  ;;  %v423_v18 = vld [vmem:[%s899_s2 + $0x18] sm:$0xff] }
  0xb1   : > { %v344_v0 = vadd.f32 %v343_v60, %v327_v53  ;;  %v328_v19 = vmul.f32 %v821_v13, %v821_v13  ;;  %v834_v21 = vsub.f32 %v747_v24, %v299_v12 }
  0xb2   : > { %335 = vadd.xlane.f32.xlu0 %v334_v61  ;;  %v338_v2 = vadd.f32 %v337_v63, %v322_v62  ;;  %v329_v20 = vmul.f32 %v824_v14, %v824_v14  ;;  %v330_v22 = vmul.f32 %v827_v15, %v827_v15 }
  0xb3   : > { %v331_v17 = vmul.f32 %v834_v21, %v834_v21 }
  0xb4   : > { %v339_v3 = vadd.f32 %v338_v2, %v323_v1  ;;  %v347_v16 = vadd.f32 %v329_v20, %v328_v19 }
  0xb6   : > { %345 = vadd.xlane.f32.xlu0 %v344_v0  ;;  %340 = vadd.xlane.f32.xlu1 %v339_v3  ;;  %v348_v23 = vadd.f32 %v347_v16, %v330_v22 }
  0xb8   : > { %v349_v25 = vadd.f32 %v348_v23, %v331_v17 }
  0xc7   : > { %391 = vperm.xlu1 %659, %v381_v4  }
  0xcb   : > { %396 = vperm.xlu1 %659, %v382_v5  }
  0xcc   : > { %386 = vperm.xlu0 %658, %v380_v6  }
  0xcf   : > { %401 = vperm.xlu1 %659, %v383_v7  }
  0xd3   : > { %426 = vperm.xlu1 %659, %v420_v8  }
  0xd7   : > { %431 = vperm.xlu1 %659, %v421_v9  }
  0xdb   : > { %436 = vperm.xlu1 %659, %v422_v10  }
  0xff   : > { %350 = vadd.xlane.f32.xlu1 %v349_v25 }
 0x110   : > { %441 = vperm.xlu1 %659, %v423_v18  }
 0x13f   : > { %v336_v26 = vpop.xlane.xlu0 %335 }
 0x140   : > { %v352_v27 = vmul.f32 0.001953125, %v336_v26 }
 0x142   : > { %v356_v28 = vadd.f32 1e-05, %v352_v27 }
 0x143   : > { %v341_v24 = vpop.xlane.xlu1 %340  ;;  %v346_v29 = vpop.xlane.xlu0 %345 }
 0x144   : > { %660 = vrsqrt.f32 %v356_v28  ;;  %v353_v30 = vmul.f32 0.001953125, %v341_v24  ;;  %v354_v31 = vmul.f32 0.001953125, %v346_v29 }
 0x146   : > { %v357_v32 = vadd.f32 1e-05, %v353_v30  ;;  %v358_v39 = vadd.f32 1e-05, %v354_v31 }
 0x147   : > { %v392_v42 = vpop.permute.xlu1 %391 }
 0x148   : > { %662 = vrsqrt.f32 %v357_v32 }
 0x149   : > { %664 = vrsqrt.f32 %v358_v39 }
 0x14b   : > { %v397_v43 = vpop.permute.xlu1 %396  ;;  %v387_v52 = vpop.permute.xlu0 %386 }
 0x14e   : > { %v661_v44 = vpop.eup %660 }
 0x14f   : > { %v843_v45 = vpop.permute.xlu1 %401  ;;  %v364_v46 = vmul.f32 %v661_v44, %v751_v33  ;;  %v365_v47 = vmul.f32 %v661_v44, %v753_v34  ;;  %v366_v50 = vmul.f32 %v661_v44, %v755_v35  ;;  %v367_v51 = vmul.f32 %v661_v44, %v757_v36 }
 0x151   : > { %v404_v54 = vmul.f32 %v387_v52, %v364_v46  ;;  %v405_v56 = vmul.f32 %v387_v52, %v365_v47  ;;  %v406_v58 = vmul.f32 %v387_v52, %v366_v50  ;;  %v407_v59 = vmul.f32 %v387_v52, %v367_v51 }
 0x152   : > { %v663_v53 = vpop.eup %662 }
 0x153   : > { %v665_v60 = vpop.eup %664  ;;  %v368_v61 = vmul.f32 %v663_v53, %v777_v48  ;;  %v369_v62 = vmul.f32 %v663_v53, %v779_v49  ;;  %v370_v63 = vmul.f32 %v663_v53, %v787_v55  ;;  %v371_v33 = vmul.f32 %v663_v53, %v789_v57  ;;  %v427_v34 = vpop.permute.xlu1 %426 }
 0x154   : > { %v372_v35 = vmul.f32 %v665_v60, %v759_v37  ;;  %v373_v36 = vmul.f32 %v665_v60, %v761_v38  ;;  %v374_v0 = vmul.f32 %v665_v60, %v763_v40  ;;  %v375_v1 = vmul.f32 %v665_v60, %v765_v41 }
 0x155   : > { %v408_v2 = vmul.f32 %v392_v42, %v368_v61  ;;  %v409_v3 = vmul.f32 %v392_v42, %v369_v62  ;;  %v410_v4 = vmul.f32 %v392_v42, %v370_v63  ;;  %v411_v48 = vmul.f32 %v392_v42, %v371_v33 }
 0x156   : > { %v412_v5 = vmul.f32 %v397_v43, %v372_v35  ;;  %v413_v49 = vmul.f32 %v397_v43, %v373_v36  ;;  %v414_v6 = vmul.f32 %v397_v43, %v374_v0  ;;  %v415_v55 = vmul.f32 %v397_v43, %v375_v1 }
 0x157   : > { %v444_v7 = vadd.f32 %v427_v34, %v404_v54  ;;  %v445_v57 = vadd.f32 %v427_v34, %v405_v56  ;;  %v446_v8 = vadd.f32 %v427_v34, %v406_v58  ;;  %v447_v9 = vadd.f32 %v427_v34, %v407_v59  ;;  %v432_v37 = vpop.permute.xlu1 %431 }
 0x158   : > { %v448_v38 = vadd.f32 %v432_v37, %v408_v2  ;;  %v449_v40 = vadd.f32 %v432_v37, %v409_v3  ;;  %v450_v41 = vadd.f32 %v432_v37, %v410_v4  ;;  %v451_v10 = vadd.f32 %v432_v37, %v411_v48 }
 0x159   : > { %v460_v11 = vmax.f32 %v444_v7, 0.0  ;;  %v461_v12 = vmax.f32 %v445_v57, 0.0  ;;  %v462_v19 = vmax.f32 %v446_v8, 0.0  ;;  %v463_v20 = vmax.f32 %v447_v9, 0.0 }
 0x15a   : > { %v464_v22 = vmax.f32 %v448_v38, 0.0  ;;  %v465_v16 = vmax.f32 %v449_v40, 0.0  ;;  %v466_v17 = vmax.f32 %v450_v41, 0.0  ;;  %v467_v23 = vmax.f32 %v451_v10, 0.0 }
 0x15b   : > { %476 = vst [vmem:[%s862_s11] sm:$0xff] %v460_v11  ;;  %477 = vst [vmem:[%s862_s11 + $0x8] sm:$0xff] %v461_v12  ;;  %v437_v25 = vpop.permute.xlu1 %436 }
 0x15c   : > { %478 = vst [vmem:[%s862_s11 + $0x10] sm:$0xff] %v462_v19  ;;  %479 = vst [vmem:[%s862_s11 + $0x18] sm:$0xff] %v463_v20  ;;  %v452_v18 = vadd.f32 %v437_v25, %v412_v5  ;;  %v453_v26 = vadd.f32 %v437_v25, %v413_v49  ;;  %v454_v27 = vadd.f32 %v437_v25, %v414_v6 }
 0x15d   : > { %480 = vst [vmem:[%s862_s11 + $0x20] sm:$0xff] %v464_v22  ;;  %481 = vst [vmem:[%s862_s11 + $0x28] sm:$0xff] %v465_v16  ;;  %v455_v28 = vadd.f32 %v437_v25, %v415_v55 }
 0x15e   : > { %482 = vst [vmem:[%s862_s11 + $0x30] sm:$0xff] %v466_v17  ;;  %483 = vst [vmem:[%s862_s11 + $0x38] sm:$0xff] %v467_v23  ;;  %v468_v24 = vmax.f32 %v452_v18, 0.0  ;;  %v469_v29 = vmax.f32 %v453_v26, 0.0  ;;  %v470_v30 = vmax.f32 %v454_v27, 0.0 }
 0x15f   : > { %v471_v31 = vmax.f32 %v455_v28, 0.0 }
 0x160   : > { %484 = vst [vmem:[%s862_s11 + $0x40] sm:$0xff] %v468_v24  ;;  %485 = vst [vmem:[%s862_s11 + $0x48] sm:$0xff] %v469_v29 }
 0x161   : > { %486 = vst [vmem:[%s862_s11 + $0x50] sm:$0xff] %v470_v30  ;;  %487 = vst [vmem:[%s862_s11 + $0x58] sm:$0xff] %v471_v31 }
 0x18c   : > { %v351_v32 = vpop.xlane.xlu1 %350 }
 0x18d   : > { %v355_v39 = vmul.f32 0.001953125, %v351_v32 }
 0x18f   : > { %v359_v42 = vadd.f32 1e-05, %v355_v39 }
 0x190   : > { %v442_v56 = vpop.permute.xlu1 %441 }
 0x191   : > { %666 = vrsqrt.f32 %v359_v42 }
 0x19b   : > { %v667_v43 = vpop.eup %666 }
 0x19c   : > { %v376_v44 = vmul.f32 %v667_v43, %v821_v13  ;;  %v377_v46 = vmul.f32 %v667_v43, %v824_v14  ;;  %v378_v47 = vmul.f32 %v667_v43, %v827_v15  ;;  %v379_v50 = vmul.f32 %v667_v43, %v834_v21 }
 0x19e   : > { %v416_v51 = vmul.f32 %v843_v45, %v376_v44  ;;  %v417_v52 = vmul.f32 %v843_v45, %v377_v46  ;;  %v418_v53 = vmul.f32 %v843_v45, %v378_v47  ;;  %v419_v54 = vmul.f32 %v843_v45, %v379_v50 }
 0x1a0   : > { %v456_v13 = vadd.f32 %v442_v56, %v416_v51  ;;  %v457_v58 = vadd.f32 %v442_v56, %v417_v52  ;;  %v458_v14 = vadd.f32 %v442_v56, %v418_v53  ;;  %v459_v59 = vadd.f32 %v442_v56, %v419_v54 }
 0x1a2   : > { %v472_v60 = vmax.f32 %v456_v13, 0.0  ;;  %v473_v15 = vmax.f32 %v457_v58, 0.0  ;;  %v474_v61 = vmax.f32 %v458_v14, 0.0  ;;  %v475_v62 = vmax.f32 %v459_v59, 0.0 }
 0x1a4   : > { %488 = vst [vmem:[%s862_s11 + $0x60] sm:$0xff] %v472_v60  ;;  %489 = vst [vmem:[%s862_s11 + $0x68] sm:$0xff] %v473_v15 }
 0x1a5   : > { %490 = vst [vmem:[%s862_s11 + $0x70] sm:$0xff] %v474_v61  ;;  %491 = vst [vmem:[%s862_s11 + $0x78] sm:$0xff] %v475_v62 }
 0x1a6 PF: > { %s13_s14 = sadd.s32 1, %s690_s14   ;;  %s901_s12 = smov %s686_s13 }
 0x1a7   : > { %p10_p5 = scmp.ge.s32.totalorder %s13_s14, 4   ;;  %s902_s13 = smov %s904_s15 }
 0x1a9   :  { %12 = sbr.rel (!%p10_p5) target bundleno = 2 (0x2), region = 68 }

// kernel: model_forward.9
= control target key start
LH: loop header
LB: loop body
LE: loop exit
PB: predicated region body
PF: predicated region fallthrough
CT: control target
= control target key end

     0   :  { %s2679_s12 = smov 0   ;;  %s2681_s13 = smov 0   ;;  %s2964_s0 = inlined_call_operand.vmem [shape: bf16[9,864], index: 0, kind: input, shape index: {}]   ;;  %s2965_s1 = inlined_call_operand.vmem [shape: bf16[2,864,512], index: 1, kind: input, shape index: {}]   ;;  %s2966_s2 = inlined_call_operand.vmem [shape: f32[9,1], index: 2, kind: input, shape index: {}]   ;;  %s2967_s3 = inlined_call_operand.vmem [shape: f32[2,9,512], index: 3, kind: output, shape index: {}]  }
   0x1   :  { %s2683_s14 = smov 0  }
   0x2 LB: > { %s25_s15 = sadd.s32 1, %s2652_s13  ;;  %p2009_p0 = scmp.ge.s32.totalorder %s2656_s14, 1  ;;  %s2656_s14 = sphi %s2683_s14, %s13_s14   ;;  %s2652_s13 = sphi %s2681_s13, %s2969_s13   ;;  %s2648_s12 = sphi %s2679_s12, %s2968_s12  }
   0x3   : > { %p27_p1 = scmp.ge.s32.totalorder %s25_s15, 2  ;;  %p158_p2 = scmp.lt.s32.totalorder %s2656_s14, 3 }
   0x5   : > { %s2971_s15 = smov (%p27_p1, %s25_s15), 0  ;;  %p159_p3 = pnand %p2009_p0, %p158_p2 }
   0x6   : > { %p191_p4 = scmp.lt.s32.totalorder (!%p159_p3), %s2648_s12, 1  ;;  %v2398_v0 = vld [vmem:[%s2964_s0 + $0x4] ss:$28 sps:$4 sm:$0x1f] (!%p159_p3)   ;;  %vm1562_vm0 = vcmask (!%p159_p3), 785408  }
   0x7   : > { %162 = sbr.rel (%p159_p3) target bundleno = 453 (0x1c5), region = 32  ;;  %1598 = vmatprep.mubr.bf16.mxu0 (!%p159_p3), %v2398_v0  ;;  %1770 = vmatprep.mubr.bf16.mxu1 (!%p159_p3), %v2398_v0 }
   0xe   : > { %s2973_s12 = smov (!%p191_p4, %s2648_s12), 1 }
   0xf   : > { %s2273_s18 = smul.u32 1728, %s2973_s12  ;;  %s2240_s11 = sshll.u32 %s2973_s12, 6 }
  0x11   : > { %s2706_s21 = scalar_lea.vmem %s2965_s1, %s2273_s18  ;;  %s208_s18 = scalar_lea.vmem %s2967_s3, %s2240_s11 }
  0x12   : > { %v2300_v1 = vld [vmem:[%s2706_s21 + $0x4] ss:$16 sps:$4 sm:$0xff]   ;;  %v2302_v2 = vld [vmem:[%s2706_s21 + $0xc] ss:$16 sps:$4 sm:$0xff]   ;;  %v2304_v3 = vld [vmem:[%s2706_s21] ss:$16 sps:$4 sm:$0xff]  }
  0x13   : > { %1566 = vmatprep.subr.bf16.mxu0 %v2300_v1  ;;  %v2305_v4 = vld [vmem:[%s2706_s21 + $0x8] ss:$16 sps:$4 sm:$0xff]   ;;  %1738 = vmatprep.subr.bf16.mxu1 %v2302_v2  ;;  %v2306_v5 = vld [vmem:[%s2706_s21 + $0x24] ss:$16 sps:$4 sm:$0xff]   ;;  %v2308_v6 = vld [vmem:[%s2706_s21 + $0x2c] ss:$16 sps:$4 sm:$0xff]  }
  0x14   : > { %1567 = vmatpush1.bf16.msra.mxu0 %v2304_v3  ;;  %1739 = vmatpush1.bf16.msra.mxu1 %v2305_v4  ;;  %v2310_v7 = vld [vmem:[%s2706_s21 + $0x20] ss:$16 sps:$4 sm:$0xff]   ;;  %v2311_v8 = vld [vmem:[%s2706_s21 + $0x28] ss:$16 sps:$4 sm:$0xff]   ;;  %v2312_v9 = vld [vmem:[%s2706_s21 + $0x44] ss:$16 sps:$4 sm:$0xff]  }
  0x15   : > { %1568 = vmatprep.subr.bf16.mxu0 %v2306_v5  ;;  %1740 = vmatprep.subr.bf16.mxu1 %v2308_v6  ;;  %v2314_v10 = vld [vmem:[%s2706_s21 + $0x4c] ss:$16 sps:$4 sm:$0xff]   ;;  %v2316_v11 = vld [vmem:[%s2706_s21 + $0x40] ss:$16 sps:$4 sm:$0xff]   ;;  %v2317_v12 = vld [vmem:[%s2706_s21 + $0x48] ss:$16 sps:$4 sm:$0xff]  }
  0x16   : > { %v2318_v13 = vld [vmem:[%s2706_s21 + $0x64] ss:$16 sps:$4 sm:$0xff]   ;;  %v2320_v14 = vld [vmem:[%s2706_s21 + $0x6c] ss:$16 sps:$4 sm:$0xff]   ;;  %v2322_v15 = vld [vmem:[%s2706_s21 + $0x60] ss:$16 sps:$4 sm:$0xff]  }
  0x17   : > { %v2323_v16 = vld [vmem:[%s2706_s21 + $0x68] ss:$16 sps:$4 sm:$0xff]   ;;  %v2324_v17 = vld [vmem:[%s2706_s21 + $0x84] ss:$16 sps:$4 sm:$0xff]   ;;  %v2326_v18 = vld [vmem:[%s2706_s21 + $0x8c] ss:$16 sps:$4 sm:$0xff]  }
  0x18   : > { %1569 = vmatpush1.bf16.msra.mxu0 %v2310_v7  ;;  %1741 = vmatpush1.bf16.msra.mxu1 %v2311_v8  ;;  %v2328_v19 = vld [vmem:[%s2706_s21 + $0x80] ss:$16 sps:$4 sm:$0xff]   ;;  %v2329_v20 = vld [vmem:[%s2706_s21 + $0x88] ss:$16 sps:$4 sm:$0xff]   ;;  %v2330_v21 = vld [vmem:[%s2706_s21 + $0xa4] ss:$16 sps:$4 sm:$0xff]  }
  0x19   : > { %1570 = vmatprep.subr.bf16.mxu0 %v2312_v9  ;;  %1742 = vmatprep.subr.bf16.mxu1 %v2314_v10  ;;  %v2332_v22 = vld [vmem:[%s2706_s21 + $0xac] ss:$16 sps:$4 sm:$0xff]   ;;  %v2334_v23 = vld [vmem:[%s2706_s21 + $0xa0] ss:$16 sps:$4 sm:$0xff]   ;;  %v2335_v24 = vld [vmem:[%s2706_s21 + $0xa8] ss:$16 sps:$4 sm:$0xff]  }
  0x1a   : > { %v2336_v25 = vld [vmem:[%s2706_s21 + $0xc4] ss:$16 sps:$4 sm:$0xff]   ;;  %v2338_v26 = vld [vmem:[%s2706_s21 + $0xcc] ss:$16 sps:$4 sm:$0xff]   ;;  %v2340_v27 = vld [vmem:[%s2706_s21 + $0xc0] ss:$16 sps:$4 sm:$0xff]  }
  0x1b   : > { %v2341_v28 = vld [vmem:[%s2706_s21 + $0xc8] ss:$16 sps:$4 sm:$0xff]   ;;  %v2342_v29 = vld [vmem:[%s2706_s21 + $0xe4] ss:$16 sps:$4 sm:$0xff]   ;;  %v2344_v30 = vld [vmem:[%s2706_s21 + $0xec] ss:$16 sps:$4 sm:$0xff]  }
  0x1c   : > { %1571 = vmatpush1.bf16.msra.mxu0 %v2316_v11  ;;  %1743 = vmatpush1.bf16.msra.mxu1 %v2317_v12  ;;  %v2346_v31 = vld [vmem:[%s2706_s21 + $0xe0] ss:$16 sps:$4 sm:$0xff]   ;;  %v2347_v32 = vld [vmem:[%s2706_s21 + $0xe8] ss:$16 sps:$4 sm:$0xff]   ;;  %v2348_v33 = vld [vmem:[%s2706_s21 + $0x104] ss:$16 sps:$4 sm:$0xff]  }
  0x1d   : > { %1572 = vmatprep.subr.bf16.mxu0 %v2318_v13  ;;  %1744 = vmatprep.subr.bf16.mxu1 %v2320_v14  ;;  %v2350_v34 = vld [vmem:[%s2706_s21 + $0x10c] ss:$16 sps:$4 sm:$0xff]   ;;  %v2352_v35 = vld [vmem:[%s2706_s21 + $0x100] ss:$16 sps:$4 sm:$0xff]   ;;  %v2353_v36 = vld [vmem:[%s2706_s21 + $0x108] ss:$16 sps:$4 sm:$0xff]  }
  0x1e   : > { %v2354_v37 = vld [vmem:[%s2706_s21 + $0x124] ss:$16 sps:$4 sm:$0xff]   ;;  %v2356_v38 = vld [vmem:[%s2706_s21 + $0x12c] ss:$16 sps:$4 sm:$0xff]   ;;  %v2358_v39 = vld [vmem:[%s2706_s21 + $0x120] ss:$16 sps:$4 sm:$0xff]  }
  0x1f   : > { %v2359_v40 = vld [vmem:[%s2706_s21 + $0x128] ss:$16 sps:$4 sm:$0xff]   ;;  %v2360_v41 = vld [vmem:[%s2706_s21 + $0x144] ss:$16 sps:$4 sm:$0xff]   ;;  %v2362_v42 = vld [vmem:[%s2706_s21 + $0x14c] ss:$16 sps:$4 sm:$0xff]  }
  0x20   : > { %1573 = vmatpush1.bf16.msra.mxu0 %v2322_v15  ;;  %1745 = vmatpush1.bf16.msra.mxu1 %v2323_v16  ;;  %v2364_v43 = vld [vmem:[%s2706_s21 + $0x140] ss:$16 sps:$4 sm:$0xff]   ;;  %v2365_v44 = vld [vmem:[%s2706_s21 + $0x148] ss:$16 sps:$4 sm:$0xff]   ;;  %v2366_v45 = vld [vmem:[%s2706_s21 + $0x164] ss:$16 sps:$4 sm:$0xff]  }
  0x21   : > { %1574 = vmatprep.subr.bf16.mxu0 %v2324_v17  ;;  %1746 = vmatprep.subr.bf16.mxu1 %v2326_v18  ;;  %v2368_v46 = vld [vmem:[%s2706_s21 + $0x16c] ss:$16 sps:$4 sm:$0xff]   ;;  %v2370_v47 = vld [vmem:[%s2706_s21 + $0x160] ss:$16 sps:$4 sm:$0xff]   ;;  %v2371_v48 = vld [vmem:[%s2706_s21 + $0x168] ss:$16 sps:$4 sm:$0xff]  }
  0x22   : > { %v2372_v49 = vld [vmem:[%s2706_s21 + $0x184] ss:$16 sps:$4 sm:$0xff]   ;;  %v2374_v50 = vld [vmem:[%s2706_s21 + $0x18c] ss:$16 sps:$4 sm:$0xff]   ;;  %v2376_v51 = vld [vmem:[%s2706_s21 + $0x180] ss:$16 sps:$4 sm:$0xff]  }
  0x23   : > { %v2377_v52 = vld [vmem:[%s2706_s21 + $0x188] ss:$16 sps:$4 sm:$0xff]   ;;  %v2378_v53 = vld [vmem:[%s2706_s21 + $0x1a4] ss:$16 sps:$4 sm:$0xff]   ;;  %v2380_v54 = vld [vmem:[%s2706_s21 + $0x1ac] ss:$16 sps:$4 sm:$0xff]  }
  0x24   : > { %1575 = vmatpush1.bf16.msra.mxu0 %v2328_v19  ;;  %1747 = vmatpush1.bf16.msra.mxu1 %v2329_v20  ;;  %v2382_v55 = vld [vmem:[%s2706_s21 + $0x1a0] ss:$16 sps:$4 sm:$0xff]   ;;  %v2383_v56 = vld [vmem:[%s2706_s21 + $0x1a8] ss:$16 sps:$4 sm:$0xff]   ;;  %v2384_v57 = vld [vmem:[%s2706_s21 + $0x1c4] ss:$16 sps:$4 sm:$0xff]  }
  0x25   : > { %1576 = vmatprep.subr.bf16.mxu0 %v2330_v21  ;;  %1748 = vmatprep.subr.bf16.mxu1 %v2332_v22  ;;  %v2386_v58 = vld [vmem:[%s2706_s21 + $0x1cc] ss:$16 sps:$4 sm:$0xff]   ;;  %v2388_v59 = vld [vmem:[%s2706_s21 + $0x1c0] ss:$16 sps:$4 sm:$0xff]   ;;  %v2389_v60 = vld [vmem:[%s2706_s21 + $0x1c8] ss:$16 sps:$4 sm:$0xff]  }
  0x26   : > { %v2390_v61 = vld [vmem:[%s2706_s21 + $0x1e4] ss:$16 sps:$4 sm:$0xff]   ;;  %v2392_v62 = vld [vmem:[%s2706_s21 + $0x1ec] ss:$16 sps:$4 sm:$0xff]   ;;  %v2394_v63 = vld [vmem:[%s2706_s21 + $0x1e0] ss:$16 sps:$4 sm:$0xff]  }
  0x27   : > { %v2395_v0 = vld [vmem:[%s2706_s21 + $0x1e8] ss:$16 sps:$4 sm:$0xff]   ;;  %v2401_v1 = vld [vmem:[%s2706_s21 + $0x204] ss:$16 sps:$4 sm:$0xff]   ;;  %v2404_v2 = vld [vmem:[%s2706_s21 + $0x20c] ss:$16 sps:$4 sm:$0xff]  }
  0x28   : > { %1577 = vmatpush1.bf16.msra.mxu0 %v2334_v23  ;;  %1749 = vmatpush1.bf16.msra.mxu1 %v2335_v24  ;;  %v2396_v3 = vld [vmem:[%s2964_s0] ss:$28 sps:$4 sm:$0x1f]   ;;  %v2402_v5 = vld [vmem:[%s2706_s21 + $0x208] ss:$16 sps:$4 sm:$0xff]  }
  0x29   : > { %1578 = vmatprep.subr.bf16.mxu0 %v2336_v25  ;;  %1750 = vmatprep.subr.bf16.mxu1 %v2338_v26  ;;  %v2399_v4 = vld [vmem:[%s2706_s21 + $0x200] ss:$16 sps:$4 sm:$0xff]   ;;  %v2407_v6 = vld [vmem:[%s2706_s21 + $0x224] ss:$16 sps:$4 sm:$0xff]   ;;  %v2410_v7 = vld [vmem:[%s2706_s21 + $0x22c] ss:$16 sps:$4 sm:$0xff]  }
  0x2a   : > { %v2405_v8 = vld [vmem:[%s2706_s21 + $0x220] ss:$16 sps:$4 sm:$0xff]   ;;  %v2408_v9 = vld [vmem:[%s2706_s21 + $0x228] ss:$16 sps:$4 sm:$0xff]   ;;  %v2413_v10 = vld [vmem:[%s2706_s21 + $0x244] ss:$16 sps:$4 sm:$0xff]  }
  0x2b   : > { %v2416_v11 = vld [vmem:[%s2706_s21 + $0x24c] ss:$16 sps:$4 sm:$0xff]   ;;  %v2411_v12 = vld [vmem:[%s2706_s21 + $0x240] ss:$16 sps:$4 sm:$0xff]   ;;  %v2414_v13 = vld [vmem:[%s2706_s21 + $0x248] ss:$16 sps:$4 sm:$0xff]  }
  0x2c   : > { %1579 = vmatpush1.bf16.msra.mxu0 %v2340_v27  ;;  %1751 = vmatpush1.bf16.msra.mxu1 %v2341_v28  ;;  %v2419_v14 = vld [vmem:[%s2706_s21 + $0x264] ss:$16 sps:$4 sm:$0xff]   ;;  %v2422_v15 = vld [vmem:[%s2706_s21 + $0x26c] ss:$16 sps:$4 sm:$0xff]   ;;  %v2417_v16 = vld [vmem:[%s2706_s21 + $0x260] ss:$16 sps:$4 sm:$0xff]  }
  0x2d   : > { %1580 = vmatprep.subr.bf16.mxu0 %v2342_v29  ;;  %1752 = vmatprep.subr.bf16.mxu1 %v2344_v30  ;;  %v2420_v17 = vld [vmem:[%s2706_s21 + $0x268] ss:$16 sps:$4 sm:$0xff]   ;;  %v2425_v18 = vld [vmem:[%s2706_s21 + $0x284] ss:$16 sps:$4 sm:$0xff]   ;;  %v2428_v19 = vld [vmem:[%s2706_s21 + $0x28c] ss:$16 sps:$4 sm:$0xff]  }
  0x2e   : > { %v2423_v20 = vld [vmem:[%s2706_s21 + $0x280] ss:$16 sps:$4 sm:$0xff]   ;;  %v2426_v21 = vld [vmem:[%s2706_s21 + $0x288] ss:$16 sps:$4 sm:$0xff]   ;;  %v2431_v22 = vld [vmem:[%s2706_s21 + $0x2a4] ss:$16 sps:$4 sm:$0xff]  }
  0x2f   : > { %v2434_v23 = vld [vmem:[%s2706_s21 + $0x2ac] ss:$16 sps:$4 sm:$0xff]   ;;  %v2429_v24 = vld [vmem:[%s2706_s21 + $0x2a0] ss:$16 sps:$4 sm:$0xff]   ;;  %v2432_v25 = vld [vmem:[%s2706_s21 + $0x2a8] ss:$16 sps:$4 sm:$0xff]  }
  0x30   : > { %1581 = vmatpush1.bf16.msra.mxu0 %v2346_v31  ;;  %1753 = vmatpush1.bf16.msra.mxu1 %v2347_v32  ;;  %v2437_v26 = vld [vmem:[%s2706_s21 + $0x2c4] ss:$16 sps:$4 sm:$0xff]   ;;  %v2440_v27 = vld [vmem:[%s2706_s21 + $0x2cc] ss:$16 sps:$4 sm:$0xff]   ;;  %v2435_v29 = vld [vmem:[%s2706_s21 + $0x2c0] ss:$16 sps:$4 sm:$0xff]  }
  0x31   : > { %1582 = vmatprep.subr.bf16.mxu0 %v2348_v33  ;;  %1754 = vmatprep.subr.bf16.mxu1 %v2350_v34  ;;  %v2497_v28 = vld [vmem:[%s2964_s0 + $0xc] ss:$28 sps:$4 sm:$0x1f]   ;;  %v2443_v31 = vld [vmem:[%s2706_s21 + $0x2e4] ss:$16 sps:$4 sm:$0xff]   ;;  %v2658_v33 = vmov 0  }
  0x32   : > { %v2438_v30 = vld [vmem:[%s2706_s21 + $0x2c8] ss:$16 sps:$4 sm:$0xff]   ;;  %v2446_v32 = vld [vmem:[%s2706_s21 + $0x2ec] ss:$16 sps:$4 sm:$0xff]   ;;  %2299 = vset.pattern.permute.xlu0 %v2658_v33  ;;  %v2441_v34 = vld [vmem:[%s2706_s21 + $0x2e0] ss:$16 sps:$4 sm:$0xff]  }
  0x34   : > { %1583 = vmatpush1.bf16.msra.mxu0 %v2352_v35  ;;  %1755 = vmatpush1.bf16.msra.mxu1 %v2353_v36  ;;  %v2444_v35 = vld [vmem:[%s2706_s21 + $0x2e8] ss:$16 sps:$4 sm:$0xff]   ;;  %v2449_v36 = vld [vmem:[%s2706_s21 + $0x304] ss:$16 sps:$4 sm:$0xff]  }
  0x35   : > { %1584 = vmatprep.subr.bf16.mxu0 %v2354_v37  ;;  %1756 = vmatprep.subr.bf16.mxu1 %v2356_v38  ;;  %v2452_v37 = vld [vmem:[%s2706_s21 + $0x30c] ss:$16 sps:$4 sm:$0xff]   ;;  %v2447_v38 = vld [vmem:[%s2706_s21 + $0x300] ss:$16 sps:$4 sm:$0xff]  }
  0x38   : > { %1585 = vmatpush1.bf16.msra.mxu0 %v2358_v39  ;;  %1757 = vmatpush1.bf16.msra.mxu1 %v2359_v40  ;;  %v2450_v39 = vld [vmem:[%s2706_s21 + $0x308] ss:$16 sps:$4 sm:$0xff]   ;;  %v2455_v40 = vld [vmem:[%s2706_s21 + $0x324] ss:$16 sps:$4 sm:$0xff]  }
  0x39   : > { %1586 = vmatprep.subr.bf16.mxu0 %v2360_v41  ;;  %1758 = vmatprep.subr.bf16.mxu1 %v2362_v42  ;;  %v2458_v41 = vld [vmem:[%s2706_s21 + $0x32c] ss:$16 sps:$4 sm:$0xff]   ;;  %v2453_v42 = vld [vmem:[%s2706_s21 + $0x320] ss:$16 sps:$4 sm:$0xff]  }
  0x3c   : > { %1587 = vmatpush1.bf16.msra.mxu0 %v2364_v43  ;;  %1759 = vmatpush1.bf16.msra.mxu1 %v2365_v44  ;;  %v2456_v43 = vld [vmem:[%s2706_s21 + $0x328] ss:$16 sps:$4 sm:$0xff]   ;;  %v2461_v44 = vld [vmem:[%s2706_s21 + $0x344] ss:$16 sps:$4 sm:$0xff]  }
  0x3d   : > { %1588 = vmatprep.subr.bf16.mxu0 %v2366_v45  ;;  %1760 = vmatprep.subr.bf16.mxu1 %v2368_v46  ;;  %v2464_v45 = vld [vmem:[%s2706_s21 + $0x34c] ss:$16 sps:$4 sm:$0xff]   ;;  %v2459_v46 = vld [vmem:[%s2706_s21 + $0x340] ss:$16 sps:$4 sm:$0xff]  }
  0x40   : > { %1589 = vmatpush1.bf16.msra.mxu0 %v2370_v47  ;;  %1761 = vmatpush1.bf16.msra.mxu1 %v2371_v48  ;;  %v2462_v47 = vld [vmem:[%s2706_s21 + $0x348] ss:$16 sps:$4 sm:$0xff]   ;;  %v2467_v48 = vld [vmem:[%s2706_s21 + $0x364] ss:$16 sps:$4 sm:$0xff]  }
  0x41   : > { %1590 = vmatprep.subr.bf16.mxu0 %v2372_v49  ;;  %1762 = vmatprep.subr.bf16.mxu1 %v2374_v50  ;;  %v2470_v49 = vld [vmem:[%s2706_s21 + $0x36c] ss:$16 sps:$4 sm:$0xff]   ;;  %v2465_v50 = vld [vmem:[%s2706_s21 + $0x360] ss:$16 sps:$4 sm:$0xff]  }
  0x44   : > { %1591 = vmatpush1.bf16.msra.mxu0 %v2376_v51  ;;  %1763 = vmatpush1.bf16.msra.mxu1 %v2377_v52  ;;  %v2468_v51 = vld [vmem:[%s2706_s21 + $0x368] ss:$16 sps:$4 sm:$0xff]   ;;  %v2473_v52 = vld [vmem:[%s2706_s21 + $0x384] ss:$16 sps:$4 sm:$0xff]  }
  0x45   : > { %1592 = vmatprep.subr.bf16.mxu0 %v2378_v53  ;;  %1764 = vmatprep.subr.bf16.mxu1 %v2380_v54  ;;  %v2476_v53 = vld [vmem:[%s2706_s21 + $0x38c] ss:$16 sps:$4 sm:$0xff]   ;;  %v2471_v54 = vld [vmem:[%s2706_s21 + $0x380] ss:$16 sps:$4 sm:$0xff]  }
  0x48   : > { %1593 = vmatpush1.bf16.msra.mxu0 %v2382_v55  ;;  %1765 = vmatpush1.bf16.msra.mxu1 %v2383_v56  ;;  %v2474_v55 = vld [vmem:[%s2706_s21 + $0x388] ss:$16 sps:$4 sm:$0xff]   ;;  %v2479_v56 = vld [vmem:[%s2706_s21 + $0x3a4] ss:$16 sps:$4 sm:$0xff]  }
  0x49   : > { %1594 = vmatprep.subr.bf16.mxu0 %v2384_v57  ;;  %1766 = vmatprep.subr.bf16.mxu1 %v2386_v58  ;;  %v2482_v57 = vld [vmem:[%s2706_s21 + $0x3ac] ss:$16 sps:$4 sm:$0xff]   ;;  %v2477_v58 = vld [vmem:[%s2706_s21 + $0x3a0] ss:$16 sps:$4 sm:$0xff]  }
  0x4c   : > { %1595 = vmatpush1.bf16.msra.mxu0 %v2388_v59  ;;  %1767 = vmatpush1.bf16.msra.mxu1 %v2389_v60  ;;  %v2480_v59 = vld [vmem:[%s2706_s21 + $0x3a8] ss:$16 sps:$4 sm:$0xff]   ;;  %v2485_v60 = vld [vmem:[%s2706_s21 + $0x3c4] ss:$16 sps:$4 sm:$0xff]  }
  0x4d   : > { %1596 = vmatprep.subr.bf16.mxu0 %v2390_v61  ;;  %1768 = vmatprep.subr.bf16.mxu1 %v2392_v62  ;;  %v2488_v61 = vld [vmem:[%s2706_s21 + $0x3cc] ss:$16 sps:$4 sm:$0xff]   ;;  %v2483_v62 = vld [vmem:[%s2706_s21 + $0x3c0] ss:$16 sps:$4 sm:$0xff]  }
  0x50   : > { %1597 = vmatpush1.bf16.msra.mxu0 %v2394_v63  ;;  %1769 = vmatpush1.bf16.msra.mxu1 %v2395_v0  ;;  %v2486_v63 = vld [vmem:[%s2706_s21 + $0x3c8] ss:$16 sps:$4 sm:$0xff]   ;;  %v2491_v0 = vld [vmem:[%s2706_s21 + $0x3e4] ss:$16 sps:$4 sm:$0xff]  }
  0x51   : > { %1609 = vmatprep.subr.bf16.mxu0 %v2401_v1  ;;  %1781 = vmatprep.subr.bf16.mxu1 %v2404_v2  ;;  %v2494_v1 = vld [vmem:[%s2706_s21 + $0x3ec] ss:$16 sps:$4 sm:$0xff]   ;;  %v2489_v2 = vld [vmem:[%s2706_s21 + $0x3e0] ss:$16 sps:$4 sm:$0xff]  }
  0x53   : > { %1599 = vmatmul.mubr.bf16.vlgmr.msra.gmra.mrb[0].mxu0 %v2396_v3  ;;  %1771 = vmatmul.mubr.bf16.vlgmr.msra.gmra.mrb[0].mxu1 %v2396_v3  ;;  %v2492_v3 = vld [vmem:[%s2706_s21 + $0x3e8] ss:$16 sps:$4 sm:$0xff]  }
  0x54   : > { %1610 = vmatpush1.bf16.msra.mxu0 %v2399_v4  ;;  %1782 = vmatpush1.bf16.msra.mxu1 %v2402_v5  ;;  %v2500_v4 = vld [vmem:[%s2706_s21 + $0x404] ss:$16 sps:$4 sm:$0xff]   ;;  %v2503_v5 = vld [vmem:[%s2706_s21 + $0x40c] ss:$16 sps:$4 sm:$0xff]  }
  0x55   : > { %1611 = vmatprep.subr.bf16.mxu0 %v2407_v6  ;;  %1783 = vmatprep.subr.bf16.mxu1 %v2410_v7  ;;  %v2495_v6 = vld [vmem:[%s2964_s0 + $0x8] ss:$28 sps:$4 sm:$0x1f]   ;;  %v2498_v7 = vld [vmem:[%s2706_s21 + $0x400] ss:$16 sps:$4 sm:$0xff]  }
  0x56   : > { %1641 = vmatprep.mubr.bf16.mxu0 %v2497_v28  ;;  %1813 = vmatprep.mubr.bf16.mxu1 %v2497_v28  ;;  %v435_v28 = vld [vmem:[%s2966_s2] sm:$0xff] }
  0x57   : > { %439 = vperm.xlu0 %2299, %v435_v28   ;;  %v2624_v28 = vld [vmem:[%s2706_s21 + $0x688] ss:$16 sps:$4 sm:$0xff]  }
  0x58   : > { %1612 = vmatpush1.bf16.msra.mxu0 %v2405_v8  ;;  %1784 = vmatpush1.bf16.msra.mxu1 %v2408_v9  ;;  %v2501_v8 = vld [vmem:[%s2706_s21 + $0x408] ss:$16 sps:$4 sm:$0xff]   ;;  %v2506_v9 = vld [vmem:[%s2706_s21 + $0x424] ss:$16 sps:$4 sm:$0xff]  }
  0x59   : > { %1613 = vmatprep.subr.bf16.mxu0 %v2413_v10  ;;  %1785 = vmatprep.subr.bf16.mxu1 %v2416_v11  ;;  %v2509_v10 = vld [vmem:[%s2706_s21 + $0x42c] ss:$16 sps:$4 sm:$0xff]   ;;  %v2596_v11 = vld [vmem:[%s2964_s0 + $0x14] ss:$28 sps:$4 sm:$0x1f]  }
  0x5c   : > { %1614 = vmatpush1.bf16.msra.mxu0 %v2411_v12  ;;  %1786 = vmatpush1.bf16.msra.mxu1 %v2414_v13  ;;  %v2504_v12 = vld [vmem:[%s2706_s21 + $0x420] ss:$16 sps:$4 sm:$0xff]   ;;  %v2507_v13 = vld [vmem:[%s2706_s21 + $0x428] ss:$16 sps:$4 sm:$0xff]  }
  0x5d   : > { %1615 = vmatprep.subr.bf16.mxu0 %v2419_v14  ;;  %1787 = vmatprep.subr.bf16.mxu1 %v2422_v15  ;;  %v2512_v14 = vld [vmem:[%s2706_s21 + $0x444] ss:$16 sps:$4 sm:$0xff]   ;;  %v2515_v15 = vld [vmem:[%s2706_s21 + $0x44c] ss:$16 sps:$4 sm:$0xff]  }
  0x60   : > { %1616 = vmatpush1.bf16.msra.mxu0 %v2417_v16  ;;  %1788 = vmatpush1.bf16.msra.mxu1 %v2420_v17  ;;  %v2510_v16 = vld [vmem:[%s2706_s21 + $0x440] ss:$16 sps:$4 sm:$0xff]   ;;  %v2513_v17 = vld [vmem:[%s2706_s21 + $0x448] ss:$16 sps:$4 sm:$0xff]  }
  0x61   : > { %1617 = vmatprep.subr.bf16.mxu0 %v2425_v18  ;;  %1789 = vmatprep.subr.bf16.mxu1 %v2428_v19  ;;  %v2518_v18 = vld [vmem:[%s2706_s21 + $0x464] ss:$16 sps:$4 sm:$0xff]   ;;  %v2521_v19 = vld [vmem:[%s2706_s21 + $0x46c] ss:$16 sps:$4 sm:$0xff]  }
  0x64   : > { %1618 = vmatpush1.bf16.msra.mxu0 %v2423_v20  ;;  %1790 = vmatpush1.bf16.msra.mxu1 %v2426_v21  ;;  %v2516_v20 = vld [vmem:[%s2706_s21 + $0x460] ss:$16 sps:$4 sm:$0xff]   ;;  %v2519_v21 = vld [vmem:[%s2706_s21 + $0x468] ss:$16 sps:$4 sm:$0xff]  }
  0x65   : > { %1619 = vmatprep.subr.bf16.mxu0 %v2431_v22  ;;  %1791 = vmatprep.subr.bf16.mxu1 %v2434_v23  ;;  %v2524_v22 = vld [vmem:[%s2706_s21 + $0x484] ss:$16 sps:$4 sm:$0xff]   ;;  %v2527_v23 = vld [vmem:[%s2706_s21 + $0x48c] ss:$16 sps:$4 sm:$0xff]  }
  0x68   : > { %1620 = vmatpush1.bf16.msra.mxu0 %v2429_v24  ;;  %1792 = vmatpush1.bf16.msra.mxu1 %v2432_v25  ;;  %v2522_v24 = vld [vmem:[%s2706_s21 + $0x480] ss:$16 sps:$4 sm:$0xff]   ;;  %v2525_v25 = vld [vmem:[%s2706_s21 + $0x488] ss:$16 sps:$4 sm:$0xff]  }
  0x69   : > { %1621 = vmatprep.subr.bf16.mxu0 %v2437_v26  ;;  %1793 = vmatprep.subr.bf16.mxu1 %v2440_v27  ;;  %v2530_v26 = vld [vmem:[%s2706_s21 + $0x4a4] ss:$16 sps:$4 sm:$0xff]   ;;  %v2533_v27 = vld [vmem:[%s2706_s21 + $0x4ac] ss:$16 sps:$4 sm:$0xff]  }
  0x6c   : > { %1622 = vmatpush1.bf16.msra.mxu0 %v2435_v29  ;;  %1794 = vmatpush1.bf16.msra.mxu1 %v2438_v30  ;;  %v436_v29 = vld [vmem:[%s2966_s2 + $0x8] sm:$0x1]  ;;  %v2528_v30 = vld [vmem:[%s2706_s21 + $0x4a0] ss:$16 sps:$4 sm:$0xff]  }
  0x6d   : > { %1623 = vmatprep.subr.bf16.mxu0 %v2443_v31  ;;  %1795 = vmatprep.subr.bf16.mxu1 %v2446_v32  ;;  %v2531_v31 = vld [vmem:[%s2706_s21 + $0x4a8] ss:$16 sps:$4 sm:$0xff]   ;;  %v2536_v32 = vld [vmem:[%s2706_s21 + $0x4c4] ss:$16 sps:$4 sm:$0xff]  }
  0x6e   : > { %444 = vperm.xlu0 %2299, %v436_v29   ;;  %v2629_v29 = vld [vmem:[%s2706_s21 + $0x6a4] ss:$16 sps:$4 sm:$0xff]  }
  0x70   : > { %1624 = vmatpush1.bf16.msra.mxu0 %v2441_v34  ;;  %1796 = vmatpush1.bf16.msra.mxu1 %v2444_v35  ;;  %v2539_v34 = vld [vmem:[%s2706_s21 + $0x4cc] ss:$16 sps:$4 sm:$0xff]   ;;  %v2534_v35 = vld [vmem:[%s2706_s21 + $0x4c0] ss:$16 sps:$4 sm:$0xff]  }
  0x71   : > { %1625 = vmatprep.subr.bf16.mxu0 %v2449_v36  ;;  %1797 = vmatprep.subr.bf16.mxu1 %v2452_v37  ;;  %v2537_v36 = vld [vmem:[%s2706_s21 + $0x4c8] ss:$16 sps:$4 sm:$0xff]   ;;  %v2542_v37 = vld [vmem:[%s2706_s21 + $0x4e4] ss:$16 sps:$4 sm:$0xff]  }
  0x74   : > { %1626 = vmatpush1.bf16.msra.mxu0 %v2447_v38  ;;  %1798 = vmatpush1.bf16.msra.mxu1 %v2450_v39  ;;  %v2545_v38 = vld [vmem:[%s2706_s21 + $0x4ec] ss:$16 sps:$4 sm:$0xff]   ;;  %v2540_v39 = vld [vmem:[%s2706_s21 + $0x4e0] ss:$16 sps:$4 sm:$0xff]  }
  0x75   : > { %1627 = vmatprep.subr.bf16.mxu0 %v2455_v40  ;;  %1799 = vmatprep.subr.bf16.mxu1 %v2458_v41  ;;  %v2543_v40 = vld [vmem:[%s2706_s21 + $0x4e8] ss:$16 sps:$4 sm:$0xff]   ;;  %v2548_v41 = vld [vmem:[%s2706_s21 + $0x504] ss:$16 sps:$4 sm:$0xff]  }
  0x78   : > { %1628 = vmatpush1.bf16.msra.mxu0 %v2453_v42  ;;  %1800 = vmatpush1.bf16.msra.mxu1 %v2456_v43  ;;  %v2551_v42 = vld [vmem:[%s2706_s21 + $0x50c] ss:$16 sps:$4 sm:$0xff]   ;;  %v2546_v43 = vld [vmem:[%s2706_s21 + $0x500] ss:$16 sps:$4 sm:$0xff]  }
  0x79   : > { %1629 = vmatprep.subr.bf16.mxu0 %v2461_v44  ;;  %1801 = vmatprep.subr.bf16.mxu1 %v2464_v45  ;;  %v2549_v44 = vld [vmem:[%s2706_s21 + $0x508] ss:$16 sps:$4 sm:$0xff]   ;;  %v2554_v45 = vld [vmem:[%s2706_s21 + $0x524] ss:$16 sps:$4 sm:$0xff]  }
  0x7c   : > { %1630 = vmatpush1.bf16.msra.mxu0 %v2459_v46  ;;  %1802 = vmatpush1.bf16.msra.mxu1 %v2462_v47  ;;  %v2557_v46 = vld [vmem:[%s2706_s21 + $0x52c] ss:$16 sps:$4 sm:$0xff]   ;;  %v2552_v47 = vld [vmem:[%s2706_s21 + $0x520] ss:$16 sps:$4 sm:$0xff]  }
  0x7d   : > { %1631 = vmatprep.subr.bf16.mxu0 %v2467_v48  ;;  %1803 = vmatprep.subr.bf16.mxu1 %v2470_v49  ;;  %v2555_v48 = vld [vmem:[%s2706_s21 + $0x528] ss:$16 sps:$4 sm:$0xff]   ;;  %v2560_v49 = vld [vmem:[%s2706_s21 + $0x544] ss:$16 sps:$4 sm:$0xff]  }
  0x80   : > { %1632 = vmatpush1.bf16.msra.mxu0 %v2465_v50  ;;  %1804 = vmatpush1.bf16.msra.mxu1 %v2468_v51  ;;  %v2563_v50 = vld [vmem:[%s2706_s21 + $0x54c] ss:$16 sps:$4 sm:$0xff]   ;;  %v2558_v51 = vld [vmem:[%s2706_s21 + $0x540] ss:$16 sps:$4 sm:$0xff]  }
  0x81   : > { %1633 = vmatprep.subr.bf16.mxu0 %v2473_v52  ;;  %1805 = vmatprep.subr.bf16.mxu1 %v2476_v53  ;;  %v2561_v52 = vld [vmem:[%s2706_s21 + $0x548] ss:$16 sps:$4 sm:$0xff]   ;;  %v2566_v53 = vld [vmem:[%s2706_s21 + $0x564] ss:$16 sps:$4 sm:$0xff]  }
  0x84   : > { %1634 = vmatpush1.bf16.msra.mxu0 %v2471_v54  ;;  %1806 = vmatpush1.bf16.msra.mxu1 %v2474_v55  ;;  %v2569_v54 = vld [vmem:[%s2706_s21 + $0x56c] ss:$16 sps:$4 sm:$0xff]   ;;  %v2564_v55 = vld [vmem:[%s2706_s21 + $0x560] ss:$16 sps:$4 sm:$0xff]  }
  0x85   : > { %1635 = vmatprep.subr.bf16.mxu0 %v2479_v56  ;;  %1807 = vmatprep.subr.bf16.mxu1 %v2482_v57  ;;  %v2567_v56 = vld [vmem:[%s2706_s21 + $0x568] ss:$16 sps:$4 sm:$0xff]   ;;  %v2572_v57 = vld [vmem:[%s2706_s21 + $0x584] ss:$16 sps:$4 sm:$0xff]  }
  0x88   : > { %1636 = vmatpush1.bf16.msra.mxu0 %v2477_v58  ;;  %1808 = vmatpush1.bf16.msra.mxu1 %v2480_v59  ;;  %v2575_v58 = vld [vmem:[%s2706_s21 + $0x58c] ss:$16 sps:$4 sm:$0xff]   ;;  %v2570_v59 = vld [vmem:[%s2706_s21 + $0x580] ss:$16 sps:$4 sm:$0xff]  }
  0x89   : > { %1637 = vmatprep.subr.bf16.mxu0 %v2485_v60  ;;  %1809 = vmatprep.subr.bf16.mxu1 %v2488_v61  ;;  %v2573_v60 = vld [vmem:[%s2706_s21 + $0x588] ss:$16 sps:$4 sm:$0xff]   ;;  %v2578_v61 = vld [vmem:[%s2706_s21 + $0x5a4] ss:$16 sps:$4 sm:$0xff]  }
  0x8c   : > { %1638 = vmatpush1.bf16.msra.mxu0 %v2483_v62  ;;  %1810 = vmatpush1.bf16.msra.mxu1 %v2486_v63  ;;  %v2581_v62 = vld [vmem:[%s2706_s21 + $0x5ac] ss:$16 sps:$4 sm:$0xff]   ;;  %v2576_v63 = vld [vmem:[%s2706_s21 + $0x5a0] ss:$16 sps:$4 sm:$0xff]  }
  0x8d   : > { %1639 = vmatprep.subr.bf16.mxu0 %v2491_v0  ;;  %1811 = vmatprep.subr.bf16.mxu1 %v2494_v1  ;;  %v2579_v0 = vld [vmem:[%s2706_s21 + $0x5a8] ss:$16 sps:$4 sm:$0xff]   ;;  %v2584_v1 = vld [vmem:[%s2706_s21 + $0x5c4] ss:$16 sps:$4 sm:$0xff]  }
  0x90   : > { %1640 = vmatpush1.bf16.msra.mxu0 %v2489_v2  ;;  %1812 = vmatpush1.bf16.msra.mxu1 %v2492_v3  ;;  %v2587_v2 = vld [vmem:[%s2706_s21 + $0x5cc] ss:$16 sps:$4 sm:$0xff]   ;;  %v2582_v3 = vld [vmem:[%s2706_s21 + $0x5c0] ss:$16 sps:$4 sm:$0xff]  }
  0x91   : > { %1652 = vmatprep.subr.bf16.mxu0 %v2500_v4  ;;  %1824 = vmatprep.subr.bf16.mxu1 %v2503_v5  ;;  %v2585_v4 = vld [vmem:[%s2706_s21 + $0x5c8] ss:$16 sps:$4 sm:$0xff]   ;;  %v2590_v5 = vld [vmem:[%s2706_s21 + $0x5e4] ss:$16 sps:$4 sm:$0xff]  }
  0x93   : > { %1642 = vmatmul.mubr.bf16.vlgmr.msra.gmra.mrb[0].mxu0 %v2495_v6  ;;  %1814 = vmatmul.mubr.bf16.vlgmr.msra.gmra.mrb[0].mxu1 %v2495_v6  ;;  %v2593_v6 = vld [vmem:[%s2706_s21 + $0x5ec] ss:$16 sps:$4 sm:$0xff]  }
  0x94   : > { %1653 = vmatpush1.bf16.msra.mxu0 %v2498_v7  ;;  %1825 = vmatpush1.bf16.msra.mxu1 %v2501_v8  ;;  %v2588_v7 = vld [vmem:[%s2706_s21 + $0x5e0] ss:$16 sps:$4 sm:$0xff]   ;;  %v2591_v8 = vld [vmem:[%s2706_s21 + $0x5e8] ss:$16 sps:$4 sm:$0xff]  }
  0x95   : > { %1654 = vmatprep.subr.bf16.mxu0 %v2506_v9  ;;  %1826 = vmatprep.subr.bf16.mxu1 %v2509_v10  ;;  %v2599_v9 = vld [vmem:[%s2706_s21 + $0x604] ss:$16 sps:$4 sm:$0xff]   ;;  %v2602_v10 = vld [vmem:[%s2706_s21 + $0x60c] ss:$16 sps:$4 sm:$0xff]  }
  0x96   : > { %1684 = vmatprep.mubr.bf16.mxu0 %v2596_v11  ;;  %1856 = vmatprep.mubr.bf16.mxu1 %v2596_v11  ;;  %v2594_v11 = vld [vmem:[%s2964_s0 + $0x10] ss:$28 sps:$4 sm:$0x1f]  }
  0x98   : > { %1655 = vmatpush1.bf16.msra.mxu0 %v2504_v12  ;;  %1827 = vmatpush1.bf16.msra.mxu1 %v2507_v13  ;;  %v2597_v12 = vld [vmem:[%s2706_s21 + $0x600] ss:$16 sps:$4 sm:$0xff]   ;;  %v2600_v13 = vld [vmem:[%s2706_s21 + $0x608] ss:$16 sps:$4 sm:$0xff]  }
  0x99   : > { %1656 = vmatprep.subr.bf16.mxu0 %v2512_v14  ;;  %1828 = vmatprep.subr.bf16.mxu1 %v2515_v15  ;;  %v2605_v14 = vld [vmem:[%s2706_s21 + $0x624] ss:$16 sps:$4 sm:$0xff]   ;;  %v2608_v15 = vld [vmem:[%s2706_s21 + $0x62c] ss:$16 sps:$4 sm:$0xff]  }
  0x9c   : > { %1657 = vmatpush1.bf16.msra.mxu0 %v2510_v16  ;;  %1829 = vmatpush1.bf16.msra.mxu1 %v2513_v17  ;;  %v2603_v16 = vld [vmem:[%s2706_s21 + $0x620] ss:$16 sps:$4 sm:$0xff]   ;;  %v2606_v17 = vld [vmem:[%s2706_s21 + $0x628] ss:$16 sps:$4 sm:$0xff]  }
  0x9d   : > { %1658 = vmatprep.subr.bf16.mxu0 %v2518_v18  ;;  %1830 = vmatprep.subr.bf16.mxu1 %v2521_v19  ;;  %v2611_v18 = vld [vmem:[%s2706_s21 + $0x644] ss:$16 sps:$4 sm:$0xff]   ;;  %v2614_v19 = vld [vmem:[%s2706_s21 + $0x64c] ss:$16 sps:$4 sm:$0xff]  }
  0xa0   : > { %1659 = vmatpush1.bf16.msra.mxu0 %v2516_v20  ;;  %1831 = vmatpush1.bf16.msra.mxu1 %v2519_v21  ;;  %v2609_v20 = vld [vmem:[%s2706_s21 + $0x640] ss:$16 sps:$4 sm:$0xff]   ;;  %v2612_v21 = vld [vmem:[%s2706_s21 + $0x648] ss:$16 sps:$4 sm:$0xff]  }
  0xa1   : > { %1660 = vmatprep.subr.bf16.mxu0 %v2524_v22  ;;  %1832 = vmatprep.subr.bf16.mxu1 %v2527_v23  ;;  %v2617_v22 = vld [vmem:[%s2706_s21 + $0x664] ss:$16 sps:$4 sm:$0xff]   ;;  %v2620_v23 = vld [vmem:[%s2706_s21 + $0x66c] ss:$16 sps:$4 sm:$0xff]  }
  0xa4   : > { %1661 = vmatpush1.bf16.msra.mxu0 %v2522_v24  ;;  %1833 = vmatpush1.bf16.msra.mxu1 %v2525_v25  ;;  %v2615_v24 = vld [vmem:[%s2706_s21 + $0x660] ss:$16 sps:$4 sm:$0xff]   ;;  %v2618_v25 = vld [vmem:[%s2706_s21 + $0x668] ss:$16 sps:$4 sm:$0xff]  }
  0xa5   : > { %1662 = vmatprep.subr.bf16.mxu0 %v2530_v26  ;;  %1834 = vmatprep.subr.bf16.mxu1 %v2533_v27  ;;  %v2626_v26 = vld [vmem:[%s2706_s21 + $0x68c] ss:$16 sps:$4 sm:$0xff]   ;;  %v2621_v27 = vld [vmem:[%s2706_s21 + $0x680] ss:$16 sps:$4 sm:$0xff]  }
  0xa8   : > { %1663 = vmatpush1.bf16.msra.mxu0 %v2528_v30  ;;  %1835 = vmatpush1.bf16.msra.mxu1 %v2531_v31  ;;  %v2632_v30 = vld [vmem:[%s2706_s21 + $0x6ac] ss:$16 sps:$4 sm:$0xff]   ;;  %v2627_v31 = vld [vmem:[%s2706_s21 + $0x6a0] ss:$16 sps:$4 sm:$0xff]  }
  0xa9   : > { %1664 = vmatprep.subr.bf16.mxu0 %v2536_v32  ;;  %1836 = vmatprep.subr.bf16.mxu1 %v2539_v34  ;;  %v2630_v32 = vld [vmem:[%s2706_s21 + $0x6a8] ss:$16 sps:$4 sm:$0xff]  }
  0xaa   : > { %v2633_v34 = vld [vmem:[%s2964_s0 + $0x18] ss:$28 sps:$4 sm:$0x1f]  }
  0xac   : > { %1665 = vmatpush1.bf16.msra.mxu0 %v2534_v35  ;;  %1837 = vmatpush1.bf16.msra.mxu1 %v2537_v36 }
  0xad   : > { %1666 = vmatprep.subr.bf16.mxu0 %v2542_v37  ;;  %1838 = vmatprep.subr.bf16.mxu1 %v2545_v38 }
  0xb0   : > { %1667 = vmatpush1.bf16.msra.mxu0 %v2540_v39  ;;  %1839 = vmatpush1.bf16.msra.mxu1 %v2543_v40 }
  0xb1   : > { %1668 = vmatprep.subr.bf16.mxu0 %v2548_v41  ;;  %1840 = vmatprep.subr.bf16.mxu1 %v2551_v42 }
  0xb4   : > { %1669 = vmatpush1.bf16.msra.mxu0 %v2546_v43  ;;  %1841 = vmatpush1.bf16.msra.mxu1 %v2549_v44 }
  0xb5   : > { %1670 = vmatprep.subr.bf16.mxu0 %v2554_v45  ;;  %1842 = vmatprep.subr.bf16.mxu1 %v2557_v46 }
  0xb8   : > { %1671 = vmatpush1.bf16.msra.mxu0 %v2552_v47  ;;  %1843 = vmatpush1.bf16.msra.mxu1 %v2555_v48 }
  0xb9   : > { %1672 = vmatprep.subr.bf16.mxu0 %v2560_v49  ;;  %1844 = vmatprep.subr.bf16.mxu1 %v2563_v50 }
  0xbc   : > { %1673 = vmatpush1.bf16.msra.mxu0 %v2558_v51  ;;  %1845 = vmatpush1.bf16.msra.mxu1 %v2561_v52 }
  0xbd   : > { %1674 = vmatprep.subr.bf16.mxu0 %v2566_v53  ;;  %1846 = vmatprep.subr.bf16.mxu1 %v2569_v54 }
  0xc0   : > { %1675 = vmatpush1.bf16.msra.mxu0 %v2564_v55  ;;  %1847 = vmatpush1.bf16.msra.mxu1 %v2567_v56 }
  0xc1   : > { %1676 = vmatprep.subr.bf16.mxu0 %v2572_v57  ;;  %1848 = vmatprep.subr.bf16.mxu1 %v2575_v58 }
  0xc4   : > { %1677 = vmatpush1.bf16.msra.mxu0 %v2570_v59  ;;  %1849 = vmatpush1.bf16.msra.mxu1 %v2573_v60 }
  0xc5   : > { %1678 = vmatprep.subr.bf16.mxu0 %v2578_v61  ;;  %1850 = vmatprep.subr.bf16.mxu1 %v2581_v62 }
  0xc8   : > { %1679 = vmatpush1.bf16.msra.mxu0 %v2576_v63  ;;  %1851 = vmatpush1.bf16.msra.mxu1 %v2579_v0 }
  0xc9   : > { %1680 = vmatprep.subr.bf16.mxu0 %v2584_v1  ;;  %1852 = vmatprep.subr.bf16.mxu1 %v2587_v2 }
  0xcc   : > { %1681 = vmatpush1.bf16.msra.mxu0 %v2582_v3  ;;  %1853 = vmatpush1.bf16.msra.mxu1 %v2585_v4 }
  0xcd   : > { %1682 = vmatprep.subr.bf16.mxu0 %v2590_v5  ;;  %1854 = vmatprep.subr.bf16.mxu1 %v2593_v6 }
  0xd0   : > { %1683 = vmatpush1.bf16.msra.mxu0 %v2588_v7  ;;  %1855 = vmatpush1.bf16.msra.mxu1 %v2591_v8 }
  0xd1   : > { %1695 = vmatprep.subr.bf16.mxu0 %v2599_v9  ;;  %1867 = vmatprep.subr.bf16.mxu1 %v2602_v10 }
  0xd3   : > { %1685 = vmatmul.mubr.bf16.vlgmr.msra.gmra.mrb[0].mxu0 %v2594_v11  ;;  %1857 = vmatmul.mubr.bf16.vlgmr.msra.gmra.mrb[0].mxu1 %v2594_v11 }
  0xd4   : > { %1696 = vmatpush1.bf16.msra.mxu0 %v2597_v12  ;;  %1868 = vmatpush1.bf16.msra.mxu1 %v2600_v13 }
  0xd5   : > { %1697 = vmatprep.subr.bf16.mxu0 %v2605_v14  ;;  %1869 = vmatprep.subr.bf16.mxu1 %v2608_v15 }
  0xd6   : > { %1727 = vmatprep.mubr.bf16.mxu0 %v2658_v33  ;;  %1899 = vmatprep.mubr.bf16.mxu1 %v2658_v33  ;;  %v2623_v33 = vld [vmem:[%s2706_s21 + $0x684] ss:$16 sps:$4 sm:$0xff]   ;;  %v440_v35 = vpop.permute.xlu0 %439 }
  0xd8   : > { %1698 = vmatpush1.bf16.msra.mxu0 %v2603_v16  ;;  %1870 = vmatpush1.bf16.msra.mxu1 %v2606_v17 }
  0xd9   : > { %1699 = vmatprep.subr.bf16.mxu0 %v2611_v18  ;;  %1871 = vmatprep.subr.bf16.mxu1 %v2614_v19 }
  0xdc   : > { %1700 = vmatpush1.bf16.msra.mxu0 %v2609_v20  ;;  %1872 = vmatpush1.bf16.msra.mxu1 %v2612_v21 }
  0xdd   : > { %1701 = vmatprep.subr.bf16.mxu0 %v2617_v22  ;;  %1873 = vmatprep.subr.bf16.mxu1 %v2620_v23 }
  0xe0   : > { %1702 = vmatpush1.bf16.msra.mxu0 %v2615_v24  ;;  %1874 = vmatpush1.bf16.msra.mxu1 %v2618_v25 }
  0xe1   : > { %1703 = vmatprep.subr.bf16.mxu0 %v2623_v33  ;;  %1875 = vmatprep.subr.bf16.mxu1 %v2626_v26 }
  0xe4   : > { %1704 = vmatpush1.bf16.msra.mxu0 %v2621_v27  ;;  %1876 = vmatpush1.bf16.msra.mxu1 %v2624_v28 }
  0xe5   : > { %1705 = vmatprep.subr.bf16.mxu0 %v2629_v29  ;;  %1877 = vmatprep.subr.bf16.mxu1 %v2632_v30 }
  0xe8   : > { %1706 = vmatpush1.bf16.msra.mxu0 %v2627_v31  ;;  %1878 = vmatpush1.bf16.msra.mxu1 %v2630_v32 }
  0xeb   : > { %2236 = vmatmul.mubr.msk.bf16.vlgmr.msra.gmra.mrb[0].mxu0 %vm1562_vm0, %v2633_v34  ;;  %2237 = vmatmul.mubr.msk.bf16.vlgmr.msra.gmra.mrb[0].mxu1 %vm1562_vm0, %v2633_v34 }
  0xed   : > { %v445_v36 = vpop.permute.xlu0 %444 }
 0x1be   : > { %v1729_v37 = vpop.f32.mrb[0].mxu0  ;;  %v1901_v38 = vpop.f32.mrb[0].mxu1 }
 0x1bf   : > { %v2241_v39 = vadd.f32 %v1729_v37, %v440_v35  ;;  %v2245_v40 = vadd.f32 %v1901_v38, %v440_v35  ;;  %v1731_v41 = vpop.f32.mrb[1].mxu0  ;;  %v1903_v42 = vpop.f32.mrb[1].mxu1 }
 0x1c0   : > { %v2242_v43 = vadd.f32 %v1731_v41, %v440_v35  ;;  %v2246_v44 = vadd.f32 %v1903_v42, %v440_v35  ;;  %v1733_v45 = vpop.f32.mrb[2].mxu0  ;;  %v1905_v46 = vpop.f32.mrb[2].mxu1 }
 0x1c1   : > { %1910 = vst [vmem:[%s208_s18] sm:$0xff] %v2241_v39  ;;  %1912 = vst [vmem:[%s208_s18 + $0x10] sm:$0xff] %v2245_v40  ;;  %v2243_v47 = vadd.f32 %v1733_v45, %v445_v36  ;;  %v2247_v48 = vadd.f32 %v1905_v46, %v445_v36  ;;  %v1735_v49 = vpop.f32.mrb[3].mxu0  ;;  %v1907_v50 = vpop.f32.mrb[3].mxu1 }
 0x1c2   : > { %1911 = vst [vmem:[%s208_s18 + $0x8] sm:$0xff] %v2242_v43  ;;  %1913 = vst [vmem:[%s208_s18 + $0x18] sm:$0xff] %v2246_v44  ;;  %v2244_v51 = vadd.f32 %v1735_v49, %v445_v36  ;;  %v2248_v52 = vadd.f32 %v1907_v50, %v445_v36 }
 0x1c3   : > { %1914 = vst [vmem:[%s208_s18 + $0x20] sm:$0x1] %v2243_v47  ;;  %1916 = vst [vmem:[%s208_s18 + $0x30] sm:$0x1] %v2247_v48 }
 0x1c4   : > { %1915 = vst [vmem:[%s208_s18 + $0x28] sm:$0x1] %v2244_v51  ;;  %1917 = vst [vmem:[%s208_s18 + $0x38] sm:$0x1] %v2248_v52 }
 0x1c5 PF: > { %s13_s14 = sadd.s32 1, %s2656_s14   ;;  %s2968_s12 = smov %s2652_s13 }
 0x1c6   : > { %p10_p5 = scmp.ge.s32.totalorder %s13_s14, 4   ;;  %s2969_s13 = smov %s2971_s15 }
 0x1c8   :  { %12 = sbr.rel (!%p10_p5) target bundleno = 2 (0x2), region = 62 }

// kernel: model_forward.10
= control target key start
LH: loop header
LB: loop body
LE: loop exit
PB: predicated region body
PF: predicated region fallthrough
CT: control target
= control target key end

     0   :  { %s602_s12 = smov 0   ;;  %s604_s13 = smov 0   ;;  %s662_s0 = inlined_call_operand.vmem [shape: f32[2,9,512], index: 0, kind: input, shape index: {}]   ;;  %s663_s1 = inlined_call_operand.vmem [shape: f32[9,1], index: 1, kind: input, shape index: {}]   ;;  %s664_s2 = inlined_call_operand.vmem [shape: f32[9,1], index: 2, kind: input, shape index: {}]   ;;  %s665_s3 = inlined_call_operand.vmem [shape: f32[2,9,512], index: 3, kind: output, shape index: {}]  }
   0x1   :  { %s606_s14 = smov 0  }
   0x2 LB: > { %s25_s15 = sadd.s32 1, %s575_s13  ;;  %p517_p0 = scmp.ge.s32.totalorder %s579_s14, 1  ;;  %s579_s14 = sphi %s606_s14, %s13_s14   ;;  %s575_s13 = sphi %s604_s13, %s667_s13   ;;  %s571_s12 = sphi %s602_s12, %s666_s12  }
   0x3   : > { %p27_p1 = scmp.ge.s32.totalorder %s25_s15, 2  ;;  %p181_p2 = scmp.lt.s32.totalorder %s579_s14, 3 }
   0x5   : > { %s669_s15 = smov (%p27_p1, %s25_s15), 0  ;;  %p182_p3 = pnand %p517_p0, %p181_p2 }
   0x6   : > { %p226_p4 = scmp.lt.s32.totalorder (!%p182_p3), %s571_s12, 1  ;;  %v330_v0 = vld [vmem:[%s663_s1 + $0x8] sm:$0x1] (!%p182_p3)  ;;  %v581_v1 = vmov (!%p182_p3), 0   ;;  %v349_v2 = vld [vmem:[%s664_s2] sm:$0xff] (!%p182_p3)  ;;  %vm272_vm0 = vcmask (!%p182_p3), 1040384  }
   0x7   : > { %185 = sbr.rel (%p182_p3) target bundleno = 354 (0x162), region = 32  ;;  %552 = vset.pattern.permute.xlu1 (!%p182_p3), %v581_v1  ;;  %551 = vset.pattern.permute.xlu0 (!%p182_p3), %v581_v1  ;;  %v329_v21 = vld [vmem:[%s663_s1] sm:$0xff] (!%p182_p3)  ;;  %v350_v52 = vld [vmem:[%s664_s2 + $0x8] sm:$0x1] (!%p182_p3) }
   0x8   : > { %338 = vperm.xlu1 (!%p182_p3), %552, %v330_v0  }
   0xc   : > { %353 = vperm.xlu1 (!%p182_p3), %552, %v349_v2  }
   0xe   : > { %s671_s12 = smov (!%p226_p4, %s571_s12), 1 }
   0xf   : > { %s524_s20 = sshll.u32 %s671_s12, 6 }
  0x10   : > { %s234_s23 = scalar_lea.vmem %s662_s0, %s524_s20  ;;  %s257_s30 = scalar_lea.vmem %s665_s3, %s524_s20 }
  0x11   : > { %v263_v3 = vld [vmem:[%s234_s23 + $0x20] sm:$0x1]  ;;  %v264_v4 = vld [vmem:[%s234_s23 + $0x28] sm:$0x1]  ;;  %v265_v5 = vld [vmem:[%s234_s23 + $0x30] sm:$0x1] }
  0x12   : > { %v266_v6 = vld [vmem:[%s234_s23 + $0x38] sm:$0x1]  ;;  %v273_v7 = vsel %vm272_vm0, %v263_v3, 0.0  ;;  %v274_v8 = vsel %vm272_vm0, %v264_v4, 0.0  ;;  %v276_v9 = vsel %vm272_vm0, %v265_v5, 0.0  ;;  %v259_v10 = vld [vmem:[%s234_s23] sm:$0xff] }
  0x13   : > { %v275_v11 = vadd.f32 %v274_v8, %v273_v7  ;;  %v260_v12 = vld [vmem:[%s234_s23 + $0x8] sm:$0xff]  ;;  %v261_v13 = vld [vmem:[%s234_s23 + $0x10] sm:$0xff]  ;;  %v278_v14 = vsel %vm272_vm0, %v266_v6, 0.0  ;;  %v262_v17 = vld [vmem:[%s234_s23 + $0x18] sm:$0xff] }
  0x14   : > { %v267_v15 = vadd.f32 %v260_v12, %v259_v10 }
  0x15   : > { %v277_v16 = vadd.f32 %v276_v9, %v275_v11 }
  0x16   : > { %v268_v18 = vadd.f32 %v267_v15, %v261_v13 }
  0x17   : > { %v279_v19 = vadd.f32 %v278_v14, %v277_v16 }
  0x18   : > { %v269_v20 = vadd.f32 %v268_v18, %v262_v17 }
  0x19   : > { %280 = vadd.xlane.f32.xlu0 %v279_v19 }
  0x1d   : > { %270 = vadd.xlane.f32.xlu0 %v269_v20 }
  0x33   : > { %333 = vperm.xlu0 %551, %v329_v21  }
  0x87   : > { %v339_v53 = vpop.permute.xlu1 %338 }
  0x8b   : > { %v354_v54 = vpop.permute.xlu1 %353 }
  0xa6   : > { %v281_v22 = vpop.xlane.xlu0 %280 }
  0xa7   : > { %v284_v23 = vmul.f32 0.001953125, %v281_v22 }
  0xa9   : > { %v289_v24 = vsub.f32 %v263_v3, %v284_v23  ;;  %v290_v25 = vsub.f32 %v264_v4, %v284_v23  ;;  %v291_v30 = vsub.f32 %v265_v5, %v284_v23  ;;  %v292_v39 = vsub.f32 %v266_v6, %v284_v23 }
  0xaa   : > { %v271_v26 = vpop.xlane.xlu0 %270 }
  0xab   : > { %v283_v27 = vmul.f32 0.001953125, %v271_v26  ;;  %v297_v28 = vmul.f32 %v289_v24, %v289_v24  ;;  %v298_v29 = vmul.f32 %v290_v25, %v290_v25  ;;  %v299_v40 = vmul.f32 %v291_v30, %v291_v30 }
  0xac   : > { %v300_v46 = vmul.f32 %v292_v39, %v292_v39 }
  0xad   : > { %v285_v31 = vsub.f32 %v259_v10, %v283_v27  ;;  %v286_v32 = vsub.f32 %v260_v12, %v283_v27  ;;  %v287_v33 = vsub.f32 %v261_v13, %v283_v27  ;;  %v306_v34 = vsel %vm272_vm0, %v297_v28, 0.0 }
  0xae   : > { %v307_v35 = vsel %vm272_vm0, %v298_v29, 0.0  ;;  %v288_v36 = vsub.f32 %v262_v17, %v283_v27  ;;  %v309_v47 = vsel %vm272_vm0, %v299_v40, 0.0  ;;  %v311_v50 = vsel %vm272_vm0, %v300_v46, 0.0 }
  0xaf   : > { %v293_v37 = vmul.f32 %v285_v31, %v285_v31  ;;  %v294_v38 = vmul.f32 %v286_v32, %v286_v32  ;;  %v295_v41 = vmul.f32 %v287_v33, %v287_v33  ;;  %v308_v43 = vadd.f32 %v307_v35, %v306_v34 }
  0xb0   : > { %v296_v44 = vmul.f32 %v288_v36, %v288_v36 }
  0xb1   : > { %v301_v42 = vadd.f32 %v294_v38, %v293_v37  ;;  %v310_v49 = vadd.f32 %v309_v47, %v308_v43 }
  0xb2   : > { %v334_v62 = vpop.permute.xlu0 %333 }
  0xb3   : > { %v302_v45 = vadd.f32 %v301_v42, %v295_v41  ;;  %v312_v51 = vadd.f32 %v311_v50, %v310_v49 }
  0xb5   : > { %v303_v48 = vadd.f32 %v302_v45, %v296_v44 }
  0xb7   : > { %304 = vadd.xlane.f32.xlu1 %v303_v48 }
  0xbb   : > { %313 = vadd.xlane.f32.xlu1 %v312_v51 }
  0xcc   : > { %358 = vperm.xlu1 %552, %v350_v52  }
 0x144   : > { %v305_v55 = vpop.xlane.xlu1 %304 }
 0x145   : > { %v315_v56 = vmul.f32 0.001953125, %v305_v55 }
 0x147   : > { %v317_v57 = vadd.f32 1e-05, %v315_v56 }
 0x148   : > { %v314_v58 = vpop.xlane.xlu1 %313 }
 0x149   : > { %553 = vrsqrt.f32 %v317_v57  ;;  %v316_v59 = vmul.f32 0.001953125, %v314_v58 }
 0x14b   : > { %v318_v60 = vadd.f32 1e-05, %v316_v59 }
 0x14c   : > { %v359_v20 = vpop.permute.xlu1 %358 }
 0x14d   : > { %555 = vrsqrt.f32 %v318_v60 }
 0x153   : > { %v554_v61 = vpop.eup %553 }
 0x154   : > { %v321_v63 = vmul.f32 %v554_v61, %v285_v31  ;;  %v322_v0 = vmul.f32 %v554_v61, %v286_v32  ;;  %v323_v1 = vmul.f32 %v554_v61, %v287_v33  ;;  %v324_v2 = vmul.f32 %v554_v61, %v288_v36 }
 0x156   : > { %v341_v3 = vmul.f32 %v334_v62, %v321_v63  ;;  %v342_v4 = vmul.f32 %v334_v62, %v322_v0  ;;  %v343_v5 = vmul.f32 %v334_v62, %v323_v1  ;;  %v344_v6 = vmul.f32 %v334_v62, %v324_v2 }
 0x157   : > { %v556_v7 = vpop.eup %555 }
 0x158   : > { %v325_v8 = vmul.f32 %v556_v7, %v289_v24  ;;  %v326_v9 = vmul.f32 %v556_v7, %v290_v25  ;;  %v327_v10 = vmul.f32 %v556_v7, %v291_v30  ;;  %v328_v11 = vmul.f32 %v556_v7, %v292_v39 }
 0x159   : > { %v361_v12 = vadd.f32 %v354_v54, %v341_v3  ;;  %v362_v13 = vadd.f32 %v354_v54, %v342_v4  ;;  %v363_v14 = vadd.f32 %v354_v54, %v343_v5  ;;  %v364_v15 = vadd.f32 %v354_v54, %v344_v6 }
 0x15a   : > { %v345_v16 = vmul.f32 %v339_v53, %v325_v8  ;;  %v346_v17 = vmul.f32 %v339_v53, %v326_v9  ;;  %v347_v18 = vmul.f32 %v339_v53, %v327_v10  ;;  %v348_v19 = vmul.f32 %v339_v53, %v328_v11 }
 0x15b   : > { %v369_v21 = vmax.f32 %v361_v12, 0.0  ;;  %v370_v22 = vmax.f32 %v362_v13, 0.0  ;;  %v371_v23 = vmax.f32 %v363_v14, 0.0  ;;  %v372_v24 = vmax.f32 %v364_v15, 0.0 }
 0x15c   : > { %v365_v25 = vadd.f32 %v359_v20, %v345_v16  ;;  %v366_v26 = vadd.f32 %v359_v20, %v346_v17  ;;  %v367_v27 = vadd.f32 %v359_v20, %v347_v18  ;;  %v368_v28 = vadd.f32 %v359_v20, %v348_v19 }
 0x15d   : > { %377 = vst [vmem:[%s257_s30] sm:$0xff] %v369_v21  ;;  %378 = vst [vmem:[%s257_s30 + $0x8] sm:$0xff] %v370_v22 }
 0x15e   : > { %379 = vst [vmem:[%s257_s30 + $0x10] sm:$0xff] %v371_v23  ;;  %380 = vst [vmem:[%s257_s30 + $0x18] sm:$0xff] %v372_v24  ;;  %v373_v29 = vmax.f32 %v365_v25, 0.0  ;;  %v374_v30 = vmax.f32 %v366_v26, 0.0  ;;  %v375_v31 = vmax.f32 %v367_v27, 0.0  ;;  %v376_v32 = vmax.f32 %v368_v28, 0.0 }
 0x160   : > { %381 = vst [vmem:[%s257_s30 + $0x20] sm:$0x1] %v373_v29  ;;  %382 = vst [vmem:[%s257_s30 + $0x28] sm:$0x1] %v374_v30 }
 0x161   : > { %383 = vst [vmem:[%s257_s30 + $0x30] sm:$0x1] %v375_v31  ;;  %384 = vst [vmem:[%s257_s30 + $0x38] sm:$0x1] %v376_v32 }
 0x162 PF: > { %s13_s14 = sadd.s32 1, %s579_s14   ;;  %s666_s12 = smov %s575_s13 }
 0x163   : > { %p10_p5 = scmp.ge.s32.totalorder %s13_s14, 4   ;;  %s667_s13 = smov %s669_s15 }
 0x165   :  { %12 = sbr.rel (!%p10_p5) target bundleno = 2 (0x2), region = 68 }

// kernel: model_forward.11
= control target key start
LH: loop header
LB: loop body
LE: loop exit
PB: predicated region body
PF: predicated region fallthrough
CT: control target
= control target key end

     0   :  { %s1061_s18 = smov 0   ;;  %s1388_s0 = inlined_call_operand.vmem [shape: f32[2,27,9,64], index: 0, kind: input, shape index: {}]   ;;  %s1389_s1 = inlined_call_operand.vmem [shape: f32[27,9,1], index: 1, kind: input, shape index: {}]   ;;  %s1390_s2 = inlined_call_operand.vmem [shape: f32[9,1], index: 2, kind: input, shape index: {}, may-alias: {2,4}]   ;;  %s1391_s3 = inlined_call_operand.vmem [shape: f32[9,1], index: 3, kind: input, shape index: {}]   ;;  %s1392_s4 = inlined_call_operand.vmem [shape: f32[9,1], index: 4, kind: input, shape index: {}, may-alias: {2,4}]   ;;  %s1393_s5 = inlined_call_operand.vmem [shape: f32[2,9,64], index: 5, kind: output, shape index: {}]  }
   0x1 LB: > { %s891_s19 = sadd.s32 4294967295, %s1028_s18   ;;  %p895_p0 = scmp.ge.s32.totalorder %s1028_s18, 1  ;;  %s1028_s18 = sphi %s1061_s18, %s15_s18  }
   0x2   : > { %p187_p1 = scmp.lt.s32.totalorder %s1028_s18, 3 }
   0x4   : > { %p188_p2 = pnand %p895_p0, %p187_p1 }
   0x5   : > { %v901_v0 = vld [vmem:[%s1389_s1 + $0x10] sm:$0xff] (!%p188_p2)  ;;  %v227_v1 = vld [vmem:[%s1389_s1] sm:$0xff] (!%p188_p2)  ;;  %v1030_v2 = vmov (!%p188_p2), 0   ;;  %v902_v3 = vld [vmem:[%s1389_s1 + $0x18] sm:$0x1] (!%p188_p2)  ;;  %p215_p3 = scmp.lt.s32.totalorder (!%p188_p2), %s891_s19, 1 }
   0x6   : > { %191 = sbr.rel (%p188_p2) target bundleno = 565 (0x235), region = 40  ;;  %1017 = vset.pattern.permute.xlu1 (!%p188_p2), %v1030_v2  ;;  %1016 = vset.pattern.permute.xlu0 (!%p188_p2), %v1030_v2  ;;  %v228_v4 = vld [vmem:[%s1389_s1 + $0x8] sm:$0x1] (!%p188_p2)  ;;  %v905_v6 = vld [vmem:[%s1389_s1 + $0x20] sm:$0xff] (!%p188_p2)  ;;  %v910_v7 = vld [vmem:[%s1389_s1 + $0x38] sm:$0x1] (!%p188_p2) }
   0x7   : > { %249 = vperm.xlu1 (!%p188_p2), %1017, %v901_v0   ;;  %231 = vperm.xlu0 (!%p188_p2), %1016, %v227_v1   ;;  %v906_v5 = vld [vmem:[%s1389_s1 + $0x28] sm:$0x1] (!%p188_p2)  ;;  %v909_v8 = vld [vmem:[%s1389_s1 + $0x30] sm:$0xff] (!%p188_p2)  ;;  %v913_v10 = vld [vmem:[%s1389_s1 + $0x40] sm:$0xff] (!%p188_p2)  ;;  %vm779_vm0 = vcmask (!%p188_p2), 516096   ;;  %vm775_vm1 = vcmask (!%p188_p2), 523264  }
   0x8   : > { %v914_v9 = vld [vmem:[%s1389_s1 + $0x48] sm:$0x1] (!%p188_p2)  ;;  %v918_v11 = vld [vmem:[%s1389_s1 + $0x58] sm:$0x1] (!%p188_p2)  ;;  %v917_v12 = vld [vmem:[%s1389_s1 + $0x50] sm:$0xff] (!%p188_p2) }
   0x9   : > { %v922_v13 = vld [vmem:[%s1389_s1 + $0x68] sm:$0x1] (!%p188_p2)  ;;  %v921_v14 = vld [vmem:[%s1389_s1 + $0x60] sm:$0xff] (!%p188_p2)  ;;  %v926_v15 = vld [vmem:[%s1389_s1 + $0x78] sm:$0x1] (!%p188_p2) }
   0xa   : > { %v925_v16 = vld [vmem:[%s1389_s1 + $0x70] sm:$0xff] (!%p188_p2)  ;;  %v930_v17 = vld [vmem:[%s1389_s1 + $0x88] sm:$0x1] (!%p188_p2)  ;;  %v929_v18 = vld [vmem:[%s1389_s1 + $0x80] sm:$0xff] (!%p188_p2) }
   0xb   : > { %254 = vperm.xlu1 (!%p188_p2), %1017, %v902_v3   ;;  %236 = vperm.xlu0 (!%p188_p2), %1016, %v228_v4   ;;  %v934_v19 = vld [vmem:[%s1389_s1 + $0x98] sm:$0x1] (!%p188_p2)  ;;  %v933_v20 = vld [vmem:[%s1389_s1 + $0x90] sm:$0xff] (!%p188_p2)  ;;  %v938_v21 = vld [vmem:[%s1389_s1 + $0xa8] sm:$0x1] (!%p188_p2) }
   0xc   : > { %v937_v22 = vld [vmem:[%s1389_s1 + $0xa0] sm:$0xff] (!%p188_p2)  ;;  %v942_v23 = vld [vmem:[%s1389_s1 + $0xb8] sm:$0x1] (!%p188_p2)  ;;  %v941_v24 = vld [vmem:[%s1389_s1 + $0xb0] sm:$0xff] (!%p188_p2) }
   0xd   : > { %v946_v25 = vld [vmem:[%s1389_s1 + $0xc8] sm:$0x1]  ;;  %v945_v26 = vld [vmem:[%s1389_s1 + $0xc0] sm:$0xff]  ;;  %v950_v27 = vld [vmem:[%s1389_s1 + $0xd8] sm:$0x1]  ;;  %s1395_s19 = smov (!%p215_p3, %s891_s19), 1 }
   0xe   : > { %v949_v28 = vld [vmem:[%s1389_s1 + $0xd0] sm:$0xff]  ;;  %v954_v29 = vld [vmem:[%s1389_s1 + $0xe8] sm:$0x1]  ;;  %v953_v30 = vld [vmem:[%s1389_s1 + $0xe0] sm:$0xff]  ;;  %s1006_s15 = smul.u32 432, %s1395_s19  ;;  %s1005_s29 = sshll.u32 %s1395_s19, 4 }
   0xf   : > { %274 = vperm.xlu1 %1017, %v906_v5   ;;  %269 = vperm.xlu0 %1016, %v905_v6   ;;  %v958_v31 = vld [vmem:[%s1389_s1 + $0xf8] sm:$0x1]  ;;  %v957_v32 = vld [vmem:[%s1389_s1 + $0xf0] sm:$0xff]  ;;  %v962_v33 = vld [vmem:[%s1389_s1 + $0x108] sm:$0x1]  ;;  %s224_s7 = scalar_lea.vmem %s1393_s5, %s1005_s29 }
  0x10   : > { %v961_v34 = vld [vmem:[%s1389_s1 + $0x100] sm:$0xff]  ;;  %v966_v35 = vld [vmem:[%s1389_s1 + $0x118] sm:$0x1]  ;;  %v965_v36 = vld [vmem:[%s1389_s1 + $0x110] sm:$0xff]  ;;  %s1267_s20 = scalar_lea.vmem %s1388_s0, %s1006_s15 }
  0x11   : > { %v970_v37 = vld [vmem:[%s1389_s1 + $0x128] sm:$0x1]  ;;  %v969_v38 = vld [vmem:[%s1389_s1 + $0x120] sm:$0xff]  ;;  %v974_v39 = vld [vmem:[%s1389_s1 + $0x138] sm:$0x1] }
  0x12   : > { %v973_v40 = vld [vmem:[%s1389_s1 + $0x130] sm:$0xff]  ;;  %v978_v41 = vld [vmem:[%s1389_s1 + $0x148] sm:$0x1]  ;;  %v977_v42 = vld [vmem:[%s1389_s1 + $0x140] sm:$0xff] }
  0x13   : > { %294 = vperm.xlu1 %1017, %v910_v7   ;;  %289 = vperm.xlu0 %1016, %v909_v8   ;;  %v982_v43 = vld [vmem:[%s1389_s1 + $0x158] sm:$0x1]  ;;  %v981_v44 = vld [vmem:[%s1389_s1 + $0x150] sm:$0xff]  ;;  %v986_v45 = vld [vmem:[%s1389_s1 + $0x168] sm:$0x1] }
  0x14   : > { %v985_v46 = vld [vmem:[%s1389_s1 + $0x160] sm:$0xff]  ;;  %v990_v47 = vld [vmem:[%s1389_s1 + $0x178] sm:$0x1]  ;;  %v989_v48 = vld [vmem:[%s1389_s1 + $0x170] sm:$0xff] }
  0x15   : > { %v994_v49 = vld [vmem:[%s1389_s1 + $0x188] sm:$0x1]  ;;  %v993_v50 = vld [vmem:[%s1389_s1 + $0x180] sm:$0xff]  ;;  %v998_v51 = vld [vmem:[%s1389_s1 + $0x198] sm:$0x1] }
  0x16   : > { %v997_v52 = vld [vmem:[%s1389_s1 + $0x190] sm:$0xff]  ;;  %v1002_v53 = vld [vmem:[%s1389_s1 + $0x1a8] sm:$0x1]  ;;  %v1001_v54 = vld [vmem:[%s1389_s1 + $0x1a0] sm:$0xff] }
  0x17   : > { %314 = vperm.xlu1 %1017, %v914_v9   ;;  %309 = vperm.xlu0 %1016, %v913_v10   ;;  %v762_v55 = vld [vmem:[%s1390_s2 + $0x8] sm:$0x1]  ;;  %v761_v56 = vld [vmem:[%s1390_s2] sm:$0xff] }
  0x1b   : > { %334 = vperm.xlu1 %1017, %v918_v11   ;;  %329 = vperm.xlu0 %1016, %v917_v12  }
  0x1f   : > { %354 = vperm.xlu1 %1017, %v922_v13   ;;  %349 = vperm.xlu0 %1016, %v921_v14  }
  0x23   : > { %374 = vperm.xlu1 %1017, %v926_v15   ;;  %369 = vperm.xlu0 %1016, %v925_v16  }
  0x27   : > { %394 = vperm.xlu1 %1017, %v930_v17   ;;  %389 = vperm.xlu0 %1016, %v929_v18  }
  0x2b   : > { %414 = vperm.xlu1 %1017, %v934_v19   ;;  %409 = vperm.xlu0 %1016, %v933_v20   ;;  %v899_v19 = vld [vmem:[%s1267_s20 + $0x10] sm:$0xff]  ;;  %v225_v20 = vld [vmem:[%s1267_s20] sm:$0xff] }
  0x2f   : > { %434 = vperm.xlu1 %1017, %v938_v21   ;;  %429 = vperm.xlu0 %1016, %v937_v22   ;;  %v900_v21 = vld [vmem:[%s1267_s20 + $0x18] sm:$0x1]  ;;  %v226_v22 = vld [vmem:[%s1267_s20 + $0x8] sm:$0x1] }
  0x33   : > { %454 = vperm.xlu1 %1017, %v942_v23   ;;  %449 = vperm.xlu0 %1016, %v941_v24   ;;  %v904_v23 = vld [vmem:[%s1267_s20 + $0x28] sm:$0x1]  ;;  %v903_v24 = vld [vmem:[%s1267_s20 + $0x20] sm:$0xff] }
  0x37   : > { %474 = vperm.xlu1 %1017, %v946_v25   ;;  %469 = vperm.xlu0 %1016, %v945_v26  }
  0x3b   : > { %494 = vperm.xlu1 %1017, %v950_v27   ;;  %489 = vperm.xlu0 %1016, %v949_v28  }
  0x3f   : > { %514 = vperm.xlu1 %1017, %v954_v29   ;;  %509 = vperm.xlu0 %1016, %v953_v30  }
  0x43   : > { %534 = vperm.xlu1 %1017, %v958_v31   ;;  %529 = vperm.xlu0 %1016, %v957_v32   ;;  %v908_v31 = vld [vmem:[%s1267_s20 + $0x38] sm:$0x1]  ;;  %v907_v32 = vld [vmem:[%s1267_s20 + $0x30] sm:$0xff] }
  0x47   : > { %554 = vperm.xlu1 %1017, %v962_v33   ;;  %549 = vperm.xlu0 %1016, %v961_v34  }
  0x4b   : > { %574 = vperm.xlu1 %1017, %v966_v35   ;;  %569 = vperm.xlu0 %1016, %v965_v36   ;;  %v912_v35 = vld [vmem:[%s1267_s20 + $0x48] sm:$0x1]  ;;  %v911_v36 = vld [vmem:[%s1267_s20 + $0x40] sm:$0xff] }
  0x4f   : > { %594 = vperm.xlu1 %1017, %v970_v37   ;;  %589 = vperm.xlu0 %1016, %v969_v38  }
  0x53   : > { %614 = vperm.xlu1 %1017, %v974_v39   ;;  %609 = vperm.xlu0 %1016, %v973_v40  }
  0x57   : > { %634 = vperm.xlu1 %1017, %v978_v41   ;;  %629 = vperm.xlu0 %1016, %v977_v42  }
  0x5b   : > { %654 = vperm.xlu1 %1017, %v982_v43   ;;  %649 = vperm.xlu0 %1016, %v981_v44   ;;  %v916_v43 = vld [vmem:[%s1267_s20 + $0x58] sm:$0x1]  ;;  %v915_v44 = vld [vmem:[%s1267_s20 + $0x50] sm:$0xff] }
  0x5f   : > { %674 = vperm.xlu1 %1017, %v986_v45   ;;  %669 = vperm.xlu0 %1016, %v985_v46  }
  0x63   : > { %694 = vperm.xlu1 %1017, %v990_v47   ;;  %689 = vperm.xlu0 %1016, %v989_v48  }
  0x67   : > { %714 = vperm.xlu1 %1017, %v994_v49   ;;  %709 = vperm.xlu0 %1016, %v993_v50   ;;  %v920_v49 = vld [vmem:[%s1267_s20 + $0x68] sm:$0x1]  ;;  %v919_v50 = vld [vmem:[%s1267_s20 + $0x60] sm:$0xff] }
  0x6b   : > { %734 = vperm.xlu1 %1017, %v998_v51   ;;  %729 = vperm.xlu0 %1016, %v997_v52  }
  0x6f   : > { %754 = vperm.xlu1 %1017, %v1002_v53   ;;  %749 = vperm.xlu0 %1016, %v1001_v54  }
  0x73   : > { %770 = vperm.xlu1 %1017, %v762_v55   ;;  %765 = vperm.xlu0 %1016, %v761_v56  }
  0x86   : > { %v250_v57 = vpop.permute.xlu1 %249  ;;  %v232_v58 = vpop.permute.xlu0 %231 }
  0x87   : > { %v257_v27 = vmul.f32 %v899_v19, %v250_v57  ;;  %v239_v28 = vmul.f32 %v232_v58, %v225_v20  ;;  %v924_v57 = vld [vmem:[%s1267_s20 + $0x78] sm:$0x1]  ;;  %v923_v58 = vld [vmem:[%s1267_s20 + $0x70] sm:$0xff] }
  0x89   : > { %v259_v39 = vadd.f32 %v257_v27, %v239_v28  ;;  %v936_v27 = vld [vmem:[%s1267_s20 + $0xa8] sm:$0x1]  ;;  %v935_v28 = vld [vmem:[%s1267_s20 + $0xa0] sm:$0xff] }
  0x8a   : > { %v255_v59 = vpop.permute.xlu1 %254  ;;  %v237_v60 = vpop.permute.xlu0 %236 }
  0x8b   : > { %v258_v29 = vmul.f32 %v900_v21, %v255_v59  ;;  %v240_v30 = vmul.f32 %v237_v60, %v226_v22  ;;  %v932_v21 = vld [vmem:[%s1267_s20 + $0x98] sm:$0x1]  ;;  %v931_v22 = vld [vmem:[%s1267_s20 + $0x90] sm:$0xff] }
  0x8d   : > { %v260_v40 = vadd.f32 %v258_v29, %v240_v30 }
  0x8e   : > { %v275_v61 = vpop.permute.xlu1 %274  ;;  %v270_v62 = vpop.permute.xlu0 %269 }
  0x8f   : > { %v278_v33 = vmul.f32 %v904_v23, %v275_v61  ;;  %v277_v34 = vmul.f32 %v903_v24, %v270_v62 }
  0x91   : > { %v280_v45 = vadd.f32 %v278_v33, %v260_v40  ;;  %v279_v46 = vadd.f32 %v277_v34, %v259_v39  ;;  %v940_v33 = vld [vmem:[%s1267_s20 + $0xb8] sm:$0x1]  ;;  %v939_v34 = vld [vmem:[%s1267_s20 + $0xb0] sm:$0xff]  ;;  %v944_v39 = vld [vmem:[%s1267_s20 + $0xc8] sm:$0x1] }
  0x92   : > { %v295_v63 = vpop.permute.xlu1 %294  ;;  %v290_v0 = vpop.permute.xlu0 %289  ;;  %v943_v40 = vld [vmem:[%s1267_s20 + $0xc0] sm:$0xff] }
  0x93   : > { %v298_v41 = vmul.f32 %v908_v31, %v295_v63  ;;  %v297_v42 = vmul.f32 %v907_v32, %v290_v0  ;;  %v928_v63 = vld [vmem:[%s1267_s20 + $0x88] sm:$0x1]  ;;  %v927_v0 = vld [vmem:[%s1267_s20 + $0x80] sm:$0xff] }
  0x95   : > { %v300_v53 = vadd.f32 %v298_v41, %v280_v45  ;;  %v299_v54 = vadd.f32 %v297_v42, %v279_v46  ;;  %v948_v45 = vld [vmem:[%s1267_s20 + $0xd8] sm:$0x1]  ;;  %v947_v46 = vld [vmem:[%s1267_s20 + $0xd0] sm:$0xff] }
  0x96   : > { %v315_v1 = vpop.permute.xlu1 %314  ;;  %v310_v2 = vpop.permute.xlu0 %309 }
  0x97   : > { %v318_v47 = vmul.f32 %v912_v35, %v315_v1  ;;  %v317_v48 = vmul.f32 %v911_v36, %v310_v2 }
  0x99   : > { %v320_v59 = vadd.f32 %v318_v47, %v300_v53  ;;  %v319_v60 = vadd.f32 %v317_v48, %v299_v54 }
  0x9a   : > { %v335_v3 = vpop.permute.xlu1 %334  ;;  %v330_v4 = vpop.permute.xlu0 %329 }
  0x9b   : > { %v338_v55 = vmul.f32 %v916_v43, %v335_v3  ;;  %v337_v56 = vmul.f32 %v915_v44, %v330_v4 }
  0x9d   : > { %v340_v19 = vadd.f32 %v338_v55, %v320_v59  ;;  %v339_v20 = vadd.f32 %v337_v56, %v319_v60 }
  0x9e   : > { %v355_v5 = vpop.permute.xlu1 %354  ;;  %v350_v6 = vpop.permute.xlu0 %349 }
  0x9f   : > { %v358_v61 = vmul.f32 %v920_v49, %v355_v5  ;;  %v357_v62 = vmul.f32 %v919_v50, %v350_v6  ;;  %v952_v49 = vld [vmem:[%s1267_s20 + $0xe8] sm:$0x1]  ;;  %v951_v50 = vld [vmem:[%s1267_s20 + $0xe0] sm:$0xff] }
  0xa1   : > { %v360_v5 = vadd.f32 %v358_v61, %v340_v19  ;;  %v359_v23 = vadd.f32 %v357_v62, %v339_v20  ;;  %v960_v61 = vld [vmem:[%s1267_s20 + $0x108] sm:$0x1]  ;;  %v959_v62 = vld [vmem:[%s1267_s20 + $0x100] sm:$0xff] }
  0xa2   : > { %v1237_v7 = vpop.permute.xlu1 %374  ;;  %v1239_v8 = vpop.permute.xlu0 %369 }
  0xa3   : > { %v378_v3 = vmul.f32 %v924_v57, %v1237_v7  ;;  %v377_v4 = vmul.f32 %v923_v58, %v1239_v8  ;;  %v956_v57 = vld [vmem:[%s1267_s20 + $0xf8] sm:$0x1]  ;;  %v955_v58 = vld [vmem:[%s1267_s20 + $0xf0] sm:$0xff] }
  0xa5   : > { %v380_v31 = vadd.f32 %v378_v3, %v360_v5  ;;  %v379_v7 = vadd.f32 %v377_v4, %v359_v23  ;;  %v964_v3 = vld [vmem:[%s1267_s20 + $0x118] sm:$0x1]  ;;  %v963_v4 = vld [vmem:[%s1267_s20 + $0x110] sm:$0xff]  ;;  %v968_v5 = vld [vmem:[%s1267_s20 + $0x128] sm:$0x1] }
  0xa6   : > { %v1241_v9 = vpop.permute.xlu1 %394  ;;  %v1243_v10 = vpop.permute.xlu0 %389  ;;  %v967_v23 = vld [vmem:[%s1267_s20 + $0x120] sm:$0xff] }
  0xa7   : > { %v398_v6 = vmul.f32 %v928_v63, %v1241_v9  ;;  %v397_v24 = vmul.f32 %v927_v0, %v1243_v10 }
  0xa9   : > { %v400_v35 = vadd.f32 %v398_v6, %v380_v31  ;;  %v399_v9 = vadd.f32 %v397_v24, %v379_v7  ;;  %v972_v31 = vld [vmem:[%s1267_s20 + $0x138] sm:$0x1]  ;;  %v971_v7 = vld [vmem:[%s1267_s20 + $0x130] sm:$0xff] }
  0xaa   : > { %v1247_v11 = vpop.permute.xlu1 %414  ;;  %v1249_v12 = vpop.permute.xlu0 %409 }
  0xab   : > { %v418_v32 = vmul.f32 %v932_v21, %v1247_v11  ;;  %v417_v8 = vmul.f32 %v931_v22, %v1249_v12 }
  0xad   : > { %v420_v43 = vadd.f32 %v418_v32, %v400_v35  ;;  %v419_v11 = vadd.f32 %v417_v8, %v399_v9 }
  0xae   : > { %v1255_v13 = vpop.permute.xlu1 %434  ;;  %v1257_v14 = vpop.permute.xlu0 %429 }
  0xaf   : > { %v438_v36 = vmul.f32 %v936_v27, %v1255_v13  ;;  %v437_v10 = vmul.f32 %v935_v28, %v1257_v14 }
  0xb1   : > { %v440_v47 = vadd.f32 %v438_v36, %v420_v43  ;;  %v439_v13 = vadd.f32 %v437_v10, %v419_v11 }
  0xb2   : > { %v1260_v15 = vpop.permute.xlu1 %454  ;;  %v1262_v16 = vpop.permute.xlu0 %449 }
  0xb3   : > { %v458_v44 = vmul.f32 %v940_v33, %v1260_v15  ;;  %v457_v12 = vmul.f32 %v939_v34, %v1262_v16  ;;  %v975_v34 = vld [vmem:[%s1267_s20 + $0x140] sm:$0xff] }
  0xb5   : > { %v460_v55 = vadd.f32 %v458_v44, %v440_v47  ;;  %v459_v15 = vadd.f32 %v457_v12, %v439_v13 }
  0xb6   : > { %v1269_v17 = vpop.permute.xlu1 %474  ;;  %v1271_v18 = vpop.permute.xlu0 %469 }
  0xb7   : > { %v478_v48 = vmul.f32 %v944_v39, %v1269_v17  ;;  %v477_v14 = vmul.f32 %v943_v40, %v1271_v18  ;;  %v979_v40 = vld [vmem:[%s1267_s20 + $0x150] sm:$0xff] }
  0xb9   : > { %v480_v59 = vadd.f32 %v478_v48, %v460_v55  ;;  %v479_v17 = vadd.f32 %v477_v14, %v459_v15 }
  0xba   : > { %v1279_v25 = vpop.permute.xlu1 %494  ;;  %v1281_v26 = vpop.permute.xlu0 %489 }
  0xbb   : > { %v498_v56 = vmul.f32 %v948_v45, %v1279_v25  ;;  %v497_v16 = vmul.f32 %v947_v46, %v1281_v26 }
  0xbd   : > { %v500_v19 = vadd.f32 %v498_v56, %v480_v59  ;;  %v499_v25 = vadd.f32 %v497_v16, %v479_v17  ;;  %v992_v16 = vld [vmem:[%s1267_s20 + $0x188] sm:$0x1] }
  0xbe   : > { %v1287_v37 = vpop.permute.xlu1 %514  ;;  %v1289_v38 = vpop.permute.xlu0 %509 }
  0xbf   : > { %v518_v60 = vmul.f32 %v952_v49, %v1287_v37  ;;  %v517_v18 = vmul.f32 %v951_v50, %v1289_v38  ;;  %v988_v49 = vld [vmem:[%s1267_s20 + $0x178] sm:$0x1]  ;;  %v987_v50 = vld [vmem:[%s1267_s20 + $0x170] sm:$0xff] }
  0xc1   : > { %v520_v21 = vadd.f32 %v518_v60, %v500_v19  ;;  %v519_v37 = vadd.f32 %v517_v18, %v499_v25 }
  0xc2   : > { %v1295_v51 = vpop.permute.xlu1 %534  ;;  %v1297_v52 = vpop.permute.xlu0 %529 }
  0xc3   : > { %v538_v20 = vmul.f32 %v956_v57, %v1295_v51  ;;  %v537_v26 = vmul.f32 %v955_v58, %v1297_v52  ;;  %v991_v58 = vld [vmem:[%s1267_s20 + $0x180] sm:$0xff] }
  0xc5   : > { %v540_v27 = vadd.f32 %v538_v20, %v520_v21  ;;  %v539_v51 = vadd.f32 %v537_v26, %v519_v37 }
  0xc6   : > { %v1303_v1 = vpop.permute.xlu1 %554  ;;  %v1305_v2 = vpop.permute.xlu0 %549 }
  0xc7   : > { %v558_v22 = vmul.f32 %v960_v61, %v1303_v1  ;;  %v557_v38 = vmul.f32 %v959_v62, %v1305_v2  ;;  %v976_v2 = vld [vmem:[%s1267_s20 + $0x148] sm:$0x1]  ;;  %v996_v61 = vld [vmem:[%s1267_s20 + $0x198] sm:$0x1]  ;;  %v995_v62 = vld [vmem:[%s1267_s20 + $0x190] sm:$0xff] }
  0xc9   : > { %v560_v32 = vadd.f32 %v558_v22, %v540_v27  ;;  %v559_v8 = vadd.f32 %v557_v38, %v539_v51  ;;  %v1000_v22 = vld [vmem:[%s1267_s20 + $0x1a8] sm:$0x1]  ;;  %v999_v38 = vld [vmem:[%s1267_s20 + $0x1a0] sm:$0xff] }
  0xca   : > { %v575_v29 = vpop.permute.xlu1 %574  ;;  %v570_v30 = vpop.permute.xlu0 %569 }
  0xcb   : > { %v578_v28 = vmul.f32 %v964_v3, %v575_v29  ;;  %v577_v52 = vmul.f32 %v963_v4, %v570_v30  ;;  %v980_v30 = vld [vmem:[%s1267_s20 + $0x158] sm:$0x1] }
  0xcd   : > { %v580_v36 = vadd.f32 %v578_v28, %v560_v32  ;;  %v579_v10 = vadd.f32 %v577_v52, %v559_v8 }
  0xce   : > { %v595_v41 = vpop.permute.xlu1 %594  ;;  %v590_v42 = vpop.permute.xlu0 %589 }
  0xcf   : > { %v598_v33 = vmul.f32 %v968_v5, %v595_v41  ;;  %v597_v1 = vmul.f32 %v967_v23, %v590_v42  ;;  %v984_v41 = vld [vmem:[%s1267_s20 + $0x168] sm:$0x1]  ;;  %v983_v42 = vld [vmem:[%s1267_s20 + $0x160] sm:$0xff] }
  0xd1   : > { %v600_v43 = vadd.f32 %v598_v33, %v580_v36  ;;  %v599_v11 = vadd.f32 %v597_v1, %v579_v10  ;;  %v819_v36 = vld [vmem:[%s1392_s4 + $0x8] sm:$0x1] }
  0xd2   : > { %v615_v53 = vpop.permute.xlu1 %614  ;;  %v610_v54 = vpop.permute.xlu0 %609 }
  0xd3   : > { %v618_v39 = vmul.f32 %v972_v31, %v615_v53  ;;  %v617_v29 = vmul.f32 %v971_v7, %v610_v54 }
  0xd5   : > { %v620_v47 = vadd.f32 %v618_v39, %v600_v43  ;;  %v619_v13 = vadd.f32 %v617_v29, %v599_v11 }
  0xd6   : > { %v635_v63 = vpop.permute.xlu1 %634  ;;  %v630_v0 = vpop.permute.xlu0 %629 }
  0xd7   : > { %v638_v44 = vmul.f32 %v976_v2, %v635_v63  ;;  %v637_v12 = vmul.f32 %v975_v34, %v630_v0 }
  0xd9   : > { %v640_v53 = vadd.f32 %v638_v44, %v620_v47  ;;  %v639_v54 = vadd.f32 %v637_v12, %v619_v13 }
  0xda   : > { %v655_v6 = vpop.permute.xlu1 %654  ;;  %v650_v24 = vpop.permute.xlu0 %649 }
  0xdb   : > { %v658_v48 = vmul.f32 %v980_v30, %v655_v6  ;;  %v657_v14 = vmul.f32 %v979_v40, %v650_v24 }
  0xdd   : > { %v660_v59 = vadd.f32 %v658_v48, %v640_v53  ;;  %v659_v17 = vadd.f32 %v657_v14, %v639_v54 }
  0xde   : > { %v675_v35 = vpop.permute.xlu1 %674  ;;  %v670_v9 = vpop.permute.xlu0 %669 }
  0xdf   : > { %v678_v55 = vmul.f32 %v984_v41, %v675_v35  ;;  %v677_v15 = vmul.f32 %v983_v42, %v670_v9  ;;  %v804_v35 = vld [vmem:[%s1391_s3] sm:$0xff]  ;;  %v805_v42 = vld [vmem:[%s1391_s3 + $0x8] sm:$0x1] }
  0xe0   : > { %v818_v9 = vld [vmem:[%s1392_s4] sm:$0xff] }
  0xe1   : > { %v680_v63 = vadd.f32 %v678_v55, %v660_v59  ;;  %v679_v0 = vadd.f32 %v677_v15, %v659_v17 }
  0xe2   : > { %v695_v45 = vpop.permute.xlu1 %694  ;;  %v690_v46 = vpop.permute.xlu0 %689 }
  0xe3   : > { %v698_v60 = vmul.f32 %v988_v49, %v695_v45  ;;  %v697_v18 = vmul.f32 %v987_v50, %v690_v46 }
  0xe5   : > { %v700_v3 = vadd.f32 %v698_v60, %v680_v63  ;;  %v699_v4 = vadd.f32 %v697_v18, %v679_v0 }
  0xe6   : > { %v715_v56 = vpop.permute.xlu1 %714  ;;  %v710_v57 = vpop.permute.xlu0 %709 }
  0xe7   : > { %v718_v19 = vmul.f32 %v992_v16, %v715_v56  ;;  %v717_v25 = vmul.f32 %v991_v58, %v710_v57 }
  0xe9   : > { %v720_v5 = vadd.f32 %v718_v19, %v700_v3  ;;  %v719_v23 = vadd.f32 %v717_v25, %v699_v4 }
  0xea   : > { %v735_v20 = vpop.permute.xlu1 %734  ;;  %v730_v26 = vpop.permute.xlu0 %729 }
  0xeb   : > { %v738_v21 = vmul.f32 %v996_v61, %v735_v20  ;;  %v737_v37 = vmul.f32 %v995_v62, %v730_v26 }
  0xed   : > { %v740_v27 = vadd.f32 %v738_v21, %v720_v5  ;;  %v739_v51 = vadd.f32 %v737_v37, %v719_v23 }
  0xee   : > { %v755_v6 = vpop.permute.xlu1 %754  ;;  %v750_v24 = vpop.permute.xlu0 %749 }
  0xef   : > { %v758_v28 = vmul.f32 %v1000_v22, %v755_v6  ;;  %v757_v52 = vmul.f32 %v999_v38, %v750_v24 }
  0xf1   : > { %v760_v31 = vadd.f32 %v758_v28, %v740_v27  ;;  %v759_v7 = vadd.f32 %v757_v52, %v739_v51 }
  0xf2   : > { %v771_v32 = vpop.permute.xlu1 %770  ;;  %v766_v8 = vpop.permute.xlu0 %765 }
  0xf3   : > { %v774_v33 = vadd.f32 %v771_v32, %v760_v31  ;;  %v773_v1 = vadd.f32 %v766_v8, %v759_v7 }
  0xf5   : > { %v780_v2 = vsel %vm779_vm0, %v774_v33, 0.0  ;;  %v776_v34 = vsel %vm775_vm1, %v773_v1, 0.0 }
  0xf6   : > { %781 = vadd.xlane.f32.xlu1 %v780_v2  ;;  %777 = vadd.xlane.f32.xlu0 %v776_v34 }
 0x107   : > { %808 = vperm.xlu1 %1017, %v804_v35  }
 0x10b   : > { %822 = vperm.xlu1 %1017, %v818_v9  }
 0x10f   : > { %827 = vperm.xlu1 %1017, %v819_v36  }
 0x183   : > { %v782_v10 = vpop.xlane.xlu1 %781  ;;  %v778_v39 = vpop.xlane.xlu0 %777 }
 0x184   : > { %v785_v29 = vmul.f32 0.015625, %v782_v10  ;;  %v784_v30 = vmul.f32 0.015625, %v778_v39 }
 0x186   : > { %v787_v40 = vsub.f32 %v774_v33, %v785_v29  ;;  %v786_v43 = vsub.f32 %v773_v1, %v784_v30 }
 0x187   : > { %v809_v49 = vpop.permute.xlu1 %808 }
 0x188   : > { %v788_v11 = vmul.f32 %v786_v43, %v786_v43  ;;  %v789_v12 = vmul.f32 %v787_v40, %v787_v40 }
 0x18a   : > { %v790_v44 = vsel %vm775_vm1, %v788_v11, 0.0  ;;  %v793_v41 = vsel %vm779_vm0, %v789_v12, 0.0 }
 0x18b   : > { %791 = vadd.xlane.f32.xlu0 %v790_v44  ;;  %v823_v54 = vpop.permute.xlu1 %822 }
 0x18f   : > { %794 = vadd.xlane.f32.xlu0 %v793_v41  ;;  %v828_v17 = vpop.permute.xlu1 %827 }
 0x1a5   : > { %813 = vperm.xlu0 %1016, %v805_v42  }
 0x218   : > { %v792_v45 = vpop.xlane.xlu0 %791 }
 0x219   : > { %v796_v46 = vmul.f32 0.015625, %v792_v45 }
 0x21b   : > { %v798_v47 = vadd.f32 1e-05, %v796_v46 }
 0x21c   : > { %v795_v13 = vpop.xlane.xlu0 %794 }
 0x21d   : > { %1018 = vrsqrt.f32 %v798_v47  ;;  %v797_v48 = vmul.f32 0.015625, %v795_v13 }
 0x21f   : > { %v799_v14 = vadd.f32 1e-05, %v797_v48 }
 0x221   : > { %1020 = vrsqrt.f32 %v799_v14 }
 0x224   : > { %v814_v57 = vpop.permute.xlu0 %813 }
 0x227   : > { %v1019_v50 = vpop.eup %1018 }
 0x228   : > { %v802_v53 = vmul.f32 %v1019_v50, %v786_v43 }
 0x22a   : > { %v816_v55 = vmul.f32 %v809_v49, %v802_v53 }
 0x22b   : > { %v1021_v15 = vpop.eup %1020 }
 0x22c   : > { %v830_v56 = vadd.f32 %v823_v54, %v816_v55  ;;  %v803_v16 = vmul.f32 %v1021_v15, %v787_v40 }
 0x22e   : > { %v832_v58 = vmax.f32 %v830_v56, 0.0  ;;  %v817_v59 = vmul.f32 %v814_v57, %v803_v16 }
 0x230   : > { %834 = vst.msk [vmem:[%s224_s7] sm:$0xff] %vm775_vm1, %v832_v58  ;;  %v831_v60 = vadd.f32 %v828_v17, %v817_v59 }
 0x232   : > { %v833_v18 = vmax.f32 %v831_v60, 0.0 }
 0x234   : > { %835 = vst.msk [vmem:[%s224_s7 + $0x8] sm:$0x1] %vm779_vm0, %v833_v18 }
 0x235 PF: > { %s15_s18 = sadd.s32 1, %s1028_s18  }
 0x236   : > { %p12_p4 = scmp.ge.s32.totalorder %s15_s18, 4  }
 0x238   :  { %14 = sbr.rel (!%p12_p4) target bundleno = 1 (0x1), region = 122 }

// kernel: model_forward.12
= control target key start
LH: loop header
LB: loop body
LE: loop exit
PB: predicated region body
PF: predicated region fallthrough
CT: control target
= control target key end

     0   :  { %s532_s18 = smov 0   ;;  %s588_s0 = inlined_call_operand.vmem [shape: f32[9,9], index: 0, kind: input, shape index: {}]   ;;  %s589_s1 = inlined_call_operand.vmem [shape: f32[2,9,64], index: 1, kind: input, shape index: {}]   ;;  %s590_s2 = inlined_call_operand.vmem [shape: f32[9,1], index: 2, kind: input, shape index: {}, may-alias: {2,4}]   ;;  %s591_s3 = inlined_call_operand.vmem [shape: f32[9,1], index: 3, kind: input, shape index: {}]   ;;  %s592_s4 = inlined_call_operand.vmem [shape: f32[9,1], index: 4, kind: input, shape index: {}, may-alias: {2,4}]   ;;  %s593_s5 = inlined_call_operand.vmem [shape: f32[2,9,64], index: 5, kind: output, shape index: {}]  }
   0x1 LB: > { %s443_s19 = sadd.s32 4294967295, %s498_s18   ;;  %p447_p0 = scmp.ge.s32.totalorder %s498_s18, 1  ;;  %s498_s18 = sphi %s532_s18, %s15_s18  }
   0x2   : > { %p187_p1 = scmp.lt.s32.totalorder %s498_s18, 3 }
   0x4   : > { %p188_p2 = pnand %p447_p0, %p187_p1 }
   0x5   : > { %p215_p3 = scmp.lt.s32.totalorder (!%p188_p2), %s443_s19, 1  ;;  %v225_v0 = vld [vmem:[%s588_s0] sm:$0xff] (!%p188_p2)  ;;  %vm241_vm0 = vcmask (!%p188_p2), 72704   ;;  %v500_v1 = vmov (!%p188_p2), 0   ;;  %vm248_vm1 = vcmask (!%p188_p2), 1040384   ;;  %vm501_vm2 = vmmov (!%p188_p2), 1  }
   0x6   : > { %191 = sbr.rel (%p188_p2) target bundleno = 558 (0x22e), region = 40  ;;  %467 = vmatprep.mubr.msk.f32.mxu0 (!%p188_p2), %vm241_vm0, %v225_v0  ;;  %486 = vset.pattern.permute.xlu0 (!%p188_p2), %v500_v1  ;;  %v229_v2 = vld [vmem:[%s590_s2] sm:$0xff] (!%p188_p2)  ;;  %v230_v3 = vld [vmem:[%s590_s2 + $0x8] sm:$0x1] (!%p188_p2)  ;;  %vm471_vm3 = vmpackc.low (!%p188_p2), %vm248_vm1, %vm501_vm2  ;;  %vm327_vm4 = vcmask (!%p188_p2), 523264   ;;  %vm331_vm5 = vcmask (!%p188_p2), 516096  }
   0x7   : > { %233 = vperm.xlu0 (!%p188_p2), %486, %v229_v2   ;;  %487 = vset.pattern.permute.xlu1 (!%p188_p2), %v500_v1  ;;  %v226_v7 = vld [vmem:[%s588_s0 + $0x8] sm:$0x1] (!%p188_p2)  ;;  %v356_v26 = vld [vmem:[%s591_s3] sm:$0xff] (!%p188_p2) }
   0x8   : > { %v357_v27 = vld [vmem:[%s591_s3 + $0x8] sm:$0x1] (!%p188_p2)  ;;  %v370_v28 = vld [vmem:[%s592_s4] sm:$0xff] (!%p188_p2) }
   0x9   : > { %v371_v29 = vld [vmem:[%s592_s4 + $0x8] sm:$0x1] (!%p188_p2) }
   0xb   : > { %238 = vperm.xlu0 (!%p188_p2), %486, %v230_v3  }
   0xd   : > { %s595_s19 = smov (!%p215_p3, %s443_s19), 1 }
   0xe   : > { %s457_s26 = sshll.u32 %s595_s19, 4 }
   0xf   : > { %s219_s29 = scalar_lea.vmem %s589_s1, %s457_s26  ;;  %s224_s17 = scalar_lea.vmem %s593_s5, %s457_s26 }
  0x10   : > { %v227_v4 = vld [vmem:[%s219_s29] sm:$0xff]  ;;  %v228_v5 = vld [vmem:[%s219_s29 + $0x8] sm:$0x1] }
  0x11   : > { %v470_v6 = vpack.c.bf16 %v228_v5, %v227_v4 }
  0x13   : > { %472 = vmatprep.subr.msk.bf16.mxu0 %vm471_vm3, %v470_v6 }
  0x14   : > { %475 = vmatpush3.bf16.msk.msra.mxu0 %vm471_vm3, %v470_v6 }
  0x17   : > { %468 = vmatmul.mubr.msk.f32.vlgmr.msra.gmra.mrb[0].mxu0 %vm241_vm0, %v226_v7 }
  0x86   : > { %v234_v8 = vpop.permute.xlu0 %233 }
  0x8a   : > { %v239_v10 = vpop.permute.xlu0 %238 }
  0xea   : > { %v469_v9 = vpop.f32.mrb[0].mxu0 }
  0xeb   : > { %v318_v11 = vpop.f32.mrb[1].mxu0  ;;  %v324_v13 = vadd.f32 %v469_v9, %v239_v10 }
  0xec   : > { %v319_v12 = vadd.f32 %v318_v11, %v234_v8 }
  0xed   : > { %v332_v15 = vsel %vm331_vm5, %v324_v13, 0.0 }
  0xee   : > { %v328_v14 = vsel %vm327_vm4, %v319_v12, 0.0 }
  0xef   : > { %329 = vadd.xlane.f32.xlu1 %v328_v14 }
  0xf3   : > { %333 = vadd.xlane.f32.xlu1 %v332_v15 }
 0x17c   : > { %v330_v16 = vpop.xlane.xlu1 %329 }
 0x17d   : > { %v336_v17 = vmul.f32 0.015625, %v330_v16 }
 0x17f   : > { %v338_v18 = vsub.f32 %v319_v12, %v336_v17 }
 0x180   : > { %v334_v19 = vpop.xlane.xlu1 %333 }
 0x181   : > { %v337_v20 = vmul.f32 0.015625, %v334_v19  ;;  %v340_v21 = vmul.f32 %v338_v18, %v338_v18 }
 0x183   : > { %v339_v22 = vsub.f32 %v324_v13, %v337_v20  ;;  %v342_v23 = vsel %vm327_vm4, %v340_v21, 0.0 }
 0x184   : > { %343 = vadd.xlane.f32.xlu0 %v342_v23 }
 0x185   : > { %v341_v24 = vmul.f32 %v339_v22, %v339_v22 }
 0x187   : > { %v345_v25 = vsel %vm331_vm5, %v341_v24, 0.0 }
 0x188   : > { %346 = vadd.xlane.f32.xlu1 %v345_v25 }
 0x199   : > { %360 = vperm.xlu1 %487, %v356_v26  }
 0x19d   : > { %365 = vperm.xlu1 %487, %v357_v27  }
 0x1a1   : > { %374 = vperm.xlu1 %487, %v370_v28  }
 0x1a5   : > { %379 = vperm.xlu1 %487, %v371_v29  }
 0x211   : > { %v344_v30 = vpop.xlane.xlu0 %343 }
 0x212   : > { %v348_v31 = vmul.f32 0.015625, %v344_v30 }
 0x214   : > { %v350_v32 = vadd.f32 1e-05, %v348_v31 }
 0x215   : > { %v347_v33 = vpop.xlane.xlu1 %346 }
 0x216   : > { %488 = vrsqrt.f32 %v350_v32  ;;  %v349_v34 = vmul.f32 0.015625, %v347_v33 }
 0x218   : > { %v351_v35 = vadd.f32 1e-05, %v349_v34 }
 0x219   : > { %v361_v36 = vpop.permute.xlu1 %360 }
 0x21a   : > { %490 = vrsqrt.f32 %v351_v35 }
 0x21d   : > { %v366_v37 = vpop.permute.xlu1 %365 }
 0x220   : > { %v489_v38 = vpop.eup %488 }
 0x221   : > { %v354_v39 = vmul.f32 %v489_v38, %v338_v18  ;;  %v375_v40 = vpop.permute.xlu1 %374 }
 0x223   : > { %v368_v41 = vmul.f32 %v361_v36, %v354_v39 }
 0x224   : > { %v491_v42 = vpop.eup %490 }
 0x225   : > { %v355_v43 = vmul.f32 %v491_v42, %v339_v22  ;;  %v382_v44 = vadd.f32 %v375_v40, %v368_v41  ;;  %v380_v47 = vpop.permute.xlu1 %379 }
 0x227   : > { %v369_v45 = vmul.f32 %v366_v37, %v355_v43  ;;  %v384_v46 = vmax.f32 %v382_v44, 0.0 }
 0x229   : > { %386 = vst.msk [vmem:[%s224_s17] sm:$0xff] %vm327_vm4, %v384_v46  ;;  %v383_v48 = vadd.f32 %v380_v47, %v369_v45 }
 0x22b   : > { %v385_v49 = vmax.f32 %v383_v48, 0.0 }
 0x22d   : > { %387 = vst.msk [vmem:[%s224_s17 + $0x8] sm:$0x1] %vm331_vm5, %v385_v49 }
 0x22e PF: > { %s15_s18 = sadd.s32 1, %s498_s18  }
 0x22f   : > { %p12_p4 = scmp.ge.s32.totalorder %s15_s18, 4  }
 0x231   :  { %14 = sbr.rel (!%p12_p4) target bundleno = 1 (0x1), region = 70 }

// kernel: model_forward.13
= control target key start
LH: loop header
LB: loop body
LE: loop exit
PB: predicated region body
PF: predicated region fallthrough
CT: control target
= control target key end

     0   :  { %s714_s15 = smov 0   ;;  %s716_s16 = smov 0   ;;  %s779_s0 = inlined_call_operand.vmem [shape: f32[9,9], index: 0, kind: input, shape index: {}]   ;;  %s780_s1 = inlined_call_operand.vmem [shape: f32[2,9,512], index: 1, kind: input, shape index: {}]   ;;  %s781_s2 = inlined_call_operand.vmem [shape: f32[2,9,512], index: 2, kind: input, shape index: {}]   ;;  %s782_s3 = inlined_call_operand.vmem [shape: f32[9,1], index: 3, kind: input, shape index: {}]   ;;  %s783_s4 = inlined_call_operand.vmem [shape: f32[2,9,512], index: 4, kind: output, shape index: {}]  }
   0x1   :  { %s718_s17 = smov 0  }
   0x2 LB: > { %s26_s18 = sadd.s32 1, %s680_s16  ;;  %p602_p0 = scmp.ge.s32.totalorder %s684_s17, 1  ;;  %s684_s17 = sphi %s718_s17, %s14_s17   ;;  %s680_s16 = sphi %s716_s16, %s787_s16   ;;  %s676_s15 = sphi %s714_s15, %s786_s15  }
   0x3   : > { %p28_p1 = scmp.ge.s32.totalorder %s26_s18, 2  ;;  %p200_p2 = scmp.lt.s32.totalorder %s684_s17, 3 }
   0x5   : > { %s789_s18 = smov (%p28_p1, %s26_s18), 0  ;;  %p201_p3 = pnand %p602_p0, %p200_p2 }
   0x6   : > { %p244_p4 = scmp.lt.s32.totalorder (!%p201_p3), %s676_s15, 1  ;;  %v686_v0 = vmov (!%p201_p3), 0.0   ;;  %v299_v1 = vld [vmem:[%s782_s3] sm:$0xff] (!%p201_p3)  ;;  %vm318_vm0 = vcmask (!%p201_p3), 1040384   ;;  %v687_v2 = vmov (!%p201_p3), 0   ;;  %vm688_vm1 = vmmov (!%p201_p3), 1  }
   0x7   : > { %204 = sbr.rel (%p201_p3) target bundleno = 252 (0xfc), region = 36  ;;  %395 = vmatprep.mubr.f32.mxu0 (!%p201_p3), %v686_v0  ;;  %472 = vmatprep.mubr.f32.mxu1 (!%p201_p3), %v686_v0  ;;  %v300_v3 = vld [vmem:[%s782_s3 + $0x8] sm:$0x1] (!%p201_p3)  ;;  %vm748_vm2 = vmpackc.low (!%p201_p3), %vm318_vm0, %vm688_vm1  ;;  %v297_v33 = vld [vmem:[%s779_s0] sm:$0xff] (!%p201_p3)  ;;  %vm311_vm3 = vcmask (!%p201_p3), 72704  }
   0x8   : > { %661 = vset.pattern.permute.xlu0 (!%p201_p3), %v687_v2  ;;  %v298_v34 = vld [vmem:[%s779_s0 + $0x8] sm:$0x1] (!%p201_p3) }
   0x9   : > { %303 = vperm.xlu0 (!%p201_p3), %661, %v299_v1  }
   0xd   : > { %308 = vperm.xlu0 (!%p201_p3), %661, %v300_v3  }
   0xe   : > { %s791_s15 = smov (!%p244_p4, %s676_s15), 1 }
   0xf   : > { %s735_s21 = sshll.u32 %s791_s15, 6 }
  0x10   : > { %s251_s26 = scalar_lea.vmem %s780_s1, %s735_s21  ;;  %s261_s29 = scalar_lea.vmem %s781_s2, %s735_s21 }
  0x11   : > { %v274_v5 = vld [vmem:[%s251_s26 + $0x8] sm:$0xff]  ;;  %v276_v10 = vld [vmem:[%s251_s26 + $0x18] sm:$0xff]  ;;  %v273_v15 = vld [vmem:[%s251_s26] sm:$0xff]  ;;  %s271_s10 = scalar_lea.vmem %s783_s4, %s735_s21 }
  0x12   : > { %v278_v6 = vld [vmem:[%s251_s26 + $0x28] sm:$0x1]  ;;  %v280_v11 = vld [vmem:[%s251_s26 + $0x38] sm:$0x1]  ;;  %v277_v18 = vld [vmem:[%s251_s26 + $0x20] sm:$0x1] }
  0x13   : > { %v282_v7 = vld [vmem:[%s261_s29 + $0x8] sm:$0xff]  ;;  %v284_v13 = vld [vmem:[%s261_s29 + $0x18] sm:$0xff]  ;;  %v281_v19 = vld [vmem:[%s261_s29] sm:$0xff] }
  0x14   : > { %v286_v8 = vld [vmem:[%s261_s29 + $0x28] sm:$0x1]  ;;  %v290_v9 = vmul.f32 %v282_v7, %v274_v5  ;;  %v288_v14 = vld [vmem:[%s261_s29 + $0x38] sm:$0x1]  ;;  %v292_v16 = vmul.f32 %v284_v13, %v276_v10  ;;  %v285_v20 = vld [vmem:[%s261_s29 + $0x20] sm:$0x1]  ;;  %v289_v22 = vmul.f32 %v281_v19, %v273_v15 }
  0x15   : > { %v294_v12 = vmul.f32 %v286_v8, %v278_v6  ;;  %v296_v17 = vmul.f32 %v288_v14, %v280_v11  ;;  %v293_v23 = vmul.f32 %v285_v20, %v277_v18  ;;  %v275_v24 = vld [vmem:[%s251_s26 + $0x10] sm:$0xff] }
  0x16   : > { %v279_v25 = vld [vmem:[%s251_s26 + $0x30] sm:$0x1] }
  0x17   : > { %v622_v21 = vpack.c.bf16 %v294_v12, %v290_v9  ;;  %v283_v26 = vld [vmem:[%s261_s29 + $0x10] sm:$0xff]  ;;  %v628_v27 = vpack.c.bf16 %v296_v17, %v292_v16  ;;  %v625_v30 = vpack.c.bf16 %v293_v23, %v289_v22 }
  0x18   : > { %v287_v28 = vld [vmem:[%s261_s29 + $0x30] sm:$0x1]  ;;  %v291_v29 = vmul.f32 %v283_v26, %v275_v24 }
  0x19   : > { %624 = vmatprep.subr.msk.bf16.mxu0 %vm748_vm2, %v622_v21  ;;  %v295_v31 = vmul.f32 %v287_v28, %v279_v25  ;;  %630 = vmatprep.subr.msk.bf16.mxu1 %vm748_vm2, %v628_v27 }
  0x1a   : > { %627 = vmatpush1.bf16.msk.msra.mxu0 %vm748_vm2, %v625_v30 }
  0x1b   : > { %v631_v32 = vpack.c.bf16 %v295_v31, %v291_v29 }
  0x1d   : > { %633 = vmatpush1.bf16.msk.msra.mxu1 %vm748_vm2, %v631_v32  ;;  %611 = vmatmul.mubr.msk.f32.vlgmr.msra.gmra.mrb[0].mxu0 %vm311_vm3, %v297_v33 }
  0x1e   : > { %401 = vmatprep.mubr.f32.mxu0 %v686_v0 }
  0x20   : > { %615 = vmatmul.mubr.msk.f32.vlgmr.msra.gmra.mrb[0].mxu1 %vm311_vm3, %v297_v33 }
  0x21   : > { %478 = vmatprep.mubr.f32.mxu1 %v686_v0  ;;  %612 = vmatmul.mubr.msk.f32.gmra.mrb[2].mxu0 %vm311_vm3, %v298_v34 }
  0x24   : > { %616 = vmatmul.mubr.msk.f32.gmra.mrb[2].mxu1 %vm311_vm3, %v298_v34 }
  0x88   : > { %v304_v35 = vpop.permute.xlu0 %303 }
  0x8c   : > { %v309_v43 = vpop.permute.xlu0 %308 }
  0xf0   : > { %v397_v36 = vpop.f32.mrb[0].mxu0 }
  0xf1   : > { %v398_v37 = vadd.f32 %v397_v36, %v304_v35  ;;  %v399_v38 = vpop.f32.mrb[1].mxu0 }
  0xf2   : > { %v400_v40 = vadd.f32 %v399_v38, %v304_v35 }
  0xf3   : > { %v474_v39 = vpop.f32.mrb[0].mxu1  ;;  %485 = vst [vmem:[%s271_s10] sm:$0xff] %v398_v37 }
  0xf4   : > { %v475_v41 = vadd.f32 %v474_v39, %v304_v35  ;;  %v476_v42 = vpop.f32.mrb[1].mxu1  ;;  %486 = vst [vmem:[%s271_s10 + $0x8] sm:$0xff] %v400_v40  ;;  %v403_v45 = vpop.f32.mrb[2].mxu0 }
  0xf5   : > { %v477_v44 = vadd.f32 %v476_v42, %v304_v35  ;;  %v404_v46 = vadd.f32 %v403_v45, %v309_v43  ;;  %v405_v47 = vpop.f32.mrb[3].mxu0 }
  0xf6   : > { %487 = vst [vmem:[%s271_s10 + $0x10] sm:$0xff] %v475_v41  ;;  %v406_v49 = vadd.f32 %v405_v47, %v309_v43 }
  0xf7   : > { %488 = vst [vmem:[%s271_s10 + $0x18] sm:$0xff] %v477_v44  ;;  %v480_v48 = vpop.f32.mrb[2].mxu1  ;;  %489 = vst [vmem:[%s271_s10 + $0x20] sm:$0x1] %v404_v46 }
  0xf8   : > { %v481_v50 = vadd.f32 %v480_v48, %v309_v43  ;;  %v482_v51 = vpop.f32.mrb[3].mxu1  ;;  %490 = vst [vmem:[%s271_s10 + $0x28] sm:$0x1] %v406_v49 }
  0xf9   : > { %v483_v52 = vadd.f32 %v482_v51, %v309_v43 }
  0xfa   : > { %491 = vst [vmem:[%s271_s10 + $0x30] sm:$0x1] %v481_v50 }
  0xfb   : > { %492 = vst [vmem:[%s271_s10 + $0x38] sm:$0x1] %v483_v52 }
  0xfc PF: > { %s14_s17 = sadd.s32 1, %s684_s17   ;;  %s786_s15 = smov %s680_s16 }
  0xfd   : > { %p11_p5 = scmp.ge.s32.totalorder %s14_s17, 4   ;;  %s787_s16 = smov %s789_s18 }
  0xff   :  { %13 = sbr.rel (!%p11_p5) target bundleno = 2 (0x2), region = 69 }

</bundles_post_ra>
